<compile_context>
chip_gen: v7x
topology: tpu7x:2x2x1
jax: 0.10.0
libtpu: 0.0.40
codegen_flags: <defaults>
</compile_context>

<pallas_src>
import functools

import jax
import jax.numpy as jnp
from jax.experimental import pallas as pl
from jax.experimental.pallas import tpu as pltpu


# ---------------------------------------------------------------------------
# Pallas kernels
# ---------------------------------------------------------------------------

def _branch_convs_kernel(x_ref, w_ref, *rest, rates, pad, sh, W, cin,
                         n_branches):
    """Fused per-(image, row-strip) branch convolutions.

    For one row strip of one image computes
      branch 0    : 1x1 conv (centre tap),
      branch 1..R : dilated 3x3 convs (9 shifted taps each, no HBM im2col),
    plus per-branch partial BN statistics from the stored (rounded) outputs.

    x_ref : (Hp, Wp, Cin)      zero-padded image (compute dtype); same block
                               for every strip of an image -> one DMA/image.
    w_ref : (1+9R, Cin, Cout)  packed weights (compute dtype).
    rest  : B raw outputs (SH*W, Cout), B s1 (1, Cout), B s2 (1, Cout),
            then one (SH*W, Cout) f32 VMEM scratch accumulator.
    """
    B = n_branches
    y_refs = rest[:B]
    s1_refs = rest[B:2 * B]
    s2_refs = rest[2 * B:3 * B]
    acc_ref = rest[3 * B]

    s = pl.program_id(1)
    h0 = pl.multiple_of(s * sh, sh)
    # One dynamic ref-slice per strip: the strip's rows plus the 3x3 halo.
    band = x_ref[pl.ds(h0, sh + 2 * pad), :, :]           # (sh+2P, Wp, Cin)

    def emit(bi):
        acc = acc_ref[...]
        y_c = acc.astype(y_refs[bi].dtype)
        y_refs[bi][...] = y_c
        yf = y_c.astype(jnp.float32)
        s1_refs[bi][...] = jnp.sum(yf, axis=0, keepdims=True)
        s2_refs[bi][...] = jnp.sum(yf * yf, axis=0, keepdims=True)

    # ---- branch 0: 1x1 conv (interior / centre tap) ----
    tap = band[pad:pad + sh, pad:pad + W, :].reshape(sh * W, cin)
    acc_ref[...] = jnp.dot(tap, w_ref[0], preferred_element_type=jnp.float32)
    emit(0)

    # ---- dilated 3x3 branches: 9 shifted dots accumulated in VMEM scratch ----
    for ri, r in enumerate(rates):
        first = True
        for ky in range(3):
            r0 = pad + (ky - 1) * r
            for kx in range(3):
                c0 = pad + (kx - 1) * r
                tap = band[r0:r0 + sh, c0:c0 + W, :].reshape(sh * W, cin)
                contrib = jnp.dot(tap, w_ref[1 + ri * 9 + ky * 3 + kx],
                                  preferred_element_type=jnp.float32)
                if first:
                    acc_ref[...] = contrib
                    first = False
                else:
                    acc_ref[...] += contrib
        emit(1 + ri)


def _project_stats_kernel(*refs, n_branches, cout):
    """Fused projection tile.

    - applies each branch's BN (precomputed scale/shift) + ReLU on the fly,
    - stages the normalized tiles into one (TM, B*Cout) VMEM buffer
      (one branch live at a time -> low vreg pressure),
    - one (TM, B*Cout) x (B*Cout, Cout) MXU dot (no concat tensor in HBM),
    - adds the pooled branch's projected per-image contribution,
    - emits per-tile partial BN stats for the projection BatchNorm.

    refs layout:
      refs[:B]   : (TM, Cout) raw branch tiles (compute dtype)
      refs[B]    : (B, 2, Cout) per-branch fused BN scale/shift (f32)
      refs[B+1]  : (B*Cout, Cout) projection weights (compute dtype)
      refs[B+2]  : (1, Cout) per-image projected pooling-branch term (f32)
      refs[B+3]  : (TM, Cout) raw projection output
      refs[B+4/5]: (1, Cout) partial BN stats s1 / s2
      refs[B+6]  : (TM, B*Cout) VMEM scratch (compute dtype)
    """
    B = n_branches
    ss_ref = refs[B]
    wp_ref = refs[B + 1]
    pool_ref = refs[B + 2]
    yo_ref = refs[B + 3]
    s1_ref = refs[B + 4]
    s2_ref = refs[B + 5]
    z_ref = refs[B + 6]

    for b in range(B):
        p = ss_ref[b]                                         # (2, Cout) f32
        z = refs[b][...].astype(jnp.float32) * p[0:1, :] + p[1:2, :]
        z_ref[:, b * cout:(b + 1) * cout] = jnp.maximum(z, 0.0).astype(z_ref.dtype)

    acc = jnp.dot(z_ref[...], wp_ref[...],
                  preferred_element_type=jnp.float32) + pool_ref[...]
    y_c = acc.astype(yo_ref.dtype)
    yo_ref[...] = y_c
    yf = y_c.astype(jnp.float32)
    s1_ref[...] = jnp.sum(yf, axis=0, keepdims=True)
    s2_ref[...] = jnp.sum(yf * yf, axis=0, keepdims=True)


def _scale_shift_relu_t_kernel(y_ref, p_ref, o_ref):
    """Final BN (fused scale/shift) + ReLU; stores the tile transposed so the
    output buffer is already channels-major (N, Cout, H*W) -> no XLA NCHW
    transpose with a lane-sparse W dim.  Store lane dim = TM (>=128 or full HW)."""
    p = p_ref[...]                                            # (2, Cout) f32
    y = y_ref[...].astype(jnp.float32)                        # (TM, Cout)
    z = jnp.maximum(y * p[0:1, :] + p[1:2, :], 0.0)
    o_ref[...] = z.T.astype(o_ref.dtype)                      # (Cout, TM)


# ---------------------------------------------------------------------------
# Wrapper helpers
# ---------------------------------------------------------------------------

def _pick_row_tile(hw, max_tile, multiple=8):
    """Largest divisor of hw that is a multiple of `multiple` and <= max_tile.
    Falls back to hw itself, which is always layout-legal on the (N, HW, C)
    arrays used here (block dim equals the full array dim).
    TODO(synk): masked / padded tiles would be better for huge odd HW."""
    best = None
    t = multiple
    limit = min(hw, max_tile)
    while t <= limit:
        if hw % t == 0:
            best = t
        t += multiple
    return best if best is not None else hw


def _pick_strip_rows(H, W, target_rows=128):
    """Smallest divisor sh of H with (sh*W) % 8 == 0 and sh*W >= target_rows;
    otherwise the largest valid divisor; otherwise the full height."""
    valid = [d for d in range(1, H + 1) if H % d == 0 and (d * W) % 8 == 0]
    if not valid:
        return H
    for d in valid:
        if d * W >= target_rows:
            return d
    return valid[-1]


def _vmem_limit_bytes():
    """Generation-aware scoped-VMEM budget: ~75% of physical VMEM
    (~48 MiB on v7x's 64 MiB, capped at 96 MiB on 128 MiB v5e/v6e parts)."""
    cap = 64 * 1024 * 1024
    try:
        info = pltpu.get_tpu_info()
        cap = int(getattr(info, "vmem_capacity_bytes", cap) or cap)
    except Exception:
        pass
    return min((cap * 3) // 4, 96 * 1024 * 1024)


def _cparams(vmem_limit):
    return pltpu.CompilerParams(
        dimension_semantics=("parallel", "parallel"),
        vmem_limit_bytes=vmem_limit)


def _bn_scale_shift(s1, s2, count, gamma, beta, eps):
    # Global training-mode BN statistics -> fused per-channel scale/shift.
    axes = tuple(range(s1.ndim - 1))
    s1 = jnp.sum(s1.astype(jnp.float32), axis=axes)
    s2 = jnp.sum(s2.astype(jnp.float32), axis=axes)
    mean = s1 / count
    var = jnp.maximum(s2 / count - mean * mean, 0.0)
    scale = gamma.astype(jnp.float32) * jax.lax.rsqrt(var + eps)
    shift = beta.astype(jnp.float32) - mean * scale
    return jnp.stack([scale, shift], axis=0)                  # (2, Cout)


# ---------------------------------------------------------------------------
# ASPP forward
# ---------------------------------------------------------------------------

def aspp_forward(x_nchw, params, rates, eps=1e-5, compute_dtype=jnp.bfloat16):
    """ASPP forward (training-mode BN, eval-mode Dropout).

    x_nchw: (N, Cin, H, W) float32  ->  (N, Cout, H, W) float32.
    """
    N, Cin, H, W = x_nchw.shape
    Cout = params["w0"].shape[0]
    R = len(rates)
    B = 1 + R                        # branches handled by the fused conv kernel
    HW = H * W
    M = N * HW
    P = max(rates) if R else 1
    f32 = jnp.float32
    vmem_limit = _vmem_limit_bytes()

    # ---- layout glue: NHWC, single cast to the compute dtype ----
    x_nhwc_f32 = jnp.transpose(x_nchw, (0, 2, 3, 1)).astype(f32)    # (N,H,W,Cin)
    pooled = jnp.mean(x_nhwc_f32, axis=(1, 2))                      # f32 AdaptiveAvgPool2d(1)
    x_pad = jnp.pad(x_nhwc_f32.astype(compute_dtype),
                    ((0, 0), (P, P), (P, P), (0, 0)))               # shared halo
    Hp, Wp = H + 2 * P, W + 2 * P

    # ---- tiling choices ----
    SH = _pick_strip_rows(H, W)                  # conv strip rows
    SHW = SH * W
    n_strips = H // SH
    TMp = _pick_row_tile(HW, 128)                # projection row tile (spill-safe)
    tpi_p = HW // TMp
    TMe = _pick_row_tile(HW, 512, multiple=128)  # epilogue tile (lane-dense transposed store)
    tpi_e = HW // TMe

    # ---- fused branch convolutions: 1x1 + all dilated 3x3 rates, one x read ----
    w_all = jnp.concatenate(
        [params["w0"].reshape(Cout, Cin).T.reshape(1, Cin, Cout)]
        + [jnp.transpose(params["w_rate"][i], (2, 3, 1, 0)).reshape(9, Cin, Cout)
           for i in range(R)],
        axis=0).astype(compute_dtype)                               # (1+9R, Cin, Cout)

    y_shape = jax.ShapeDtypeStruct((N, HW, Cout), compute_dtype)
    y_spec = pl.BlockSpec((None, SHW, Cout), lambda n, s: (n, s, 0))
    st_shape = jax.ShapeDtypeStruct((N, n_strips, 1, Cout), f32)
    st_spec = pl.BlockSpec((None, None, 1, Cout), lambda n, s: (n, s, 0, 0))

    res = pl.pallas_call(
        functools.partial(_branch_convs_kernel, rates=tuple(rates), pad=P,
                          sh=SH, W=W, cin=Cin, n_branches=B),
        grid=(N, n_strips),
        in_specs=[
            pl.BlockSpec((None, Hp, Wp, Cin), lambda n, s: (n, 0, 0, 0)),
            pl.BlockSpec((1 + 9 * R, Cin, Cout), lambda n, s: (0, 0, 0)),
        ],
        out_specs=tuple([y_spec] * B + [st_spec] * (2 * B)),
        out_shape=tuple([y_shape] * B + [st_shape] * (2 * B)),
        scratch_shapes=[pltpu.VMEM((SHW, Cout), f32)],
        compiler_params=_cparams(vmem_limit),
    )(x_pad, w_all)
    branch_y = list(res[:B])
    s1s = res[B:2 * B]
    s2s = res[2 * B:3 * B]

    gammas = [params["g0"]] + list(params["g_rate"])
    betas = [params["b0"]] + list(params["b_rate"])
    branch_ss = [_bn_scale_shift(s1s[b], s2s[b], M, gammas[b], betas[b], eps)
                 for b in range(B)]
    ss = jnp.stack(branch_ss, axis=0)                               # (B, 2, Cout)

    # ---- pooling branch (tiny O(N*Cin*Cout) work, stays f32 in XLA) ----
    # AdaptiveAvgPool -> 1x1 conv -> BN(over N) -> ReLU; bilinear upsample of a
    # 1x1 map is a constant broadcast, so its *projected* contribution is folded
    # into the projection kernel as a per-image additive (N, Cout) vector.
    wpool = params["wpool"].reshape(Cout, Cin).T.astype(f32)
    yp = pooled @ wpool                                             # (N, Cout)
    mp = jnp.mean(yp, axis=0)
    vp = jnp.mean((yp - mp) ** 2, axis=0)
    zp = jnp.maximum((yp - mp) * jax.lax.rsqrt(vp + eps)
                     * params["gpool"].astype(f32)
                     + params["bpool"].astype(f32), 0.0)

    # ---- projection: fused branch-BN+ReLU -> lane-packed K = B*Cout MXU dot ----
    wproj = params["wproj"].reshape(Cout, (B + 1) * Cout).T.astype(f32)
    wproj_main = wproj[:B * Cout].astype(compute_dtype)             # (B*Cout, Cout)
    pool_add = (zp @ wproj[B * Cout:]).reshape(N, 1, Cout)          # f32 per image

    tile_spec_p = pl.BlockSpec((None, TMp, Cout), lambda n, i: (n, i, 0))
    stp_shape = jax.ShapeDtypeStruct((N, tpi_p, 1, Cout), f32)
    stp_spec = pl.BlockSpec((None, None, 1, Cout), lambda n, i: (n, i, 0, 0))

    yproj, s1p, s2p = pl.pallas_call(
        functools.partial(_project_stats_kernel, n_branches=B, cout=Cout),
        grid=(N, tpi_p),
        in_specs=(
            [tile_spec_p] * B
            + [pl.BlockSpec((B, 2, Cout), lambda n, i: (0, 0, 0)),
               pl.BlockSpec((B * Cout, Cout), lambda n, i: (0, 0)),
               pl.BlockSpec((None, 1, Cout), lambda n, i: (n, 0, 0))]
        ),
        out_specs=(tile_spec_p, stp_spec, stp_spec),
        out_shape=(jax.ShapeDtypeStruct((N, HW, Cout), compute_dtype),
                   stp_shape, stp_shape),
        scratch_shapes=[pltpu.VMEM((TMp, B * Cout), compute_dtype)],
        compiler_params=_cparams(vmem_limit),
    )(*branch_y, ss, wproj_main, pool_add)

    # ---- projection BN + ReLU (Dropout: eval-mode identity), channels-major ----
    pproj = _bn_scale_shift(s1p, s2p, M, params["gproj"], params["bproj"], eps)
    out_cm = pl.pallas_call(
        _scale_shift_relu_t_kernel,
        grid=(N, tpi_e),
        in_specs=[pl.BlockSpec((None, TMe, Cout), lambda n, i: (n, i, 0)),
                  pl.BlockSpec((2, Cout), lambda n, i: (0, 0))],
        out_specs=pl.BlockSpec((None, Cout, TMe), lambda n, i: (n, 0, i)),
        out_shape=jax.ShapeDtypeStruct((N, Cout, HW), f32),
        compiler_params=_cparams(vmem_limit),
    )(yproj, pproj)

    return out_cm.reshape(N, Cout, H, W)


# ---------------------------------------------------------------------------
# Pure-JAX reference (mirrors PyTorch ASPP forward: train-mode BN, eval dropout)
# ---------------------------------------------------------------------------

def _conv_ref(x, w, dilation=1, padding=0):
    return jax.lax.conv_general_dilated(
        x.astype(jnp.float32), w.astype(jnp.float32),
        window_strides=(1, 1),
        padding=((padding, padding), (padding, padding)),
        rhs_dilation=(dilation, dilation),
        dimension_numbers=("NCHW", "OIHW", "NCHW"))


def _bn_relu_ref(y, gamma, beta, eps):
    mean = jnp.mean(y, axis=(0, 2, 3), keepdims=True)
    var = jnp.mean((y - mean) ** 2, axis=(0, 2, 3), keepdims=True)
    yh = (y - mean) * jax.lax.rsqrt(var + eps)
    return jnp.maximum(yh * gamma[None, :, None, None]
                       + beta[None, :, None, None], 0.0)


def aspp_reference(x, params, rates, eps=1e-5):
    N, _, H, W = x.shape
    res = [_bn_relu_ref(_conv_ref(x, params["w0"]), params["g0"], params["b0"], eps)]
    for idx, r in enumerate(rates):
        res.append(_bn_relu_ref(
            _conv_ref(x, params["w_rate"][idx], dilation=r, padding=r),
            params["g_rate"][idx], params["b_rate"][idx], eps))
    pooled = jnp.mean(x, axis=(2, 3), keepdims=True)
    zp = _bn_relu_ref(_conv_ref(pooled, params["wpool"]),
                      params["gpool"], params["bpool"], eps)
    res.append(jnp.broadcast_to(zp, (N, zp.shape[1], H, W)))   # bilinear up of 1x1
    cat = jnp.concatenate(res, axis=1)
    return _bn_relu_ref(_conv_ref(cat, params["wproj"]),
                        params["gproj"], params["bproj"], eps)


# ---------------------------------------------------------------------------
# Deterministic demo / self-test
# ---------------------------------------------------------------------------

def _init(key, shape, scale):
    return scale * jax.random.normal(key, shape, jnp.float32)


def make_params(key, in_ch, out_ch, rates):
    keys = iter(jax.random.split(key, 32))
    p = {
        "w0": _init(next(keys), (out_ch, in_ch, 1, 1), 0.1),
        "g0": 1.0 + _init(next(keys), (out_ch,), 0.1),
        "b0": _init(next(keys), (out_ch,), 0.1),
        "w_rate": [], "g_rate": [], "b_rate": [],
    }
    for _ in rates:
        p["w_rate"].append(_init(next(keys), (out_ch, in_ch, 3, 3), 0.1))
        p["g_rate"].append(1.0 + _init(next(keys), (out_ch,), 0.1))
        p["b_rate"].append(_init(next(keys), (out_ch,), 0.1))
    p["wpool"] = _init(next(keys), (out_ch, in_ch, 1, 1), 0.1)
    p["gpool"] = 1.0 + _init(next(keys), (out_ch,), 0.1)
    p["bpool"] = _init(next(keys), (out_ch,), 0.1)
    k_in = (2 + len(rates)) * out_ch
    p["wproj"] = _init(next(keys), (out_ch, k_in, 1, 1), 0.05)
    p["gproj"] = 1.0 + _init(next(keys), (out_ch,), 0.1)
    p["bproj"] = _init(next(keys), (out_ch,), 0.1)
    return p


if __name__ == "__main__":
    # Small batch/spatial/in-channels; out_channels kept a multiple of 128 so
    # the kernel-facing lane dimension is dense (ASPP's default 256 also is).
    N, in_ch, out_ch, H, W = 2, 4, 128, 16, 16
    rates = (1, 2, 3)

    key = jax.random.PRNGKey(0)
    kx, kp = jax.random.split(key)
    x = jax.random.normal(kx, (N, in_ch, H, W), dtype=jnp.float32)
    params = make_params(kp, in_ch, out_ch, rates)

    fwd_f32 = jax.jit(functools.partial(aspp_forward, rates=rates,
                                        compute_dtype=jnp.float32))
    fwd_bf16 = jax.jit(functools.partial(aspp_forward, rates=rates,
                                         compute_dtype=jnp.bfloat16))

    out_f32 = jax.block_until_ready(fwd_f32(x, params))
    out_bf16 = jax.block_until_ready(fwd_bf16(x, params))
    ref = aspp_reference(x, params, rates)

    assert out_f32.shape == (N, out_ch, H, W)
    assert out_bf16.shape == (N, out_ch, H, W)
    assert jnp.allclose(out_f32, ref, atol=2e-3, rtol=2e-3), \
        "f32 kernel mismatch vs reference"
    assert jnp.allclose(out_bf16, ref, atol=8e-2, rtol=8e-2), \
        "bf16 kernel mismatch vs reference"

    print("KERNEL_OK")
</pallas_src>

<mosaic_0001>
module attributes {stable_mosaic.version = 11 : i64} {
  func.func @_branch_convs_kernel(%arg0: i32, %arg1: i32, %arg2: memref<1x22x22x4xf32, #tpu.memory_space<vmem>>, %arg3: memref<28x4x128xf32, #tpu.memory_space<vmem>>, %arg4: memref<1x128x128xf32, #tpu.memory_space<vmem>>, %arg5: memref<1x128x128xf32, #tpu.memory_space<vmem>>, %arg6: memref<1x128x128xf32, #tpu.memory_space<vmem>>, %arg7: memref<1x128x128xf32, #tpu.memory_space<vmem>>, %arg8: memref<1x1x1x128xf32, #tpu.memory_space<vmem>>, %arg9: memref<1x1x1x128xf32, #tpu.memory_space<vmem>>, %arg10: memref<1x1x1x128xf32, #tpu.memory_space<vmem>>, %arg11: memref<1x1x1x128xf32, #tpu.memory_space<vmem>>, %arg12: memref<1x1x1x128xf32, #tpu.memory_space<vmem>>, %arg13: memref<1x1x1x128xf32, #tpu.memory_space<vmem>>, %arg14: memref<1x1x1x128xf32, #tpu.memory_space<vmem>>, %arg15: memref<1x1x1x128xf32, #tpu.memory_space<vmem>>, %arg16: memref<128x128xf32, #tpu.memory_space<vmem>>) attributes {dimension_semantics = [#tpu.dimension_semantics<parallel>, #tpu.dimension_semantics<parallel>], iteration_bounds = array<i64: 2, 2>, scalar_prefetch = 0 : i64, scratch_operands = 1 : i64, tpu.core_type = #tpu.core_type<tc>, window_params = [{transform_indices = @transform_0, window_bounds = array<i64: 1, 22, 22, 4>}, {pipeline_mode = #tpu.pipeline_mode<synchronous>, transform_indices = @transform_1, window_bounds = array<i64: 28, 4, 128>}, {transform_indices = @transform_2, window_bounds = array<i64: 1, 128, 128>}, {transform_indices = @transform_3, window_bounds = array<i64: 1, 128, 128>}, {transform_indices = @transform_4, window_bounds = array<i64: 1, 128, 128>}, {transform_indices = @transform_5, window_bounds = array<i64: 1, 128, 128>}, {transform_indices = @transform_6, window_bounds = array<i64: 1, 1, 1, 128>}, {transform_indices = @transform_7, window_bounds = array<i64: 1, 1, 1, 128>}, {transform_indices = @transform_8, window_bounds = array<i64: 1, 1, 1, 128>}, {transform_indices = @transform_9, window_bounds = array<i64: 1, 1, 1, 128>}, {transform_indices = @transform_10, window_bounds = array<i64: 1, 1, 1, 128>}, {transform_indices = @transform_11, window_bounds = array<i64: 1, 1, 1, 128>}, {transform_indices = @transform_12, window_bounds = array<i64: 1, 1, 1, 128>}, {transform_indices = @transform_13, window_bounds = array<i64: 1, 1, 1, 128>}]} {
    %c8_i32 = arith.constant 8 : i32
    %0 = arith.muli %arg1, %c8_i32 : i32
    %1 = tpu.assume_multiple %0, 8 : i32
    %c0 = arith.constant 0 : index
    %2 = arith.index_cast %1 : i32 to index
    %c0_0 = arith.constant 0 : index
    %c0_1 = arith.constant 0 : index
    %3 = vector.load %arg2[%c0, %2, %c0_0, %c0_1] : memref<1x22x22x4xf32, #tpu.memory_space<vmem>>, vector<1x14x22x4xf32>
    %4 = vector.shape_cast %3 : vector<1x14x22x4xf32> to vector<14x22x4xf32>
    %5 = vector.extract_strided_slice %4 {offsets = [3, 3, 0], sizes = [8, 16, 4], strides = [1, 1, 1]} : vector<14x22x4xf32> to vector<8x16x4xf32>
    %6 = vector.shape_cast %5 : vector<8x16x4xf32> to vector<128x4xf32>
    %c0_2 = arith.constant 0 : index
    %c0_3 = arith.constant 0 : index
    %c0_4 = arith.constant 0 : index
    %7 = vector.load %arg3[%c0_2, %c0_3, %c0_4] : memref<28x4x128xf32, #tpu.memory_space<vmem>>, vector<1x4x128xf32>
    %8 = vector.shape_cast %7 : vector<1x4x128xf32> to vector<4x128xf32>
    %cst = arith.constant dense<0.000000e+00> : vector<128x128xf32>
    %9 = tpu.matmul %6, %8, %cst {dimension_numbers = #tpu.dot_dimension_numbers<[1], [0], [0], [1], [0, 0, 1, 1], [], []>} : vector<128x4xf32>, vector<4x128xf32>, vector<128x128xf32> -> vector<128x128xf32>
    %c0_5 = arith.constant 0 : index
    %c0_6 = arith.constant 0 : index
    %10 = vector.load %arg16[%c0_5, %c0_6] : memref<128x128xf32, #tpu.memory_space<vmem>>, vector<128x128xf32>
    tpu.vector_store %arg16[%c0_5, %c0_6], %9 {strides = array<i32>} : memref<128x128xf32, #tpu.memory_space<vmem>>, vector<128x128xf32>,
    %c0_7 = arith.constant 0 : index
    %c0_8 = arith.constant 0 : index
    %11 = vector.load %arg16[%c0_7, %c0_8] : memref<128x128xf32, #tpu.memory_space<vmem>>, vector<128x128xf32>
    %c0_9 = arith.constant 0 : index
    %c0_10 = arith.constant 0 : index
    %c0_11 = arith.constant 0 : index
    %12 = vector.load %arg4[%c0_9, %c0_10, %c0_11] : memref<1x128x128xf32, #tpu.memory_space<vmem>>, vector<1x128x128xf32>
    %13 = vector.shape_cast %12 : vector<1x128x128xf32> to vector<128x128xf32>
    %14 = vector.shape_cast %11 : vector<128x128xf32> to vector<1x128x128xf32>
    tpu.vector_store %arg4[%c0_9, %c0_10, %c0_11], %14 {strides = array<i32>} : memref<1x128x128xf32, #tpu.memory_space<vmem>>, vector<1x128x128xf32>,
    %cst_12 = arith.constant dense<0.000000e+00> : vector<128xf32>
    %15 = vector.multi_reduction <add>, %11, %cst_12 [0] : vector<128x128xf32> to vector<128xf32>
    %16 = vector.shape_cast %15 : vector<128xf32> to vector<1x128xf32>
    %c0_13 = arith.constant 0 : index
    %c0_14 = arith.constant 0 : index
    %c0_15 = arith.constant 0 : index
    %c0_16 = arith.constant 0 : index
    %17 = vector.load %arg8[%c0_13, %c0_14, %c0_15, %c0_16] : memref<1x1x1x128xf32, #tpu.memory_space<vmem>>, vector<1x1x1x128xf32>
    %18 = vector.shape_cast %17 : vector<1x1x1x128xf32> to vector<1x128xf32>
    %19 = vector.shape_cast %16 : vector<1x128xf32> to vector<1x1x1x128xf32>
    tpu.vector_store %arg8[%c0_13, %c0_14, %c0_15, %c0_16], %19 {strides = array<i32>} : memref<1x1x1x128xf32, #tpu.memory_space<vmem>>, vector<1x1x1x128xf32>,
    %20 = arith.mulf %11, %11 : vector<128x128xf32>
    %cst_17 = arith.constant dense<0.000000e+00> : vector<128xf32>
    %21 = vector.multi_reduction <add>, %20, %cst_17 [0] : vector<128x128xf32> to vector<128xf32>
    %22 = vector.shape_cast %21 : vector<128xf32> to vector<1x128xf32>
    %c0_18 = arith.constant 0 : index
    %c0_19 = arith.constant 0 : index
    %c0_20 = arith.constant 0 : index
    %c0_21 = arith.constant 0 : index
    %23 = vector.load %arg12[%c0_18, %c0_19, %c0_20, %c0_21] : memref<1x1x1x128xf32, #tpu.memory_space<vmem>>, vector<1x1x1x128xf32>
    %24 = vector.shape_cast %23 : vector<1x1x1x128xf32> to vector<1x128xf32>
    %25 = vector.shape_cast %22 : vector<1x128xf32> to vector<1x1x1x128xf32>
    tpu.vector_store %arg12[%c0_18, %c0_19, %c0_20, %c0_21], %25 {strides = array<i32>} : memref<1x1x1x128xf32, #tpu.memory_space<vmem>>, vector<1x1x1x128xf32>,
    %26 = vector.extract_strided_slice %4 {offsets = [2, 2, 0], sizes = [8, 16, 4], strides = [1, 1, 1]} : vector<14x22x4xf32> to vector<8x16x4xf32>
    %27 = vector.shape_cast %26 : vector<8x16x4xf32> to vector<128x4xf32>
    %c1 = arith.constant 1 : index
    %c0_22 = arith.constant 0 : index
    %c0_23 = arith.constant 0 : index
    %28 = vector.load %arg3[%c1, %c0_22, %c0_23] : memref<28x4x128xf32, #tpu.memory_space<vmem>>, vector<1x4x128xf32>
    %29 = vector.shape_cast %28 : vector<1x4x128xf32> to vector<4x128xf32>
    %cst_24 = arith.constant dense<0.000000e+00> : vector<128x128xf32>
    %30 = tpu.matmul %27, %29, %cst_24 {dimension_numbers = #tpu.dot_dimension_numbers<[1], [0], [0], [1], [0, 0, 1, 1], [], []>} : vector<128x4xf32>, vector<4x128xf32>, vector<128x128xf32> -> vector<128x128xf32>
    %c0_25 = arith.constant 0 : index
    %c0_26 = arith.constant 0 : index
    %31 = vector.load %arg16[%c0_25, %c0_26] : memref<128x128xf32, #tpu.memory_space<vmem>>, vector<128x128xf32>
    tpu.vector_store %arg16[%c0_25, %c0_26], %30 {strides = array<i32>} : memref<128x128xf32, #tpu.memory_space<vmem>>, vector<128x128xf32>,
    %32 = vector.extract_strided_slice %4 {offsets = [2, 3, 0], sizes = [8, 16, 4], strides = [1, 1, 1]} : vector<14x22x4xf32> to vector<8x16x4xf32>
    %33 = vector.shape_cast %32 : vector<8x16x4xf32> to vector<128x4xf32>
    %c2 = arith.constant 2 : index
    %c0_27 = arith.constant 0 : index
    %c0_28 = arith.constant 0 : index
    %34 = vector.load %arg3[%c2, %c0_27, %c0_28] : memref<28x4x128xf32, #tpu.memory_space<vmem>>, vector<1x4x128xf32>
    %35 = vector.shape_cast %34 : vector<1x4x128xf32> to vector<4x128xf32>
    %cst_29 = arith.constant dense<0.000000e+00> : vector<128x128xf32>
    %36 = tpu.matmul %33, %35, %cst_29 {dimension_numbers = #tpu.dot_dimension_numbers<[1], [0], [0], [1], [0, 0, 1, 1], [], []>} : vector<128x4xf32>, vector<4x128xf32>, vector<128x128xf32> -> vector<128x128xf32>
    %c0_30 = arith.constant 0 : index
    %c0_31 = arith.constant 0 : index
    %37 = vector.load %arg16[%c0_30, %c0_31] : memref<128x128xf32, #tpu.memory_space<vmem>>, vector<128x128xf32>
    %38 = arith.addf %37, %36 : vector<128x128xf32>
    %c0_32 = arith.constant 0 : index
    %c0_33 = arith.constant 0 : index
    %39 = vector.load %arg16[%c0_32, %c0_33] : memref<128x128xf32, #tpu.memory_space<vmem>>, vector<128x128xf32>
    tpu.vector_store %arg16[%c0_32, %c0_33], %38 {strides = array<i32>} : memref<128x128xf32, #tpu.memory_space<vmem>>, vector<128x128xf32>,
    %40 = vector.extract_strided_slice %4 {offsets = [2, 4, 0], sizes = [8, 16, 4], strides = [1, 1, 1]} : vector<14x22x4xf32> to vector<8x16x4xf32>
    %41 = vector.shape_cast %40 : vector<8x16x4xf32> to vector<128x4xf32>
    %c3 = arith.constant 3 : index
    %c0_34 = arith.constant 0 : index
    %c0_35 = arith.constant 0 : index
    %42 = vector.load %arg3[%c3, %c0_34, %c0_35] : memref<28x4x128xf32, #tpu.memory_space<vmem>>, vector<1x4x128xf32>
    %43 = vector.shape_cast %42 : vector<1x4x128xf32> to vector<4x128xf32>
    %cst_36 = arith.constant dense<0.000000e+00> : vector<128x128xf32>
    %44 = tpu.matmul %41, %43, %cst_36 {dimension_numbers = #tpu.dot_dimension_numbers<[1], [0], [0], [1], [0, 0, 1, 1], [], []>} : vector<128x4xf32>, vector<4x128xf32>, vector<128x128xf32> -> vector<128x128xf32>
    %c0_37 = arith.constant 0 : index
    %c0_38 = arith.constant 0 : index
    %45 = vector.load %arg16[%c0_37, %c0_38] : memref<128x128xf32, #tpu.memory_space<vmem>>, vector<128x128xf32>
    %46 = arith.addf %45, %44 : vector<128x128xf32>
    %c0_39 = arith.constant 0 : index
    %c0_40 = arith.constant 0 : index
    %47 = vector.load %arg16[%c0_39, %c0_40] : memref<128x128xf32, #tpu.memory_space<vmem>>, vector<128x128xf32>
    tpu.vector_store %arg16[%c0_39, %c0_40], %46 {strides = array<i32>} : memref<128x128xf32, #tpu.memory_space<vmem>>, vector<128x128xf32>,
    %48 = vector.extract_strided_slice %4 {offsets = [3, 2, 0], sizes = [8, 16, 4], strides = [1, 1, 1]} : vector<14x22x4xf32> to vector<8x16x4xf32>
    %49 = vector.shape_cast %48 : vector<8x16x4xf32> to vector<128x4xf32>
    %c4 = arith.constant 4 : index
    %c0_41 = arith.constant 0 : index
    %c0_42 = arith.constant 0 : index
    %50 = vector.load %arg3[%c4, %c0_41, %c0_42] : memref<28x4x128xf32, #tpu.memory_space<vmem>>, vector<1x4x128xf32>
    %51 = vector.shape_cast %50 : vector<1x4x128xf32> to vector<4x128xf32>
    %cst_43 = arith.constant dense<0.000000e+00> : vector<128x128xf32>
    %52 = tpu.matmul %49, %51, %cst_43 {dimension_numbers = #tpu.dot_dimension_numbers<[1], [0], [0], [1], [0, 0, 1, 1], [], []>} : vector<128x4xf32>, vector<4x128xf32>, vector<128x128xf32> -> vector<128x128xf32>
    %c0_44 = arith.constant 0 : index
    %c0_45 = arith.constant 0 : index
    %53 = vector.load %arg16[%c0_44, %c0_45] : memref<128x128xf32, #tpu.memory_space<vmem>>, vector<128x128xf32>
    %54 = arith.addf %53, %52 : vector<128x128xf32>
    %c0_46 = arith.constant 0 : index
    %c0_47 = arith.constant 0 : index
    %55 = vector.load %arg16[%c0_46, %c0_47] : memref<128x128xf32, #tpu.memory_space<vmem>>, vector<128x128xf32>
    tpu.vector_store %arg16[%c0_46, %c0_47], %54 {strides = array<i32>} : memref<128x128xf32, #tpu.memory_space<vmem>>, vector<128x128xf32>,
    %56 = vector.extract_strided_slice %4 {offsets = [3, 3, 0], sizes = [8, 16, 4], strides = [1, 1, 1]} : vector<14x22x4xf32> to vector<8x16x4xf32>
    %57 = vector.shape_cast %56 : vector<8x16x4xf32> to vector<128x4xf32>
    %c5 = arith.constant 5 : index
    %c0_48 = arith.constant 0 : index
    %c0_49 = arith.constant 0 : index
    %58 = vector.load %arg3[%c5, %c0_48, %c0_49] : memref<28x4x128xf32, #tpu.memory_space<vmem>>, vector<1x4x128xf32>
    %59 = vector.shape_cast %58 : vector<1x4x128xf32> to vector<4x128xf32>
    %cst_50 = arith.constant dense<0.000000e+00> : vector<128x128xf32>
    %60 = tpu.matmul %57, %59, %cst_50 {dimension_numbers = #tpu.dot_dimension_numbers<[1], [0], [0], [1], [0, 0, 1, 1], [], []>} : vector<128x4xf32>, vector<4x128xf32>, vector<128x128xf32> -> vector<128x128xf32>
    %c0_51 = arith.constant 0 : index
    %c0_52 = arith.constant 0 : index
    %61 = vector.load %arg16[%c0_51, %c0_52] : memref<128x128xf32, #tpu.memory_space<vmem>>, vector<128x128xf32>
    %62 = arith.addf %61, %60 : vector<128x128xf32>
    %c0_53 = arith.constant 0 : index
    %c0_54 = arith.constant 0 : index
    %63 = vector.load %arg16[%c0_53, %c0_54] : memref<128x128xf32, #tpu.memory_space<vmem>>, vector<128x128xf32>
    tpu.vector_store %arg16[%c0_53, %c0_54], %62 {strides = array<i32>} : memref<128x128xf32, #tpu.memory_space<vmem>>, vector<128x128xf32>,
    %64 = vector.extract_strided_slice %4 {offsets = [3, 4, 0], sizes = [8, 16, 4], strides = [1, 1, 1]} : vector<14x22x4xf32> to vector<8x16x4xf32>
    %65 = vector.shape_cast %64 : vector<8x16x4xf32> to vector<128x4xf32>
    %c6 = arith.constant 6 : index
    %c0_55 = arith.constant 0 : index
    %c0_56 = arith.constant 0 : index
    %66 = vector.load %arg3[%c6, %c0_55, %c0_56] : memref<28x4x128xf32, #tpu.memory_space<vmem>>, vector<1x4x128xf32>
    %67 = vector.shape_cast %66 : vector<1x4x128xf32> to vector<4x128xf32>
    %cst_57 = arith.constant dense<0.000000e+00> : vector<128x128xf32>
    %68 = tpu.matmul %65, %67, %cst_57 {dimension_numbers = #tpu.dot_dimension_numbers<[1], [0], [0], [1], [0, 0, 1, 1], [], []>} : vector<128x4xf32>, vector<4x128xf32>, vector<128x128xf32> -> vector<128x128xf32>
    %c0_58 = arith.constant 0 : index
    %c0_59 = arith.constant 0 : index
    %69 = vector.load %arg16[%c0_58, %c0_59] : memref<128x128xf32, #tpu.memory_space<vmem>>, vector<128x128xf32>
    %70 = arith.addf %69, %68 : vector<128x128xf32>
    %c0_60 = arith.constant 0 : index
    %c0_61 = arith.constant 0 : index
    %71 = vector.load %arg16[%c0_60, %c0_61] : memref<128x128xf32, #tpu.memory_space<vmem>>, vector<128x128xf32>
    tpu.vector_store %arg16[%c0_60, %c0_61], %70 {strides = array<i32>} : memref<128x128xf32, #tpu.memory_space<vmem>>, vector<128x128xf32>,
    %72 = vector.extract_strided_slice %4 {offsets = [4, 2, 0], sizes = [8, 16, 4], strides = [1, 1, 1]} : vector<14x22x4xf32> to vector<8x16x4xf32>
    %73 = vector.shape_cast %72 : vector<8x16x4xf32> to vector<128x4xf32>
    %c7 = arith.constant 7 : index
    %c0_62 = arith.constant 0 : index
    %c0_63 = arith.constant 0 : index
    %74 = vector.load %arg3[%c7, %c0_62, %c0_63] : memref<28x4x128xf32, #tpu.memory_space<vmem>>, vector<1x4x128xf32>
    %75 = vector.shape_cast %74 : vector<1x4x128xf32> to vector<4x128xf32>
    %cst_64 = arith.constant dense<0.000000e+00> : vector<128x128xf32>
    %76 = tpu.matmul %73, %75, %cst_64 {dimension_numbers = #tpu.dot_dimension_numbers<[1], [0], [0], [1], [0, 0, 1, 1], [], []>} : vector<128x4xf32>, vector<4x128xf32>, vector<128x128xf32> -> vector<128x128xf32>
    %c0_65 = arith.constant 0 : index
    %c0_66 = arith.constant 0 : index
    %77 = vector.load %arg16[%c0_65, %c0_66] : memref<128x128xf32, #tpu.memory_space<vmem>>, vector<128x128xf32>
    %78 = arith.addf %77, %76 : vector<128x128xf32>
    %c0_67 = arith.constant 0 : index
    %c0_68 = arith.constant 0 : index
    %79 = vector.load %arg16[%c0_67, %c0_68] : memref<128x128xf32, #tpu.memory_space<vmem>>, vector<128x128xf32>
    tpu.vector_store %arg16[%c0_67, %c0_68], %78 {strides = array<i32>} : memref<128x128xf32, #tpu.memory_space<vmem>>, vector<128x128xf32>,
    %80 = vector.extract_strided_slice %4 {offsets = [4, 3, 0], sizes = [8, 16, 4], strides = [1, 1, 1]} : vector<14x22x4xf32> to vector<8x16x4xf32>
    %81 = vector.shape_cast %80 : vector<8x16x4xf32> to vector<128x4xf32>
    %c8 = arith.constant 8 : index
    %c0_69 = arith.constant 0 : index
    %c0_70 = arith.constant 0 : index
    %82 = vector.load %arg3[%c8, %c0_69, %c0_70] : memref<28x4x128xf32, #tpu.memory_space<vmem>>, vector<1x4x128xf32>
    %83 = vector.shape_cast %82 : vector<1x4x128xf32> to vector<4x128xf32>
    %cst_71 = arith.constant dense<0.000000e+00> : vector<128x128xf32>
    %84 = tpu.matmul %81, %83, %cst_71 {dimension_numbers = #tpu.dot_dimension_numbers<[1], [0], [0], [1], [0, 0, 1, 1], [], []>} : vector<128x4xf32>, vector<4x128xf32>, vector<128x128xf32> -> vector<128x128xf32>
    %c0_72 = arith.constant 0 : index
    %c0_73 = arith.constant 0 : index
    %85 = vector.load %arg16[%c0_72, %c0_73] : memref<128x128xf32, #tpu.memory_space<vmem>>, vector<128x128xf32>
    %86 = arith.addf %85, %84 : vector<128x128xf32>
    %c0_74 = arith.constant 0 : index
    %c0_75 = arith.constant 0 : index
    %87 = vector.load %arg16[%c0_74, %c0_75] : memref<128x128xf32, #tpu.memory_space<vmem>>, vector<128x128xf32>
    tpu.vector_store %arg16[%c0_74, %c0_75], %86 {strides = array<i32>} : memref<128x128xf32, #tpu.memory_space<vmem>>, vector<128x128xf32>,
    %88 = vector.extract_strided_slice %4 {offsets = [4, 4, 0], sizes = [8, 16, 4], strides = [1, 1, 1]} : vector<14x22x4xf32> to vector<8x16x4xf32>
    %89 = vector.shape_cast %88 : vector<8x16x4xf32> to vector<128x4xf32>
    %c9 = arith.constant 9 : index
    %c0_76 = arith.constant 0 : index
    %c0_77 = arith.constant 0 : index
    %90 = vector.load %arg3[%c9, %c0_76, %c0_77] : memref<28x4x128xf32, #tpu.memory_space<vmem>>, vector<1x4x128xf32>
    %91 = vector.shape_cast %90 : vector<1x4x128xf32> to vector<4x128xf32>
    %cst_78 = arith.constant dense<0.000000e+00> : vector<128x128xf32>
    %92 = tpu.matmul %89, %91, %cst_78 {dimension_numbers = #tpu.dot_dimension_numbers<[1], [0], [0], [1], [0, 0, 1, 1], [], []>} : vector<128x4xf32>, vector<4x128xf32>, vector<128x128xf32> -> vector<128x128xf32>
    %c0_79 = arith.constant 0 : index
    %c0_80 = arith.constant 0 : index
    %93 = vector.load %arg16[%c0_79, %c0_80] : memref<128x128xf32, #tpu.memory_space<vmem>>, vector<128x128xf32>
    %94 = arith.addf %93, %92 : vector<128x128xf32>
    %c0_81 = arith.constant 0 : index
    %c0_82 = arith.constant 0 : index
    %95 = vector.load %arg16[%c0_81, %c0_82] : memref<128x128xf32, #tpu.memory_space<vmem>>, vector<128x128xf32>
    tpu.vector_store %arg16[%c0_81, %c0_82], %94 {strides = array<i32>} : memref<128x128xf32, #tpu.memory_space<vmem>>, vector<128x128xf32>,
    %c0_83 = arith.constant 0 : index
    %c0_84 = arith.constant 0 : index
    %96 = vector.load %arg16[%c0_83, %c0_84] : memref<128x128xf32, #tpu.memory_space<vmem>>, vector<128x128xf32>
    %c0_85 = arith.constant 0 : index
    %c0_86 = arith.constant 0 : index
    %c0_87 = arith.constant 0 : index
    %97 = vector.load %arg5[%c0_85, %c0_86, %c0_87] : memref<1x128x128xf32, #tpu.memory_space<vmem>>, vector<1x128x128xf32>
    %98 = vector.shape_cast %97 : vector<1x128x128xf32> to vector<128x128xf32>
    %99 = vector.shape_cast %96 : vector<128x128xf32> to vector<1x128x128xf32>
    tpu.vector_store %arg5[%c0_85, %c0_86, %c0_87], %99 {strides = array<i32>} : memref<1x128x128xf32, #tpu.memory_space<vmem>>, vector<1x128x128xf32>,
    %cst_88 = arith.constant dense<0.000000e+00> : vector<128xf32>
    %100 = vector.multi_reduction <add>, %96, %cst_88 [0] : vector<128x128xf32> to vector<128xf32>
    %101 = vector.shape_cast %100 : vector<128xf32> to vector<1x128xf32>
    %c0_89 = arith.constant 0 : index
    %c0_90 = arith.constant 0 : index
    %c0_91 = arith.constant 0 : index
    %c0_92 = arith.constant 0 : index
    %102 = vector.load %arg9[%c0_89, %c0_90, %c0_91, %c0_92] : memref<1x1x1x128xf32, #tpu.memory_space<vmem>>, vector<1x1x1x128xf32>
    %103 = vector.shape_cast %102 : vector<1x1x1x128xf32> to vector<1x128xf32>
    %104 = vector.shape_cast %101 : vector<1x128xf32> to vector<1x1x1x128xf32>
    tpu.vector_store %arg9[%c0_89, %c0_90, %c0_91, %c0_92], %104 {strides = array<i32>} : memref<1x1x1x128xf32, #tpu.memory_space<vmem>>, vector<1x1x1x128xf32>,
    %105 = arith.mulf %96, %96 : vector<128x128xf32>
    %cst_93 = arith.constant dense<0.000000e+00> : vector<128xf32>
    %106 = vector.multi_reduction <add>, %105, %cst_93 [0] : vector<128x128xf32> to vector<128xf32>
    %107 = vector.shape_cast %106 : vector<128xf32> to vector<1x128xf32>
    %c0_94 = arith.constant 0 : index
    %c0_95 = arith.constant 0 : index
    %c0_96 = arith.constant 0 : index
    %c0_97 = arith.constant 0 : index
    %108 = vector.load %arg13[%c0_94, %c0_95, %c0_96, %c0_97] : memref<1x1x1x128xf32, #tpu.memory_space<vmem>>, vector<1x1x1x128xf32>
    %109 = vector.shape_cast %108 : vector<1x1x1x128xf32> to vector<1x128xf32>
    %110 = vector.shape_cast %107 : vector<1x128xf32> to vector<1x1x1x128xf32>
    tpu.vector_store %arg13[%c0_94, %c0_95, %c0_96, %c0_97], %110 {strides = array<i32>} : memref<1x1x1x128xf32, #tpu.memory_space<vmem>>, vector<1x1x1x128xf32>,
    %111 = vector.extract_strided_slice %4 {offsets = [1, 1, 0], sizes = [8, 16, 4], strides = [1, 1, 1]} : vector<14x22x4xf32> to vector<8x16x4xf32>
    %112 = vector.shape_cast %111 : vector<8x16x4xf32> to vector<128x4xf32>
    %c10 = arith.constant 10 : index
    %c0_98 = arith.constant 0 : index
    %c0_99 = arith.constant 0 : index
    %113 = vector.load %arg3[%c10, %c0_98, %c0_99] : memref<28x4x128xf32, #tpu.memory_space<vmem>>, vector<1x4x128xf32>
    %114 = vector.shape_cast %113 : vector<1x4x128xf32> to vector<4x128xf32>
    %cst_100 = arith.constant dense<0.000000e+00> : vector<128x128xf32>
    %115 = tpu.matmul %112, %114, %cst_100 {dimension_numbers = #tpu.dot_dimension_numbers<[1], [0], [0], [1], [0, 0, 1, 1], [], []>} : vector<128x4xf32>, vector<4x128xf32>, vector<128x128xf32> -> vector<128x128xf32>
    %c0_101 = arith.constant 0 : index
    %c0_102 = arith.constant 0 : index
    %116 = vector.load %arg16[%c0_101, %c0_102] : memref<128x128xf32, #tpu.memory_space<vmem>>, vector<128x128xf32>
    tpu.vector_store %arg16[%c0_101, %c0_102], %115 {strides = array<i32>} : memref<128x128xf32, #tpu.memory_space<vmem>>, vector<128x128xf32>,
    %117 = vector.extract_strided_slice %4 {offsets = [1, 3, 0], sizes = [8, 16, 4], strides = [1, 1, 1]} : vector<14x22x4xf32> to vector<8x16x4xf32>
    %118 = vector.shape_cast %117 : vector<8x16x4xf32> to vector<128x4xf32>
    %c11 = arith.constant 11 : index
    %c0_103 = arith.constant 0 : index
    %c0_104 = arith.constant 0 : index
    %119 = vector.load %arg3[%c11, %c0_103, %c0_104] : memref<28x4x128xf32, #tpu.memory_space<vmem>>, vector<1x4x128xf32>
    %120 = vector.shape_cast %119 : vector<1x4x128xf32> to vector<4x128xf32>
    %cst_105 = arith.constant dense<0.000000e+00> : vector<128x128xf32>
    %121 = tpu.matmul %118, %120, %cst_105 {dimension_numbers = #tpu.dot_dimension_numbers<[1], [0], [0], [1], [0, 0, 1, 1], [], []>} : vector<128x4xf32>, vector<4x128xf32>, vector<128x128xf32> -> vector<128x128xf32>
    %c0_106 = arith.constant 0 : index
    %c0_107 = arith.constant 0 : index
    %122 = vector.load %arg16[%c0_106, %c0_107] : memref<128x128xf32, #tpu.memory_space<vmem>>, vector<128x128xf32>
    %123 = arith.addf %122, %121 : vector<128x128xf32>
    %c0_108 = arith.constant 0 : index
    %c0_109 = arith.constant 0 : index
    %124 = vector.load %arg16[%c0_108, %c0_109] : memref<128x128xf32, #tpu.memory_space<vmem>>, vector<128x128xf32>
    tpu.vector_store %arg16[%c0_108, %c0_109], %123 {strides = array<i32>} : memref<128x128xf32, #tpu.memory_space<vmem>>, vector<128x128xf32>,
    %125 = vector.extract_strided_slice %4 {offsets = [1, 5, 0], sizes = [8, 16, 4], strides = [1, 1, 1]} : vector<14x22x4xf32> to vector<8x16x4xf32>
    %126 = vector.shape_cast %125 : vector<8x16x4xf32> to vector<128x4xf32>
    %c12 = arith.constant 12 : index
    %c0_110 = arith.constant 0 : index
    %c0_111 = arith.constant 0 : index
    %127 = vector.load %arg3[%c12, %c0_110, %c0_111] : memref<28x4x128xf32, #tpu.memory_space<vmem>>, vector<1x4x128xf32>
    %128 = vector.shape_cast %127 : vector<1x4x128xf32> to vector<4x128xf32>
    %cst_112 = arith.constant dense<0.000000e+00> : vector<128x128xf32>
    %129 = tpu.matmul %126, %128, %cst_112 {dimension_numbers = #tpu.dot_dimension_numbers<[1], [0], [0], [1], [0, 0, 1, 1], [], []>} : vector<128x4xf32>, vector<4x128xf32>, vector<128x128xf32> -> vector<128x128xf32>
    %c0_113 = arith.constant 0 : index
    %c0_114 = arith.constant 0 : index
    %130 = vector.load %arg16[%c0_113, %c0_114] : memref<128x128xf32, #tpu.memory_space<vmem>>, vector<128x128xf32>
    %131 = arith.addf %130, %129 : vector<128x128xf32>
    %c0_115 = arith.constant 0 : index
    %c0_116 = arith.constant 0 : index
    %132 = vector.load %arg16[%c0_115, %c0_116] : memref<128x128xf32, #tpu.memory_space<vmem>>, vector<128x128xf32>
    tpu.vector_store %arg16[%c0_115, %c0_116], %131 {strides = array<i32>} : memref<128x128xf32, #tpu.memory_space<vmem>>, vector<128x128xf32>,
    %133 = vector.extract_strided_slice %4 {offsets = [3, 1, 0], sizes = [8, 16, 4], strides = [1, 1, 1]} : vector<14x22x4xf32> to vector<8x16x4xf32>
    %134 = vector.shape_cast %133 : vector<8x16x4xf32> to vector<128x4xf32>
    %c13 = arith.constant 13 : index
    %c0_117 = arith.constant 0 : index
    %c0_118 = arith.constant 0 : index
    %135 = vector.load %arg3[%c13, %c0_117, %c0_118] : memref<28x4x128xf32, #tpu.memory_space<vmem>>, vector<1x4x128xf32>
    %136 = vector.shape_cast %135 : vector<1x4x128xf32> to vector<4x128xf32>
    %cst_119 = arith.constant dense<0.000000e+00> : vector<128x128xf32>
    %137 = tpu.matmul %134, %136, %cst_119 {dimension_numbers = #tpu.dot_dimension_numbers<[1], [0], [0], [1], [0, 0, 1, 1], [], []>} : vector<128x4xf32>, vector<4x128xf32>, vector<128x128xf32> -> vector<128x128xf32>
    %c0_120 = arith.constant 0 : index
    %c0_121 = arith.constant 0 : index
    %138 = vector.load %arg16[%c0_120, %c0_121] : memref<128x128xf32, #tpu.memory_space<vmem>>, vector<128x128xf32>
    %139 = arith.addf %138, %137 : vector<128x128xf32>
    %c0_122 = arith.constant 0 : index
    %c0_123 = arith.constant 0 : index
    %140 = vector.load %arg16[%c0_122, %c0_123] : memref<128x128xf32, #tpu.memory_space<vmem>>, vector<128x128xf32>
    tpu.vector_store %arg16[%c0_122, %c0_123], %139 {strides = array<i32>} : memref<128x128xf32, #tpu.memory_space<vmem>>, vector<128x128xf32>,
    %141 = vector.extract_strided_slice %4 {offsets = [3, 3, 0], sizes = [8, 16, 4], strides = [1, 1, 1]} : vector<14x22x4xf32> to vector<8x16x4xf32>
    %142 = vector.shape_cast %141 : vector<8x16x4xf32> to vector<128x4xf32>
    %c14 = arith.constant 14 : index
    %c0_124 = arith.constant 0 : index
    %c0_125 = arith.constant 0 : index
    %143 = vector.load %arg3[%c14, %c0_124, %c0_125] : memref<28x4x128xf32, #tpu.memory_space<vmem>>, vector<1x4x128xf32>
    %144 = vector.shape_cast %143 : vector<1x4x128xf32> to vector<4x128xf32>
    %cst_126 = arith.constant dense<0.000000e+00> : vector<128x128xf32>
    %145 = tpu.matmul %142, %144, %cst_126 {dimension_numbers = #tpu.dot_dimension_numbers<[1], [0], [0], [1], [0, 0, 1, 1], [], []>} : vector<128x4xf32>, vector<4x128xf32>, vector<128x128xf32> -> vector<128x128xf32>
    %c0_127 = arith.constant 0 : index
    %c0_128 = arith.constant 0 : index
    %146 = vector.load %arg16[%c0_127, %c0_128] : memref<128x128xf32, #tpu.memory_space<vmem>>, vector<128x128xf32>
    %147 = arith.addf %146, %145 : vector<128x128xf32>
    %c0_129 = arith.constant 0 : index
    %c0_130 = arith.constant 0 : index
    %148 = vector.load %arg16[%c0_129, %c0_130] : memref<128x128xf32, #tpu.memory_space<vmem>>, vector<128x128xf32>
    tpu.vector_store %arg16[%c0_129, %c0_130], %147 {strides = array<i32>} : memref<128x128xf32, #tpu.memory_space<vmem>>, vector<128x128xf32>,
    %149 = vector.extract_strided_slice %4 {offsets = [3, 5, 0], sizes = [8, 16, 4], strides = [1, 1, 1]} : vector<14x22x4xf32> to vector<8x16x4xf32>
    %150 = vector.shape_cast %149 : vector<8x16x4xf32> to vector<128x4xf32>
    %c15 = arith.constant 15 : index
    %c0_131 = arith.constant 0 : index
    %c0_132 = arith.constant 0 : index
    %151 = vector.load %arg3[%c15, %c0_131, %c0_132] : memref<28x4x128xf32, #tpu.memory_space<vmem>>, vector<1x4x128xf32>
    %152 = vector.shape_cast %151 : vector<1x4x128xf32> to vector<4x128xf32>
    %cst_133 = arith.constant dense<0.000000e+00> : vector<128x128xf32>
    %153 = tpu.matmul %150, %152, %cst_133 {dimension_numbers = #tpu.dot_dimension_numbers<[1], [0], [0], [1], [0, 0, 1, 1], [], []>} : vector<128x4xf32>, vector<4x128xf32>, vector<128x128xf32> -> vector<128x128xf32>
    %c0_134 = arith.constant 0 : index
    %c0_135 = arith.constant 0 : index
    %154 = vector.load %arg16[%c0_134, %c0_135] : memref<128x128xf32, #tpu.memory_space<vmem>>, vector<128x128xf32>
    %155 = arith.addf %154, %153 : vector<128x128xf32>
    %c0_136 = arith.constant 0 : index
    %c0_137 = arith.constant 0 : index
    %156 = vector.load %arg16[%c0_136, %c0_137] : memref<128x128xf32, #tpu.memory_space<vmem>>, vector<128x128xf32>
    tpu.vector_store %arg16[%c0_136, %c0_137], %155 {strides = array<i32>} : memref<128x128xf32, #tpu.memory_space<vmem>>, vector<128x128xf32>,
    %157 = vector.extract_strided_slice %4 {offsets = [5, 1, 0], sizes = [8, 16, 4], strides = [1, 1, 1]} : vector<14x22x4xf32> to vector<8x16x4xf32>
    %158 = vector.shape_cast %157 : vector<8x16x4xf32> to vector<128x4xf32>
    %c16 = arith.constant 16 : index
    %c0_138 = arith.constant 0 : index
    %c0_139 = arith.constant 0 : index
    %159 = vector.load %arg3[%c16, %c0_138, %c0_139] : memref<28x4x128xf32, #tpu.memory_space<vmem>>, vector<1x4x128xf32>
    %160 = vector.shape_cast %159 : vector<1x4x128xf32> to vector<4x128xf32>
    %cst_140 = arith.constant dense<0.000000e+00> : vector<128x128xf32>
    %161 = tpu.matmul %158, %160, %cst_140 {dimension_numbers = #tpu.dot_dimension_numbers<[1], [0], [0], [1], [0, 0, 1, 1], [], []>} : vector<128x4xf32>, vector<4x128xf32>, vector<128x128xf32> -> vector<128x128xf32>
    %c0_141 = arith.constant 0 : index
    %c0_142 = arith.constant 0 : index
    %162 = vector.load %arg16[%c0_141, %c0_142] : memref<128x128xf32, #tpu.memory_space<vmem>>, vector<128x128xf32>
    %163 = arith.addf %162, %161 : vector<128x128xf32>
    %c0_143 = arith.constant 0 : index
    %c0_144 = arith.constant 0 : index
    %164 = vector.load %arg16[%c0_143, %c0_144] : memref<128x128xf32, #tpu.memory_space<vmem>>, vector<128x128xf32>
    tpu.vector_store %arg16[%c0_143, %c0_144], %163 {strides = array<i32>} : memref<128x128xf32, #tpu.memory_space<vmem>>, vector<128x128xf32>,
    %165 = vector.extract_strided_slice %4 {offsets = [5, 3, 0], sizes = [8, 16, 4], strides = [1, 1, 1]} : vector<14x22x4xf32> to vector<8x16x4xf32>
    %166 = vector.shape_cast %165 : vector<8x16x4xf32> to vector<128x4xf32>
    %c17 = arith.constant 17 : index
    %c0_145 = arith.constant 0 : index
    %c0_146 = arith.constant 0 : index
    %167 = vector.load %arg3[%c17, %c0_145, %c0_146] : memref<28x4x128xf32, #tpu.memory_space<vmem>>, vector<1x4x128xf32>
    %168 = vector.shape_cast %167 : vector<1x4x128xf32> to vector<4x128xf32>
    %cst_147 = arith.constant dense<0.000000e+00> : vector<128x128xf32>
    %169 = tpu.matmul %166, %168, %cst_147 {dimension_numbers = #tpu.dot_dimension_numbers<[1], [0], [0], [1], [0, 0, 1, 1], [], []>} : vector<128x4xf32>, vector<4x128xf32>, vector<128x128xf32> -> vector<128x128xf32>
    %c0_148 = arith.constant 0 : index
    %c0_149 = arith.constant 0 : index
    %170 = vector.load %arg16[%c0_148, %c0_149] : memref<128x128xf32, #tpu.memory_space<vmem>>, vector<128x128xf32>
    %171 = arith.addf %170, %169 : vector<128x128xf32>
    %c0_150 = arith.constant 0 : index
    %c0_151 = arith.constant 0 : index
    %172 = vector.load %arg16[%c0_150, %c0_151] : memref<128x128xf32, #tpu.memory_space<vmem>>, vector<128x128xf32>
    tpu.vector_store %arg16[%c0_150, %c0_151], %171 {strides = array<i32>} : memref<128x128xf32, #tpu.memory_space<vmem>>, vector<128x128xf32>,
    %173 = vector.extract_strided_slice %4 {offsets = [5, 5, 0], sizes = [8, 16, 4], strides = [1, 1, 1]} : vector<14x22x4xf32> to vector<8x16x4xf32>
    %174 = vector.shape_cast %173 : vector<8x16x4xf32> to vector<128x4xf32>
    %c18 = arith.constant 18 : index
    %c0_152 = arith.constant 0 : index
    %c0_153 = arith.constant 0 : index
    %175 = vector.load %arg3[%c18, %c0_152, %c0_153] : memref<28x4x128xf32, #tpu.memory_space<vmem>>, vector<1x4x128xf32>
    %176 = vector.shape_cast %175 : vector<1x4x128xf32> to vector<4x128xf32>
    %cst_154 = arith.constant dense<0.000000e+00> : vector<128x128xf32>
    %177 = tpu.matmul %174, %176, %cst_154 {dimension_numbers = #tpu.dot_dimension_numbers<[1], [0], [0], [1], [0, 0, 1, 1], [], []>} : vector<128x4xf32>, vector<4x128xf32>, vector<128x128xf32> -> vector<128x128xf32>
    %c0_155 = arith.constant 0 : index
    %c0_156 = arith.constant 0 : index
    %178 = vector.load %arg16[%c0_155, %c0_156] : memref<128x128xf32, #tpu.memory_space<vmem>>, vector<128x128xf32>
    %179 = arith.addf %178, %177 : vector<128x128xf32>
    %c0_157 = arith.constant 0 : index
    %c0_158 = arith.constant 0 : index
    %180 = vector.load %arg16[%c0_157, %c0_158] : memref<128x128xf32, #tpu.memory_space<vmem>>, vector<128x128xf32>
    tpu.vector_store %arg16[%c0_157, %c0_158], %179 {strides = array<i32>} : memref<128x128xf32, #tpu.memory_space<vmem>>, vector<128x128xf32>,
    %c0_159 = arith.constant 0 : index
    %c0_160 = arith.constant 0 : index
    %181 = vector.load %arg16[%c0_159, %c0_160] : memref<128x128xf32, #tpu.memory_space<vmem>>, vector<128x128xf32>
    %c0_161 = arith.constant 0 : index
    %c0_162 = arith.constant 0 : index
    %c0_163 = arith.constant 0 : index
    %182 = vector.load %arg6[%c0_161, %c0_162, %c0_163] : memref<1x128x128xf32, #tpu.memory_space<vmem>>, vector<1x128x128xf32>
    %183 = vector.shape_cast %182 : vector<1x128x128xf32> to vector<128x128xf32>
    %184 = vector.shape_cast %181 : vector<128x128xf32> to vector<1x128x128xf32>
    tpu.vector_store %arg6[%c0_161, %c0_162, %c0_163], %184 {strides = array<i32>} : memref<1x128x128xf32, #tpu.memory_space<vmem>>, vector<1x128x128xf32>,
    %cst_164 = arith.constant dense<0.000000e+00> : vector<128xf32>
    %185 = vector.multi_reduction <add>, %181, %cst_164 [0] : vector<128x128xf32> to vector<128xf32>
    %186 = vector.shape_cast %185 : vector<128xf32> to vector<1x128xf32>
    %c0_165 = arith.constant 0 : index
    %c0_166 = arith.constant 0 : index
    %c0_167 = arith.constant 0 : index
    %c0_168 = arith.constant 0 : index
    %187 = vector.load %arg10[%c0_165, %c0_166, %c0_167, %c0_168] : memref<1x1x1x128xf32, #tpu.memory_space<vmem>>, vector<1x1x1x128xf32>
    %188 = vector.shape_cast %187 : vector<1x1x1x128xf32> to vector<1x128xf32>
    %189 = vector.shape_cast %186 : vector<1x128xf32> to vector<1x1x1x128xf32>
    tpu.vector_store %arg10[%c0_165, %c0_166, %c0_167, %c0_168], %189 {strides = array<i32>} : memref<1x1x1x128xf32, #tpu.memory_space<vmem>>, vector<1x1x1x128xf32>,
    %190 = arith.mulf %181, %181 : vector<128x128xf32>
    %cst_169 = arith.constant dense<0.000000e+00> : vector<128xf32>
    %191 = vector.multi_reduction <add>, %190, %cst_169 [0] : vector<128x128xf32> to vector<128xf32>
    %192 = vector.shape_cast %191 : vector<128xf32> to vector<1x128xf32>
    %c0_170 = arith.constant 0 : index
    %c0_171 = arith.constant 0 : index
    %c0_172 = arith.constant 0 : index
    %c0_173 = arith.constant 0 : index
    %193 = vector.load %arg14[%c0_170, %c0_171, %c0_172, %c0_173] : memref<1x1x1x128xf32, #tpu.memory_space<vmem>>, vector<1x1x1x128xf32>
    %194 = vector.shape_cast %193 : vector<1x1x1x128xf32> to vector<1x128xf32>
    %195 = vector.shape_cast %192 : vector<1x128xf32> to vector<1x1x1x128xf32>
    tpu.vector_store %arg14[%c0_170, %c0_171, %c0_172, %c0_173], %195 {strides = array<i32>} : memref<1x1x1x128xf32, #tpu.memory_space<vmem>>, vector<1x1x1x128xf32>,
    %196 = vector.extract_strided_slice %4 {offsets = [0, 0, 0], sizes = [8, 16, 4], strides = [1, 1, 1]} : vector<14x22x4xf32> to vector<8x16x4xf32>
    %197 = vector.shape_cast %196 : vector<8x16x4xf32> to vector<128x4xf32>
    %c19 = arith.constant 19 : index
    %c0_174 = arith.constant 0 : index
    %c0_175 = arith.constant 0 : index
    %198 = vector.load %arg3[%c19, %c0_174, %c0_175] : memref<28x4x128xf32, #tpu.memory_space<vmem>>, vector<1x4x128xf32>
    %199 = vector.shape_cast %198 : vector<1x4x128xf32> to vector<4x128xf32>
    %cst_176 = arith.constant dense<0.000000e+00> : vector<128x128xf32>
    %200 = tpu.matmul %197, %199, %cst_176 {dimension_numbers = #tpu.dot_dimension_numbers<[1], [0], [0], [1], [0, 0, 1, 1], [], []>} : vector<128x4xf32>, vector<4x128xf32>, vector<128x128xf32> -> vector<128x128xf32>
    %c0_177 = arith.constant 0 : index
    %c0_178 = arith.constant 0 : index
    %201 = vector.load %arg16[%c0_177, %c0_178] : memref<128x128xf32, #tpu.memory_space<vmem>>, vector<128x128xf32>
    tpu.vector_store %arg16[%c0_177, %c0_178], %200 {strides = array<i32>} : memref<128x128xf32, #tpu.memory_space<vmem>>, vector<128x128xf32>,
    %202 = vector.extract_strided_slice %4 {offsets = [0, 3, 0], sizes = [8, 16, 4], strides = [1, 1, 1]} : vector<14x22x4xf32> to vector<8x16x4xf32>
    %203 = vector.shape_cast %202 : vector<8x16x4xf32> to vector<128x4xf32>
    %c20 = arith.constant 20 : index
    %c0_179 = arith.constant 0 : index
    %c0_180 = arith.constant 0 : index
    %204 = vector.load %arg3[%c20, %c0_179, %c0_180] : memref<28x4x128xf32, #tpu.memory_space<vmem>>, vector<1x4x128xf32>
    %205 = vector.shape_cast %204 : vector<1x4x128xf32> to vector<4x128xf32>
    %cst_181 = arith.constant dense<0.000000e+00> : vector<128x128xf32>
    %206 = tpu.matmul %203, %205, %cst_181 {dimension_numbers = #tpu.dot_dimension_numbers<[1], [0], [0], [1], [0, 0, 1, 1], [], []>} : vector<128x4xf32>, vector<4x128xf32>, vector<128x128xf32> -> vector<128x128xf32>
    %c0_182 = arith.constant 0 : index
    %c0_183 = arith.constant 0 : index
    %207 = vector.load %arg16[%c0_182, %c0_183] : memref<128x128xf32, #tpu.memory_space<vmem>>, vector<128x128xf32>
    %208 = arith.addf %207, %206 : vector<128x128xf32>
    %c0_184 = arith.constant 0 : index
    %c0_185 = arith.constant 0 : index
    %209 = vector.load %arg16[%c0_184, %c0_185] : memref<128x128xf32, #tpu.memory_space<vmem>>, vector<128x128xf32>
    tpu.vector_store %arg16[%c0_184, %c0_185], %208 {strides = array<i32>} : memref<128x128xf32, #tpu.memory_space<vmem>>, vector<128x128xf32>,
    %210 = vector.extract_strided_slice %4 {offsets = [0, 6, 0], sizes = [8, 16, 4], strides = [1, 1, 1]} : vector<14x22x4xf32> to vector<8x16x4xf32>
    %211 = vector.shape_cast %210 : vector<8x16x4xf32> to vector<128x4xf32>
    %c21 = arith.constant 21 : index
    %c0_186 = arith.constant 0 : index
    %c0_187 = arith.constant 0 : index
    %212 = vector.load %arg3[%c21, %c0_186, %c0_187] : memref<28x4x128xf32, #tpu.memory_space<vmem>>, vector<1x4x128xf32>
    %213 = vector.shape_cast %212 : vector<1x4x128xf32> to vector<4x128xf32>
    %cst_188 = arith.constant dense<0.000000e+00> : vector<128x128xf32>
    %214 = tpu.matmul %211, %213, %cst_188 {dimension_numbers = #tpu.dot_dimension_numbers<[1], [0], [0], [1], [0, 0, 1, 1], [], []>} : vector<128x4xf32>, vector<4x128xf32>, vector<128x128xf32> -> vector<128x128xf32>
    %c0_189 = arith.constant 0 : index
    %c0_190 = arith.constant 0 : index
    %215 = vector.load %arg16[%c0_189, %c0_190] : memref<128x128xf32, #tpu.memory_space<vmem>>, vector<128x128xf32>
    %216 = arith.addf %215, %214 : vector<128x128xf32>
    %c0_191 = arith.constant 0 : index
    %c0_192 = arith.constant 0 : index
    %217 = vector.load %arg16[%c0_191, %c0_192] : memref<128x128xf32, #tpu.memory_space<vmem>>, vector<128x128xf32>
    tpu.vector_store %arg16[%c0_191, %c0_192], %216 {strides = array<i32>} : memref<128x128xf32, #tpu.memory_space<vmem>>, vector<128x128xf32>,
    %218 = vector.extract_strided_slice %4 {offsets = [3, 0, 0], sizes = [8, 16, 4], strides = [1, 1, 1]} : vector<14x22x4xf32> to vector<8x16x4xf32>
    %219 = vector.shape_cast %218 : vector<8x16x4xf32> to vector<128x4xf32>
    %c22 = arith.constant 22 : index
    %c0_193 = arith.constant 0 : index
    %c0_194 = arith.constant 0 : index
    %220 = vector.load %arg3[%c22, %c0_193, %c0_194] : memref<28x4x128xf32, #tpu.memory_space<vmem>>, vector<1x4x128xf32>
    %221 = vector.shape_cast %220 : vector<1x4x128xf32> to vector<4x128xf32>
    %cst_195 = arith.constant dense<0.000000e+00> : vector<128x128xf32>
    %222 = tpu.matmul %219, %221, %cst_195 {dimension_numbers = #tpu.dot_dimension_numbers<[1], [0], [0], [1], [0, 0, 1, 1], [], []>} : vector<128x4xf32>, vector<4x128xf32>, vector<128x128xf32> -> vector<128x128xf32>
    %c0_196 = arith.constant 0 : index
    %c0_197 = arith.constant 0 : index
    %223 = vector.load %arg16[%c0_196, %c0_197] : memref<128x128xf32, #tpu.memory_space<vmem>>, vector<128x128xf32>
    %224 = arith.addf %223, %222 : vector<128x128xf32>
    %c0_198 = arith.constant 0 : index
    %c0_199 = arith.constant 0 : index
    %225 = vector.load %arg16[%c0_198, %c0_199] : memref<128x128xf32, #tpu.memory_space<vmem>>, vector<128x128xf32>
    tpu.vector_store %arg16[%c0_198, %c0_199], %224 {strides = array<i32>} : memref<128x128xf32, #tpu.memory_space<vmem>>, vector<128x128xf32>,
    %226 = vector.extract_strided_slice %4 {offsets = [3, 3, 0], sizes = [8, 16, 4], strides = [1, 1, 1]} : vector<14x22x4xf32> to vector<8x16x4xf32>
    %227 = vector.shape_cast %226 : vector<8x16x4xf32> to vector<128x4xf32>
    %c23 = arith.constant 23 : index
    %c0_200 = arith.constant 0 : index
    %c0_201 = arith.constant 0 : index
    %228 = vector.load %arg3[%c23, %c0_200, %c0_201] : memref<28x4x128xf32, #tpu.memory_space<vmem>>, vector<1x4x128xf32>
    %229 = vector.shape_cast %228 : vector<1x4x128xf32> to vector<4x128xf32>
    %cst_202 = arith.constant dense<0.000000e+00> : vector<128x128xf32>
    %230 = tpu.matmul %227, %229, %cst_202 {dimension_numbers = #tpu.dot_dimension_numbers<[1], [0], [0], [1], [0, 0, 1, 1], [], []>} : vector<128x4xf32>, vector<4x128xf32>, vector<128x128xf32> -> vector<128x128xf32>
    %c0_203 = arith.constant 0 : index
    %c0_204 = arith.constant 0 : index
    %231 = vector.load %arg16[%c0_203, %c0_204] : memref<128x128xf32, #tpu.memory_space<vmem>>, vector<128x128xf32>
    %232 = arith.addf %231, %230 : vector<128x128xf32>
    %c0_205 = arith.constant 0 : index
    %c0_206 = arith.constant 0 : index
    %233 = vector.load %arg16[%c0_205, %c0_206] : memref<128x128xf32, #tpu.memory_space<vmem>>, vector<128x128xf32>
    tpu.vector_store %arg16[%c0_205, %c0_206], %232 {strides = array<i32>} : memref<128x128xf32, #tpu.memory_space<vmem>>, vector<128x128xf32>,
    %234 = vector.extract_strided_slice %4 {offsets = [3, 6, 0], sizes = [8, 16, 4], strides = [1, 1, 1]} : vector<14x22x4xf32> to vector<8x16x4xf32>
    %235 = vector.shape_cast %234 : vector<8x16x4xf32> to vector<128x4xf32>
    %c24 = arith.constant 24 : index
    %c0_207 = arith.constant 0 : index
    %c0_208 = arith.constant 0 : index
    %236 = vector.load %arg3[%c24, %c0_207, %c0_208] : memref<28x4x128xf32, #tpu.memory_space<vmem>>, vector<1x4x128xf32>
    %237 = vector.shape_cast %236 : vector<1x4x128xf32> to vector<4x128xf32>
    %cst_209 = arith.constant dense<0.000000e+00> : vector<128x128xf32>
    %238 = tpu.matmul %235, %237, %cst_209 {dimension_numbers = #tpu.dot_dimension_numbers<[1], [0], [0], [1], [0, 0, 1, 1], [], []>} : vector<128x4xf32>, vector<4x128xf32>, vector<128x128xf32> -> vector<128x128xf32>
    %c0_210 = arith.constant 0 : index
    %c0_211 = arith.constant 0 : index
    %239 = vector.load %arg16[%c0_210, %c0_211] : memref<128x128xf32, #tpu.memory_space<vmem>>, vector<128x128xf32>
    %240 = arith.addf %239, %238 : vector<128x128xf32>
    %c0_212 = arith.constant 0 : index
    %c0_213 = arith.constant 0 : index
    %241 = vector.load %arg16[%c0_212, %c0_213] : memref<128x128xf32, #tpu.memory_space<vmem>>, vector<128x128xf32>
    tpu.vector_store %arg16[%c0_212, %c0_213], %240 {strides = array<i32>} : memref<128x128xf32, #tpu.memory_space<vmem>>, vector<128x128xf32>,
    %242 = vector.extract_strided_slice %4 {offsets = [6, 0, 0], sizes = [8, 16, 4], strides = [1, 1, 1]} : vector<14x22x4xf32> to vector<8x16x4xf32>
    %243 = vector.shape_cast %242 : vector<8x16x4xf32> to vector<128x4xf32>
    %c25 = arith.constant 25 : index
    %c0_214 = arith.constant 0 : index
    %c0_215 = arith.constant 0 : index
    %244 = vector.load %arg3[%c25, %c0_214, %c0_215] : memref<28x4x128xf32, #tpu.memory_space<vmem>>, vector<1x4x128xf32>
    %245 = vector.shape_cast %244 : vector<1x4x128xf32> to vector<4x128xf32>
    %cst_216 = arith.constant dense<0.000000e+00> : vector<128x128xf32>
    %246 = tpu.matmul %243, %245, %cst_216 {dimension_numbers = #tpu.dot_dimension_numbers<[1], [0], [0], [1], [0, 0, 1, 1], [], []>} : vector<128x4xf32>, vector<4x128xf32>, vector<128x128xf32> -> vector<128x128xf32>
    %c0_217 = arith.constant 0 : index
    %c0_218 = arith.constant 0 : index
    %247 = vector.load %arg16[%c0_217, %c0_218] : memref<128x128xf32, #tpu.memory_space<vmem>>, vector<128x128xf32>
    %248 = arith.addf %247, %246 : vector<128x128xf32>
    %c0_219 = arith.constant 0 : index
    %c0_220 = arith.constant 0 : index
    %249 = vector.load %arg16[%c0_219, %c0_220] : memref<128x128xf32, #tpu.memory_space<vmem>>, vector<128x128xf32>
    tpu.vector_store %arg16[%c0_219, %c0_220], %248 {strides = array<i32>} : memref<128x128xf32, #tpu.memory_space<vmem>>, vector<128x128xf32>,
    %250 = vector.extract_strided_slice %4 {offsets = [6, 3, 0], sizes = [8, 16, 4], strides = [1, 1, 1]} : vector<14x22x4xf32> to vector<8x16x4xf32>
    %251 = vector.shape_cast %250 : vector<8x16x4xf32> to vector<128x4xf32>
    %c26 = arith.constant 26 : index
    %c0_221 = arith.constant 0 : index
    %c0_222 = arith.constant 0 : index
    %252 = vector.load %arg3[%c26, %c0_221, %c0_222] : memref<28x4x128xf32, #tpu.memory_space<vmem>>, vector<1x4x128xf32>
    %253 = vector.shape_cast %252 : vector<1x4x128xf32> to vector<4x128xf32>
    %cst_223 = arith.constant dense<0.000000e+00> : vector<128x128xf32>
    %254 = tpu.matmul %251, %253, %cst_223 {dimension_numbers = #tpu.dot_dimension_numbers<[1], [0], [0], [1], [0, 0, 1, 1], [], []>} : vector<128x4xf32>, vector<4x128xf32>, vector<128x128xf32> -> vector<128x128xf32>
    %c0_224 = arith.constant 0 : index
    %c0_225 = arith.constant 0 : index
    %255 = vector.load %arg16[%c0_224, %c0_225] : memref<128x128xf32, #tpu.memory_space<vmem>>, vector<128x128xf32>
    %256 = arith.addf %255, %254 : vector<128x128xf32>
    %c0_226 = arith.constant 0 : index
    %c0_227 = arith.constant 0 : index
    %257 = vector.load %arg16[%c0_226, %c0_227] : memref<128x128xf32, #tpu.memory_space<vmem>>, vector<128x128xf32>
    tpu.vector_store %arg16[%c0_226, %c0_227], %256 {strides = array<i32>} : memref<128x128xf32, #tpu.memory_space<vmem>>, vector<128x128xf32>,
    %258 = vector.extract_strided_slice %4 {offsets = [6, 6, 0], sizes = [8, 16, 4], strides = [1, 1, 1]} : vector<14x22x4xf32> to vector<8x16x4xf32>
    %259 = vector.shape_cast %258 : vector<8x16x4xf32> to vector<128x4xf32>
    %c27 = arith.constant 27 : index
    %c0_228 = arith.constant 0 : index
    %c0_229 = arith.constant 0 : index
    %260 = vector.load %arg3[%c27, %c0_228, %c0_229] : memref<28x4x128xf32, #tpu.memory_space<vmem>>, vector<1x4x128xf32>
    %261 = vector.shape_cast %260 : vector<1x4x128xf32> to vector<4x128xf32>
    %cst_230 = arith.constant dense<0.000000e+00> : vector<128x128xf32>
    %262 = tpu.matmul %259, %261, %cst_230 {dimension_numbers = #tpu.dot_dimension_numbers<[1], [0], [0], [1], [0, 0, 1, 1], [], []>} : vector<128x4xf32>, vector<4x128xf32>, vector<128x128xf32> -> vector<128x128xf32>
    %c0_231 = arith.constant 0 : index
    %c0_232 = arith.constant 0 : index
    %263 = vector.load %arg16[%c0_231, %c0_232] : memref<128x128xf32, #tpu.memory_space<vmem>>, vector<128x128xf32>
    %264 = arith.addf %263, %262 : vector<128x128xf32>
    %c0_233 = arith.constant 0 : index
    %c0_234 = arith.constant 0 : index
    %265 = vector.load %arg16[%c0_233, %c0_234] : memref<128x128xf32, #tpu.memory_space<vmem>>, vector<128x128xf32>
    tpu.vector_store %arg16[%c0_233, %c0_234], %264 {strides = array<i32>} : memref<128x128xf32, #tpu.memory_space<vmem>>, vector<128x128xf32>,
    %c0_235 = arith.constant 0 : index
    %c0_236 = arith.constant 0 : index
    %266 = vector.load %arg16[%c0_235, %c0_236] : memref<128x128xf32, #tpu.memory_space<vmem>>, vector<128x128xf32>
    %c0_237 = arith.constant 0 : index
    %c0_238 = arith.constant 0 : index
    %c0_239 = arith.constant 0 : index
    %267 = vector.load %arg7[%c0_237, %c0_238, %c0_239] : memref<1x128x128xf32, #tpu.memory_space<vmem>>, vector<1x128x128xf32>
    %268 = vector.shape_cast %267 : vector<1x128x128xf32> to vector<128x128xf32>
    %269 = vector.shape_cast %266 : vector<128x128xf32> to vector<1x128x128xf32>
    tpu.vector_store %arg7[%c0_237, %c0_238, %c0_239], %269 {strides = array<i32>} : memref<1x128x128xf32, #tpu.memory_space<vmem>>, vector<1x128x128xf32>,
    %cst_240 = arith.constant dense<0.000000e+00> : vector<128xf32>
    %270 = vector.multi_reduction <add>, %266, %cst_240 [0] : vector<128x128xf32> to vector<128xf32>
    %271 = vector.shape_cast %270 : vector<128xf32> to vector<1x128xf32>
    %c0_241 = arith.constant 0 : index
    %c0_242 = arith.constant 0 : index
    %c0_243 = arith.constant 0 : index
    %c0_244 = arith.constant 0 : index
    %272 = vector.load %arg11[%c0_241, %c0_242, %c0_243, %c0_244] : memref<1x1x1x128xf32, #tpu.memory_space<vmem>>, vector<1x1x1x128xf32>
    %273 = vector.shape_cast %272 : vector<1x1x1x128xf32> to vector<1x128xf32>
    %274 = vector.shape_cast %271 : vector<1x128xf32> to vector<1x1x1x128xf32>
    tpu.vector_store %arg11[%c0_241, %c0_242, %c0_243, %c0_244], %274 {strides = array<i32>} : memref<1x1x1x128xf32, #tpu.memory_space<vmem>>, vector<1x1x1x128xf32>,
    %275 = arith.mulf %266, %266 : vector<128x128xf32>
    %cst_245 = arith.constant dense<0.000000e+00> : vector<128xf32>
    %276 = vector.multi_reduction <add>, %275, %cst_245 [0] : vector<128x128xf32> to vector<128xf32>
    %277 = vector.shape_cast %276 : vector<128xf32> to vector<1x128xf32>
    %c0_246 = arith.constant 0 : index
    %c0_247 = arith.constant 0 : index
    %c0_248 = arith.constant 0 : index
    %c0_249 = arith.constant 0 : index
    %278 = vector.load %arg15[%c0_246, %c0_247, %c0_248, %c0_249] : memref<1x1x1x128xf32, #tpu.memory_space<vmem>>, vector<1x1x1x128xf32>
    %279 = vector.shape_cast %278 : vector<1x1x1x128xf32> to vector<1x128xf32>
    %280 = vector.shape_cast %277 : vector<1x128xf32> to vector<1x1x1x128xf32>
    tpu.vector_store %arg15[%c0_246, %c0_247, %c0_248, %c0_249], %280 {strides = array<i32>} : memref<1x1x1x128xf32, #tpu.memory_space<vmem>>, vector<1x1x1x128xf32>,
    return
  }
  func.func @transform_0(%arg0: i32, %arg1: i32) -> (i32, i32, i32, i32) {
    %c0_i32 = arith.constant 0 : i32
    %c0_i32_0 = arith.constant 0 : i32
    %c0_i32_1 = arith.constant 0 : i32
    %c0_i32_2 = arith.constant 0 : i32
    return %arg0, %c0_i32, %c0_i32_0, %c0_i32_1 : i32, i32, i32, i32
  }
  func.func @transform_1(%arg0: i32, %arg1: i32) -> (i32, i32, i32) {
    %c0_i32 = arith.constant 0 : i32
    %c0_i32_0 = arith.constant 0 : i32
    %c0_i32_1 = arith.constant 0 : i32
    %c0_i32_2 = arith.constant 0 : i32
    return %c0_i32, %c0_i32_0, %c0_i32_1 : i32, i32, i32
  }
  func.func @transform_2(%arg0: i32, %arg1: i32) -> (i32, i32, i32) {
    %c0_i32 = arith.constant 0 : i32
    %c0_i32_0 = arith.constant 0 : i32
    return %arg0, %arg1, %c0_i32 : i32, i32, i32
  }
  func.func @transform_3(%arg0: i32, %arg1: i32) -> (i32, i32, i32) {
    %c0_i32 = arith.constant 0 : i32
    %c0_i32_0 = arith.constant 0 : i32
    return %arg0, %arg1, %c0_i32 : i32, i32, i32
  }
  func.func @transform_4(%arg0: i32, %arg1: i32) -> (i32, i32, i32) {
    %c0_i32 = arith.constant 0 : i32
    %c0_i32_0 = arith.constant 0 : i32
    return %arg0, %arg1, %c0_i32 : i32, i32, i32
  }
  func.func @transform_5(%arg0: i32, %arg1: i32) -> (i32, i32, i32) {
    %c0_i32 = arith.constant 0 : i32
    %c0_i32_0 = arith.constant 0 : i32
    return %arg0, %arg1, %c0_i32 : i32, i32, i32
  }
  func.func @transform_6(%arg0: i32, %arg1: i32) -> (i32, i32, i32, i32) {
    %c0_i32 = arith.constant 0 : i32
    %c0_i32_0 = arith.constant 0 : i32
    %c0_i32_1 = arith.constant 0 : i32
    return %arg0, %arg1, %c0_i32, %c0_i32_0 : i32, i32, i32, i32
  }
  func.func @transform_7(%arg0: i32, %arg1: i32) -> (i32, i32, i32, i32) {
    %c0_i32 = arith.constant 0 : i32
    %c0_i32_0 = arith.constant 0 : i32
    %c0_i32_1 = arith.constant 0 : i32
    return %arg0, %arg1, %c0_i32, %c0_i32_0 : i32, i32, i32, i32
  }
  func.func @transform_8(%arg0: i32, %arg1: i32) -> (i32, i32, i32, i32) {
    %c0_i32 = arith.constant 0 : i32
    %c0_i32_0 = arith.constant 0 : i32
    %c0_i32_1 = arith.constant 0 : i32
    return %arg0, %arg1, %c0_i32, %c0_i32_0 : i32, i32, i32, i32
  }
  func.func @transform_9(%arg0: i32, %arg1: i32) -> (i32, i32, i32, i32) {
    %c0_i32 = arith.constant 0 : i32
    %c0_i32_0 = arith.constant 0 : i32
    %c0_i32_1 = arith.constant 0 : i32
    return %arg0, %arg1, %c0_i32, %c0_i32_0 : i32, i32, i32, i32
  }
  func.func @transform_10(%arg0: i32, %arg1: i32) -> (i32, i32, i32, i32) {
    %c0_i32 = arith.constant 0 : i32
    %c0_i32_0 = arith.constant 0 : i32
    %c0_i32_1 = arith.constant 0 : i32
    return %arg0, %arg1, %c0_i32, %c0_i32_0 : i32, i32, i32, i32
  }
  func.func @transform_11(%arg0: i32, %arg1: i32) -> (i32, i32, i32, i32) {
    %c0_i32 = arith.constant 0 : i32
    %c0_i32_0 = arith.constant 0 : i32
    %c0_i32_1 = arith.constant 0 : i32
    return %arg0, %arg1, %c0_i32, %c0_i32_0 : i32, i32, i32, i32
  }
  func.func @transform_12(%arg0: i32, %arg1: i32) -> (i32, i32, i32, i32) {
    %c0_i32 = arith.constant 0 : i32
    %c0_i32_0 = arith.constant 0 : i32
    %c0_i32_1 = arith.constant 0 : i32
    return %arg0, %arg1, %c0_i32, %c0_i32_0 : i32, i32, i32, i32
  }
  func.func @transform_13(%arg0: i32, %arg1: i32) -> (i32, i32, i32, i32) {
    %c0_i32 = arith.constant 0 : i32
    %c0_i32_0 = arith.constant 0 : i32
    %c0_i32_1 = arith.constant 0 : i32
    return %arg0, %arg1, %c0_i32, %c0_i32_0 : i32, i32, i32, i32
  }
}

module attributes {stable_mosaic.version = 11 : i64} {
  func.func @_project_stats_kernel(%arg0: i32, %arg1: i32, %arg2: memref<1x128x128xf32, #tpu.memory_space<vmem>>, %arg3: memref<1x128x128xf32, #tpu.memory_space<vmem>>, %arg4: memref<1x128x128xf32, #tpu.memory_space<vmem>>, %arg5: memref<1x128x128xf32, #tpu.memory_space<vmem>>, %arg6: memref<4x2x128xf32, #tpu.memory_space<vmem>>, %arg7: memref<512x128xf32, #tpu.memory_space<vmem>>, %arg8: memref<1x1x128xf32, #tpu.memory_space<vmem>>, %arg9: memref<1x128x128xf32, #tpu.memory_space<vmem>>, %arg10: memref<1x1x1x128xf32, #tpu.memory_space<vmem>>, %arg11: memref<1x1x1x128xf32, #tpu.memory_space<vmem>>, %arg12: memref<128x512xf32, #tpu.memory_space<vmem>>) attributes {dimension_semantics = [#tpu.dimension_semantics<parallel>, #tpu.dimension_semantics<parallel>], iteration_bounds = array<i64: 2, 2>, scalar_prefetch = 0 : i64, scratch_operands = 1 : i64, tpu.core_type = #tpu.core_type<tc>, window_params = [{transform_indices = @transform_0, window_bounds = array<i64: 1, 128, 128>}, {transform_indices = @transform_1, window_bounds = array<i64: 1, 128, 128>}, {transform_indices = @transform_2, window_bounds = array<i64: 1, 128, 128>}, {transform_indices = @transform_3, window_bounds = array<i64: 1, 128, 128>}, {pipeline_mode = #tpu.pipeline_mode<synchronous>, transform_indices = @transform_4, window_bounds = array<i64: 4, 2, 128>}, {pipeline_mode = #tpu.pipeline_mode<synchronous>, transform_indices = @transform_5, window_bounds = array<i64: 512, 128>}, {transform_indices = @transform_6, window_bounds = array<i64: 1, 1, 128>}, {transform_indices = @transform_7, window_bounds = array<i64: 1, 128, 128>}, {transform_indices = @transform_8, window_bounds = array<i64: 1, 1, 1, 128>}, {transform_indices = @transform_9, window_bounds = array<i64: 1, 1, 1, 128>}]} {
    %c0 = arith.constant 0 : index
    %c0_0 = arith.constant 0 : index
    %c0_1 = arith.constant 0 : index
    %0 = vector.load %arg6[%c0, %c0_0, %c0_1] : memref<4x2x128xf32, #tpu.memory_space<vmem>>, vector<1x2x128xf32>
    %1 = vector.shape_cast %0 : vector<1x2x128xf32> to vector<2x128xf32>
    %c0_2 = arith.constant 0 : index
    %c0_3 = arith.constant 0 : index
    %c0_4 = arith.constant 0 : index
    %2 = vector.load %arg2[%c0_2, %c0_3, %c0_4] : memref<1x128x128xf32, #tpu.memory_space<vmem>>, vector<1x128x128xf32>
    %3 = vector.shape_cast %2 : vector<1x128x128xf32> to vector<128x128xf32>
    %4 = vector.extract_strided_slice %1 {offsets = [0, 0], sizes = [1, 128], strides = [1, 1]} : vector<2x128xf32> to vector<1x128xf32>
    %5 = vector.broadcast %4 : vector<1x128xf32> to vector<128x128xf32>
    %6 = arith.mulf %3, %5 : vector<128x128xf32>
    %7 = vector.extract_strided_slice %1 {offsets = [1, 0], sizes = [1, 128], strides = [1, 1]} : vector<2x128xf32> to vector<1x128xf32>
    %8 = vector.broadcast %7 : vector<1x128xf32> to vector<128x128xf32>
    %9 = arith.addf %6, %8 : vector<128x128xf32>
    %cst = arith.constant 0.000000e+00 : f32
    %10 = vector.broadcast %cst : f32 to vector<128x128xf32>
    %11 = arith.maximumf %9, %10 : vector<128x128xf32>
    %c0_5 = arith.constant 0 : index
    %c0_6 = arith.constant 0 : index
    %12 = vector.load %arg12[%c0_5, %c0_6] : memref<128x512xf32, #tpu.memory_space<vmem>>, vector<128x128xf32>
    tpu.vector_store %arg12[%c0_5, %c0_6], %11 {strides = array<i32>} : memref<128x512xf32, #tpu.memory_space<vmem>>, vector<128x128xf32>,
    %c1 = arith.constant 1 : index
    %c0_7 = arith.constant 0 : index
    %c0_8 = arith.constant 0 : index
    %13 = vector.load %arg6[%c1, %c0_7, %c0_8] : memref<4x2x128xf32, #tpu.memory_space<vmem>>, vector<1x2x128xf32>
    %14 = vector.shape_cast %13 : vector<1x2x128xf32> to vector<2x128xf32>
    %c0_9 = arith.constant 0 : index
    %c0_10 = arith.constant 0 : index
    %c0_11 = arith.constant 0 : index
    %15 = vector.load %arg3[%c0_9, %c0_10, %c0_11] : memref<1x128x128xf32, #tpu.memory_space<vmem>>, vector<1x128x128xf32>
    %16 = vector.shape_cast %15 : vector<1x128x128xf32> to vector<128x128xf32>
    %17 = vector.extract_strided_slice %14 {offsets = [0, 0], sizes = [1, 128], strides = [1, 1]} : vector<2x128xf32> to vector<1x128xf32>
    %18 = vector.broadcast %17 : vector<1x128xf32> to vector<128x128xf32>
    %19 = arith.mulf %16, %18 : vector<128x128xf32>
    %20 = vector.extract_strided_slice %14 {offsets = [1, 0], sizes = [1, 128], strides = [1, 1]} : vector<2x128xf32> to vector<1x128xf32>
    %21 = vector.broadcast %20 : vector<1x128xf32> to vector<128x128xf32>
    %22 = arith.addf %19, %21 : vector<128x128xf32>
    %cst_12 = arith.constant 0.000000e+00 : f32
    %23 = vector.broadcast %cst_12 : f32 to vector<128x128xf32>
    %24 = arith.maximumf %22, %23 : vector<128x128xf32>
    %c0_13 = arith.constant 0 : index
    %c128 = arith.constant 128 : index
    %25 = vector.load %arg12[%c0_13, %c128] : memref<128x512xf32, #tpu.memory_space<vmem>>, vector<128x128xf32>
    tpu.vector_store %arg12[%c0_13, %c128], %24 {strides = array<i32>} : memref<128x512xf32, #tpu.memory_space<vmem>>, vector<128x128xf32>,
    %c2 = arith.constant 2 : index
    %c0_14 = arith.constant 0 : index
    %c0_15 = arith.constant 0 : index
    %26 = vector.load %arg6[%c2, %c0_14, %c0_15] : memref<4x2x128xf32, #tpu.memory_space<vmem>>, vector<1x2x128xf32>
    %27 = vector.shape_cast %26 : vector<1x2x128xf32> to vector<2x128xf32>
    %c0_16 = arith.constant 0 : index
    %c0_17 = arith.constant 0 : index
    %c0_18 = arith.constant 0 : index
    %28 = vector.load %arg4[%c0_16, %c0_17, %c0_18] : memref<1x128x128xf32, #tpu.memory_space<vmem>>, vector<1x128x128xf32>
    %29 = vector.shape_cast %28 : vector<1x128x128xf32> to vector<128x128xf32>
    %30 = vector.extract_strided_slice %27 {offsets = [0, 0], sizes = [1, 128], strides = [1, 1]} : vector<2x128xf32> to vector<1x128xf32>
    %31 = vector.broadcast %30 : vector<1x128xf32> to vector<128x128xf32>
    %32 = arith.mulf %29, %31 : vector<128x128xf32>
    %33 = vector.extract_strided_slice %27 {offsets = [1, 0], sizes = [1, 128], strides = [1, 1]} : vector<2x128xf32> to vector<1x128xf32>
    %34 = vector.broadcast %33 : vector<1x128xf32> to vector<128x128xf32>
    %35 = arith.addf %32, %34 : vector<128x128xf32>
    %cst_19 = arith.constant 0.000000e+00 : f32
    %36 = vector.broadcast %cst_19 : f32 to vector<128x128xf32>
    %37 = arith.maximumf %35, %36 : vector<128x128xf32>
    %c0_20 = arith.constant 0 : index
    %c256 = arith.constant 256 : index
    %38 = vector.load %arg12[%c0_20, %c256] : memref<128x512xf32, #tpu.memory_space<vmem>>, vector<128x128xf32>
    tpu.vector_store %arg12[%c0_20, %c256], %37 {strides = array<i32>} : memref<128x512xf32, #tpu.memory_space<vmem>>, vector<128x128xf32>,
    %c3 = arith.constant 3 : index
    %c0_21 = arith.constant 0 : index
    %c0_22 = arith.constant 0 : index
    %39 = vector.load %arg6[%c3, %c0_21, %c0_22] : memref<4x2x128xf32, #tpu.memory_space<vmem>>, vector<1x2x128xf32>
    %40 = vector.shape_cast %39 : vector<1x2x128xf32> to vector<2x128xf32>
    %c0_23 = arith.constant 0 : index
    %c0_24 = arith.constant 0 : index
    %c0_25 = arith.constant 0 : index
    %41 = vector.load %arg5[%c0_23, %c0_24, %c0_25] : memref<1x128x128xf32, #tpu.memory_space<vmem>>, vector<1x128x128xf32>
    %42 = vector.shape_cast %41 : vector<1x128x128xf32> to vector<128x128xf32>
    %43 = vector.extract_strided_slice %40 {offsets = [0, 0], sizes = [1, 128], strides = [1, 1]} : vector<2x128xf32> to vector<1x128xf32>
    %44 = vector.broadcast %43 : vector<1x128xf32> to vector<128x128xf32>
    %45 = arith.mulf %42, %44 : vector<128x128xf32>
    %46 = vector.extract_strided_slice %40 {offsets = [1, 0], sizes = [1, 128], strides = [1, 1]} : vector<2x128xf32> to vector<1x128xf32>
    %47 = vector.broadcast %46 : vector<1x128xf32> to vector<128x128xf32>
    %48 = arith.addf %45, %47 : vector<128x128xf32>
    %cst_26 = arith.constant 0.000000e+00 : f32
    %49 = vector.broadcast %cst_26 : f32 to vector<128x128xf32>
    %50 = arith.maximumf %48, %49 : vector<128x128xf32>
    %c0_27 = arith.constant 0 : index
    %c384 = arith.constant 384 : index
    %51 = vector.load %arg12[%c0_27, %c384] : memref<128x512xf32, #tpu.memory_space<vmem>>, vector<128x128xf32>
    tpu.vector_store %arg12[%c0_27, %c384], %50 {strides = array<i32>} : memref<128x512xf32, #tpu.memory_space<vmem>>, vector<128x128xf32>,
    %c0_28 = arith.constant 0 : index
    %c0_29 = arith.constant 0 : index
    %52 = vector.load %arg12[%c0_28, %c0_29] : memref<128x512xf32, #tpu.memory_space<vmem>>, vector<128x512xf32>
    %c0_30 = arith.constant 0 : index
    %c0_31 = arith.constant 0 : index
    %53 = vector.load %arg7[%c0_30, %c0_31] : memref<512x128xf32, #tpu.memory_space<vmem>>, vector<512x128xf32>
    %cst_32 = arith.constant dense<0.000000e+00> : vector<128x128xf32>
    %54 = tpu.matmul %52, %53, %cst_32 {dimension_numbers = #tpu.dot_dimension_numbers<[1], [0], [0], [1], [0, 0, 1, 1], [], []>} : vector<128x512xf32>, vector<512x128xf32>, vector<128x128xf32> -> vector<128x128xf32>
    %c0_33 = arith.constant 0 : index
    %c0_34 = arith.constant 0 : index
    %c0_35 = arith.constant 0 : index
    %55 = vector.load %arg8[%c0_33, %c0_34, %c0_35] : memref<1x1x128xf32, #tpu.memory_space<vmem>>, vector<1x1x128xf32>
    %56 = vector.shape_cast %55 : vector<1x1x128xf32> to vector<1x128xf32>
    %57 = vector.broadcast %56 : vector<1x128xf32> to vector<128x128xf32>
    %58 = arith.addf %54, %57 : vector<128x128xf32>
    %c0_36 = arith.constant 0 : index
    %c0_37 = arith.constant 0 : index
    %c0_38 = arith.constant 0 : index
    %59 = vector.load %arg9[%c0_36, %c0_37, %c0_38] : memref<1x128x128xf32, #tpu.memory_space<vmem>>, vector<1x128x128xf32>
    %60 = vector.shape_cast %59 : vector<1x128x128xf32> to vector<128x128xf32>
    %61 = vector.shape_cast %58 : vector<128x128xf32> to vector<1x128x128xf32>
    tpu.vector_store %arg9[%c0_36, %c0_37, %c0_38], %61 {strides = array<i32>} : memref<1x128x128xf32, #tpu.memory_space<vmem>>, vector<1x128x128xf32>,
    %cst_39 = arith.constant dense<0.000000e+00> : vector<128xf32>
    %62 = vector.multi_reduction <add>, %58, %cst_39 [0] : vector<128x128xf32> to vector<128xf32>
    %63 = vector.shape_cast %62 : vector<128xf32> to vector<1x128xf32>
    %c0_40 = arith.constant 0 : index
    %c0_41 = arith.constant 0 : index
    %c0_42 = arith.constant 0 : index
    %c0_43 = arith.constant 0 : index
    %64 = vector.load %arg10[%c0_40, %c0_41, %c0_42, %c0_43] : memref<1x1x1x128xf32, #tpu.memory_space<vmem>>, vector<1x1x1x128xf32>
    %65 = vector.shape_cast %64 : vector<1x1x1x128xf32> to vector<1x128xf32>
    %66 = vector.shape_cast %63 : vector<1x128xf32> to vector<1x1x1x128xf32>
    tpu.vector_store %arg10[%c0_40, %c0_41, %c0_42, %c0_43], %66 {strides = array<i32>} : memref<1x1x1x128xf32, #tpu.memory_space<vmem>>, vector<1x1x1x128xf32>,
    %67 = arith.mulf %58, %58 : vector<128x128xf32>
    %cst_44 = arith.constant dense<0.000000e+00> : vector<128xf32>
    %68 = vector.multi_reduction <add>, %67, %cst_44 [0] : vector<128x128xf32> to vector<128xf32>
    %69 = vector.shape_cast %68 : vector<128xf32> to vector<1x128xf32>
    %c0_45 = arith.constant 0 : index
    %c0_46 = arith.constant 0 : index
    %c0_47 = arith.constant 0 : index
    %c0_48 = arith.constant 0 : index
    %70 = vector.load %arg11[%c0_45, %c0_46, %c0_47, %c0_48] : memref<1x1x1x128xf32, #tpu.memory_space<vmem>>, vector<1x1x1x128xf32>
    %71 = vector.shape_cast %70 : vector<1x1x1x128xf32> to vector<1x128xf32>
    %72 = vector.shape_cast %69 : vector<1x128xf32> to vector<1x1x1x128xf32>
    tpu.vector_store %arg11[%c0_45, %c0_46, %c0_47, %c0_48], %72 {strides = array<i32>} : memref<1x1x1x128xf32, #tpu.memory_space<vmem>>, vector<1x1x1x128xf32>,
    return
  }
  func.func @transform_0(%arg0: i32, %arg1: i32) -> (i32, i32, i32) {
    %c0_i32 = arith.constant 0 : i32
    %c0_i32_0 = arith.constant 0 : i32
    return %arg0, %arg1, %c0_i32 : i32, i32, i32
  }
  func.func @transform_1(%arg0: i32, %arg1: i32) -> (i32, i32, i32) {
    %c0_i32 = arith.constant 0 : i32
    %c0_i32_0 = arith.constant 0 : i32
    return %arg0, %arg1, %c0_i32 : i32, i32, i32
  }
  func.func @transform_2(%arg0: i32, %arg1: i32) -> (i32, i32, i32) {
    %c0_i32 = arith.constant 0 : i32
    %c0_i32_0 = arith.constant 0 : i32
    return %arg0, %arg1, %c0_i32 : i32, i32, i32
  }
  func.func @transform_3(%arg0: i32, %arg1: i32) -> (i32, i32, i32) {
    %c0_i32 = arith.constant 0 : i32
    %c0_i32_0 = arith.constant 0 : i32
    return %arg0, %arg1, %c0_i32 : i32, i32, i32
  }
  func.func @transform_4(%arg0: i32, %arg1: i32) -> (i32, i32, i32) {
    %c0_i32 = arith.constant 0 : i32
    %c0_i32_0 = arith.constant 0 : i32
    %c0_i32_1 = arith.constant 0 : i32
    %c0_i32_2 = arith.constant 0 : i32
    return %c0_i32, %c0_i32_0, %c0_i32_1 : i32, i32, i32
  }
  func.func @transform_5(%arg0: i32, %arg1: i32) -> (i32, i32) {
    %c0_i32 = arith.constant 0 : i32
    %c0_i32_0 = arith.constant 0 : i32
    %c0_i32_1 = arith.constant 0 : i32
    return %c0_i32, %c0_i32_0 : i32, i32
  }
  func.func @transform_6(%arg0: i32, %arg1: i32) -> (i32, i32, i32) {
    %c0_i32 = arith.constant 0 : i32
    %c0_i32_0 = arith.constant 0 : i32
    %c0_i32_1 = arith.constant 0 : i32
    return %arg0, %c0_i32, %c0_i32_0 : i32, i32, i32
  }
  func.func @transform_7(%arg0: i32, %arg1: i32) -> (i32, i32, i32) {
    %c0_i32 = arith.constant 0 : i32
    %c0_i32_0 = arith.constant 0 : i32
    return %arg0, %arg1, %c0_i32 : i32, i32, i32
  }
  func.func @transform_8(%arg0: i32, %arg1: i32) -> (i32, i32, i32, i32) {
    %c0_i32 = arith.constant 0 : i32
    %c0_i32_0 = arith.constant 0 : i32
    %c0_i32_1 = arith.constant 0 : i32
    return %arg0, %arg1, %c0_i32, %c0_i32_0 : i32, i32, i32, i32
  }
  func.func @transform_9(%arg0: i32, %arg1: i32) -> (i32, i32, i32, i32) {
    %c0_i32 = arith.constant 0 : i32
    %c0_i32_0 = arith.constant 0 : i32
    %c0_i32_1 = arith.constant 0 : i32
    return %arg0, %arg1, %c0_i32, %c0_i32_0 : i32, i32, i32, i32
  }
}

module attributes {stable_mosaic.version = 11 : i64} {
  func.func @_scale_shift_relu_t_kernel(%arg0: i32, %arg1: i32, %arg2: memref<1x256x128xf32, #tpu.memory_space<vmem>>, %arg3: memref<2x128xf32, #tpu.memory_space<vmem>>, %arg4: memref<1x128x256xf32, #tpu.memory_space<vmem>>) attributes {dimension_semantics = [#tpu.dimension_semantics<parallel>, #tpu.dimension_semantics<parallel>], iteration_bounds = array<i64: 2, 1>, scalar_prefetch = 0 : i64, scratch_operands = 0 : i64, tpu.core_type = #tpu.core_type<tc>, window_params = [{transform_indices = @transform_0, window_bounds = array<i64: 1, 256, 128>}, {pipeline_mode = #tpu.pipeline_mode<synchronous>, transform_indices = @transform_1, window_bounds = array<i64: 2, 128>}, {transform_indices = @transform_2, window_bounds = array<i64: 1, 128, 256>}]} {
    %c0 = arith.constant 0 : index
    %c0_0 = arith.constant 0 : index
    %0 = vector.load %arg3[%c0, %c0_0] : memref<2x128xf32, #tpu.memory_space<vmem>>, vector<2x128xf32>
    %c0_1 = arith.constant 0 : index
    %c0_2 = arith.constant 0 : index
    %c0_3 = arith.constant 0 : index
    %1 = vector.load %arg2[%c0_1, %c0_2, %c0_3] : memref<1x256x128xf32, #tpu.memory_space<vmem>>, vector<1x256x128xf32>
    %2 = vector.shape_cast %1 : vector<1x256x128xf32> to vector<256x128xf32>
    %3 = vector.extract_strided_slice %0 {offsets = [0, 0], sizes = [1, 128], strides = [1, 1]} : vector<2x128xf32> to vector<1x128xf32>
    %4 = vector.broadcast %3 : vector<1x128xf32> to vector<256x128xf32>
    %5 = arith.mulf %2, %4 : vector<256x128xf32>
    %6 = vector.extract_strided_slice %0 {offsets = [1, 0], sizes = [1, 128], strides = [1, 1]} : vector<2x128xf32> to vector<1x128xf32>
    %7 = vector.broadcast %6 : vector<1x128xf32> to vector<256x128xf32>
    %8 = arith.addf %5, %7 : vector<256x128xf32>
    %cst = arith.constant 0.000000e+00 : f32
    %9 = vector.broadcast %cst : f32 to vector<256x128xf32>
    %10 = arith.maximumf %8, %9 : vector<256x128xf32>
    %11 = tpu.transpose %10, [1, 0] : vector<256x128xf32> -> vector<128x256xf32>
    %c0_4 = arith.constant 0 : index
    %c0_5 = arith.constant 0 : index
    %c0_6 = arith.constant 0 : index
    %12 = vector.load %arg4[%c0_4, %c0_5, %c0_6] : memref<1x128x256xf32, #tpu.memory_space<vmem>>, vector<1x128x256xf32>
    %13 = vector.shape_cast %12 : vector<1x128x256xf32> to vector<128x256xf32>
    %14 = vector.shape_cast %11 : vector<128x256xf32> to vector<1x128x256xf32>
    tpu.vector_store %arg4[%c0_4, %c0_5, %c0_6], %14 {strides = array<i32>} : memref<1x128x256xf32, #tpu.memory_space<vmem>>, vector<1x128x256xf32>,
    return
  }
  func.func @transform_0(%arg0: i32, %arg1: i32) -> (i32, i32, i32) {
    %c0_i32 = arith.constant 0 : i32
    %c0_i32_0 = arith.constant 0 : i32
    return %arg0, %arg1, %c0_i32 : i32, i32, i32
  }
  func.func @transform_1(%arg0: i32, %arg1: i32) -> (i32, i32) {
    %c0_i32 = arith.constant 0 : i32
    %c0_i32_0 = arith.constant 0 : i32
    %c0_i32_1 = arith.constant 0 : i32
    return %c0_i32, %c0_i32_0 : i32, i32
  }
  func.func @transform_2(%arg0: i32, %arg1: i32) -> (i32, i32, i32) {
    %c0_i32 = arith.constant 0 : i32
    %c0_i32_0 = arith.constant 0 : i32
    return %arg0, %c0_i32, %arg1 : i32, i32, i32
  }
}

</mosaic_0001>

<bundles_post_ra>
// kernel: aspp_forward.5
= control target key start
LH: loop header
LB: loop body
LE: loop exit
PB: predicated region body
PF: predicated region fallthrough
CT: control target
= control target key end

     0   :  { %s579_s9 = smov 0   ;;  %s581_s10 = smov 0   ;;  %s758_s0 = inlined_call_operand.vmem [shape: f32[2,256,128], index: 0, kind: input, shape index: {}]   ;;  %s759_s1 = inlined_call_operand.vmem [shape: f32[2,128], index: 1, kind: input, shape index: {}]   ;;  %s760_s2 = inlined_call_operand.vmem [shape: f32[2,128,256], index: 2, kind: output, shape index: {}]  }
   0x1   :  { %s583_s11 = smov 0  }
   0x2 LB: > { %s24_s12 = sadd.s32 1, %s558_s10  ;;  %p507_p0 = scmp.ge.s32.totalorder %s562_s11, 1  ;;  %s562_s11 = sphi %s583_s11, %s12_s11   ;;  %s558_s10 = sphi %s581_s10, %s762_s10   ;;  %s554_s9 = sphi %s579_s9, %s761_s9  }
   0x3   : > { %p26_p1 = scmp.ge.s32.totalorder %s24_s12, 2  ;;  %p133_p2 = scmp.lt.s32.totalorder %s562_s11, 3 }
   0x5   : > { %s764_s12 = smov (%p26_p1, %s24_s12), 0  ;;  %p134_p3 = pnand %p507_p0, %p133_p2 }
   0x6   : > { %p164_p4 = scmp.lt.s32.totalorder (!%p134_p3), %s554_s9, 1  ;;  %v216_v0 = vlaneseq (!%p134_p3)  ;;  %v183_v2 = vld [vmem:[%s759_s1] sm:$0x3] (!%p134_p3) }
   0x7   : > { %137 = sbr.rel (%p134_p3) target bundleno = 215 (0xd7), region = 28 }
   0x8   : > { %v217_v1 = vshrl.u32 (!%p134_p3), %v216_v0, 7 }
   0xa   : > { %v218_v3 = vsub.s32 (!%p134_p3), 0, %v217_v1  ;;  %v254_v4 = vsub.s32 (!%p134_p3), 1, %v217_v1 }
   0xc   : > { %v611_v6 = vrot.slane (!%p134_p3), %v183_v2, %v218_v3  ;;  %v613_v7 = vrot.slane (!%p134_p3), %v183_v2, %v254_v4 }
   0xe   : > { %s766_s9 = smov (!%p164_p4, %s554_s9), 1 }
   0xf   : > { %s514_s15 = sshll.u32 %s766_s9, 8 }
  0x10   : > { %s608_s18 = scalar_lea.vmem %s758_s0, %s514_s15  ;;  %s715_s21 = scalar_lea.vmem %s760_s2, %s514_s15 }
  0x11   : > { %v200_v5 = vld [vmem:[%s608_s18 + $0x80] sm:$0xff]  ;;  %v201_v9 = vld [vmem:[%s608_s18 + $0x88] sm:$0xff]  ;;  %v202_v11 = vld [vmem:[%s608_s18 + $0x90] sm:$0xff] }
  0x12   : > { %v184_v8 = vld [vmem:[%s608_s18] sm:$0xff]  ;;  %v185_v10 = vld [vmem:[%s608_s18 + $0x8] sm:$0xff]  ;;  %v186_v12 = vld [vmem:[%s608_s18 + $0x10] sm:$0xff]  ;;  %v236_v13 = vmul.f32 %v611_v6, %v200_v5  ;;  %v237_v15 = vmul.f32 %v611_v6, %v201_v9  ;;  %v238_v17 = vmul.f32 %v611_v6, %v202_v11 }
  0x13   : > { %v220_v14 = vmul.f32 %v611_v6, %v184_v8  ;;  %v221_v16 = vmul.f32 %v611_v6, %v185_v10  ;;  %v222_v18 = vmul.f32 %v611_v6, %v186_v12  ;;  %v203_v23 = vld [vmem:[%s608_s18 + $0x98] sm:$0xff]  ;;  %v204_v33 = vld [vmem:[%s608_s18 + $0xa0] sm:$0xff]  ;;  %v205_v41 = vld [vmem:[%s608_s18 + $0xa8] sm:$0xff] }
  0x14   : > { %v272_v19 = vadd.f32 %v613_v7, %v236_v13  ;;  %v273_v21 = vadd.f32 %v613_v7, %v237_v15  ;;  %v187_v24 = vld [vmem:[%s608_s18 + $0x18] sm:$0xff]  ;;  %v239_v27 = vmul.f32 %v611_v6, %v203_v23  ;;  %v274_v31 = vadd.f32 %v613_v7, %v238_v17  ;;  %v188_v34 = vld [vmem:[%s608_s18 + $0x20] sm:$0xff]  ;;  %v189_v42 = vld [vmem:[%s608_s18 + $0x28] sm:$0xff] }
  0x15   : > { %v256_v20 = vadd.f32 %v613_v7, %v220_v14  ;;  %v257_v22 = vadd.f32 %v613_v7, %v221_v16  ;;  %v223_v28 = vmul.f32 %v611_v6, %v187_v24  ;;  %v258_v32 = vadd.f32 %v613_v7, %v222_v18  ;;  %v206_v49 = vld [vmem:[%s608_s18 + $0xb0] sm:$0xff]  ;;  %v207_v57 = vld [vmem:[%s608_s18 + $0xb8] sm:$0xff]  ;;  %v208_v1 = vld [vmem:[%s608_s18 + $0xc0] sm:$0xff] }
  0x16   : > { %v304_v25 = vmax.f32 %v272_v19, 0.0  ;;  %v305_v29 = vmax.f32 %v273_v21, 0.0  ;;  %v275_v35 = vadd.f32 %v613_v7, %v239_v27  ;;  %v306_v37 = vmax.f32 %v274_v31, 0.0  ;;  %v190_v50 = vld [vmem:[%s608_s18 + $0x30] sm:$0xff]  ;;  %v191_v58 = vld [vmem:[%s608_s18 + $0x38] sm:$0xff]  ;;  %v192_v2 = vld [vmem:[%s608_s18 + $0x40] sm:$0xff] }
  0x17   : > { %v288_v26 = vmax.f32 %v256_v20, 0.0  ;;  %v289_v30 = vmax.f32 %v257_v22, 0.0  ;;  %v259_v36 = vadd.f32 %v613_v7, %v223_v28  ;;  %v290_v38 = vmax.f32 %v258_v32, 0.0  ;;  %v209_v11 = vld [vmem:[%s608_s18 + $0xc8] sm:$0xff]  ;;  %v210_v19 = vld [vmem:[%s608_s18 + $0xd0] sm:$0xff]  ;;  %v211_v27 = vld [vmem:[%s608_s18 + $0xd8] sm:$0xff] }
  0x18   : > { %352 = vxpose.xlu1.b32.start [1/16] %v304_v25, 128  ;;  %v240_v39 = vmul.f32 %v611_v6, %v204_v33  ;;  %v224_v40 = vmul.f32 %v611_v6, %v188_v34  ;;  %v307_v43 = vmax.f32 %v275_v35, 0.0  ;;  %v241_v44 = vmul.f32 %v611_v6, %v205_v41  ;;  %v193_v12 = vld [vmem:[%s608_s18 + $0x48] sm:$0xff]  ;;  %v194_v20 = vld [vmem:[%s608_s18 + $0x50] sm:$0xff]  ;;  %v195_v28 = vld [vmem:[%s608_s18 + $0x58] sm:$0xff] }
  0x19   : > { %320 = vxpose.xlu0.b32.start [1/16] %v288_v26, 128  ;;  %v291_v45 = vmax.f32 %v259_v36, 0.0  ;;  %v225_v48 = vmul.f32 %v611_v6, %v189_v42  ;;  %v242_v51 = vmul.f32 %v611_v6, %v206_v49  ;;  %v226_v52 = vmul.f32 %v611_v6, %v190_v50  ;;  %v212_v35 = vld [vmem:[%s608_s18 + $0xe0] sm:$0xff] }
  0x1a   : > { %v276_v46 = vadd.f32 %v613_v7, %v240_v39  ;;  %v260_v47 = vadd.f32 %v613_v7, %v224_v40  ;;  %v277_v55 = vadd.f32 %v613_v7, %v241_v44  ;;  %v243_v59 = vmul.f32 %v611_v6, %v207_v57  ;;  %v196_v36 = vld [vmem:[%s608_s18 + $0x60] sm:$0xff]  ;;  %v197_v44 = vld [vmem:[%s608_s18 + $0x68] sm:$0xff] }
  0x1b   : > { %v261_v56 = vadd.f32 %v613_v7, %v225_v48  ;;  %v227_v60 = vmul.f32 %v611_v6, %v191_v58  ;;  %v278_v63 = vadd.f32 %v613_v7, %v242_v51  ;;  %v262_v0 = vadd.f32 %v613_v7, %v226_v52  ;;  %v214_v51 = vld [vmem:[%s608_s18 + $0xf0] sm:$0xff] }
  0x1c   : > { %353 = vxpose.xlu1.b32.cont [2/16] %v305_v29, 128  ;;  %v308_v53 = vmax.f32 %v276_v46, 0.0  ;;  %v292_v54 = vmax.f32 %v260_v47, 0.0  ;;  %v309_v61 = vmax.f32 %v277_v55, 0.0  ;;  %v279_v3 = vadd.f32 %v613_v7, %v243_v59  ;;  %v198_v52 = vld [vmem:[%s608_s18 + $0x70] sm:$0xff]  ;;  %v215_v59 = vld [vmem:[%s608_s18 + $0xf8] sm:$0xff] }
  0x1d   : > { %321 = vxpose.xlu0.b32.cont [2/16] %v289_v30, 128  ;;  %v293_v62 = vmax.f32 %v261_v56, 0.0  ;;  %v263_v4 = vadd.f32 %v613_v7, %v227_v60  ;;  %v310_v5 = vmax.f32 %v278_v63, 0.0  ;;  %v294_v8 = vmax.f32 %v262_v0, 0.0  ;;  %v199_v60 = vld [vmem:[%s608_s18 + $0x78] sm:$0xff] }
  0x1e   : > { %v244_v9 = vmul.f32 %v611_v6, %v208_v1  ;;  %v228_v10 = vmul.f32 %v611_v6, %v192_v2  ;;  %v311_v13 = vmax.f32 %v279_v3, 0.0  ;;  %v245_v14 = vmul.f32 %v611_v6, %v209_v11 }
  0x1f   : > { %v295_v15 = vmax.f32 %v263_v4, 0.0  ;;  %v229_v18 = vmul.f32 %v611_v6, %v193_v12  ;;  %v246_v21 = vmul.f32 %v611_v6, %v210_v19  ;;  %v230_v22 = vmul.f32 %v611_v6, %v194_v20 }
  0x20   : > { %354 = vxpose.xlu1.b32.cont [3/16] %v306_v37, 128  ;;  %v280_v16 = vadd.f32 %v613_v7, %v244_v9  ;;  %v264_v17 = vadd.f32 %v613_v7, %v228_v10  ;;  %v281_v25 = vadd.f32 %v613_v7, %v245_v14  ;;  %v247_v30 = vmul.f32 %v611_v6, %v211_v27 }
  0x21   : > { %322 = vxpose.xlu0.b32.cont [3/16] %v290_v38, 128  ;;  %v265_v26 = vadd.f32 %v613_v7, %v229_v18  ;;  %v282_v29 = vadd.f32 %v613_v7, %v246_v21  ;;  %v266_v33 = vadd.f32 %v613_v7, %v230_v22  ;;  %v231_v34 = vmul.f32 %v611_v6, %v195_v28 }
  0x22   : > { %v312_v23 = vmax.f32 %v280_v16, 0.0  ;;  %v296_v24 = vmax.f32 %v264_v17, 0.0  ;;  %v313_v31 = vmax.f32 %v281_v25, 0.0  ;;  %v283_v38 = vadd.f32 %v613_v7, %v247_v30 }
  0x23   : > { %v297_v32 = vmax.f32 %v265_v26, 0.0  ;;  %v314_v37 = vmax.f32 %v282_v29, 0.0  ;;  %v298_v39 = vmax.f32 %v266_v33, 0.0  ;;  %v267_v40 = vadd.f32 %v613_v7, %v231_v34 }
  0x24   : > { %355 = vxpose.xlu1.b32.cont [4/16] %v307_v43, 128  ;;  %v248_v41 = vmul.f32 %v611_v6, %v212_v35  ;;  %v232_v42 = vmul.f32 %v611_v6, %v196_v36  ;;  %v213_v43 = vld [vmem:[%s608_s18 + $0xe8] sm:$0xff]  ;;  %v233_v50 = vmul.f32 %v611_v6, %v197_v44  ;;  %v235_v2 = vmul.f32 %v611_v6, %v199_v60 }
  0x25   : > { %323 = vxpose.xlu0.b32.cont [4/16] %v291_v45, 128  ;;  %v315_v45 = vmax.f32 %v283_v38, 0.0  ;;  %v249_v46 = vmul.f32 %v611_v6, %v213_v43  ;;  %v299_v47 = vmax.f32 %v267_v40, 0.0 }
  0x26   : > { %v284_v48 = vadd.f32 %v613_v7, %v248_v41  ;;  %v268_v49 = vadd.f32 %v613_v7, %v232_v42  ;;  %v269_v58 = vadd.f32 %v613_v7, %v233_v50 }
  0x27   : > { %v285_v57 = vadd.f32 %v613_v7, %v249_v46 }
  0x28   : > { %356 = vxpose.xlu1.b32.cont [5/16] %v308_v53, 128  ;;  %v250_v53 = vmul.f32 %v611_v6, %v214_v51  ;;  %v316_v55 = vmax.f32 %v284_v48, 0.0  ;;  %v300_v56 = vmax.f32 %v268_v49, 0.0  ;;  %v301_v0 = vmax.f32 %v269_v58, 0.0 }
  0x29   : > { %324 = vxpose.xlu0.b32.cont [5/16] %v292_v54, 128  ;;  %v234_v54 = vmul.f32 %v611_v6, %v198_v52  ;;  %v317_v63 = vmax.f32 %v285_v57, 0.0 }
  0x2b   : > { %v270_v1 = vadd.f32 %v613_v7, %v234_v54 }
  0x2c   : > { %357 = vxpose.xlu1.b32.cont [6/16] %v309_v61, 128  ;;  %v286_v61 = vadd.f32 %v613_v7, %v250_v53 }
  0x2d   : > { %325 = vxpose.xlu0.b32.cont [6/16] %v293_v62, 128  ;;  %v251_v62 = vmul.f32 %v611_v6, %v215_v59  ;;  %v302_v4 = vmax.f32 %v270_v1, 0.0 }
  0x2e   : > { %v318_v3 = vmax.f32 %v286_v61, 0.0 }
  0x30   : > { %358 = vxpose.xlu1.b32.cont [7/16] %v310_v5, 128  ;;  %v287_v5 = vadd.f32 %v613_v7, %v251_v62 }
  0x31   : > { %326 = vxpose.xlu0.b32.cont [7/16] %v294_v8, 128  ;;  %v271_v8 = vadd.f32 %v613_v7, %v235_v2 }
  0x32   : > { %v319_v9 = vmax.f32 %v287_v5, 0.0 }
  0x33   : > { %v303_v10 = vmax.f32 %v271_v8, 0.0 }
  0x34   : > { %359 = vxpose.xlu1.b32.cont [8/16] %v311_v13, 128 }
  0x35   : > { %327 = vxpose.xlu0.b32.cont [8/16] %v295_v15, 128 }
  0x38   : > { %360 = vxpose.xlu1.b32.cont [9/16] %v312_v23, 128 }
  0x39   : > { %328 = vxpose.xlu0.b32.cont [9/16] %v296_v24, 128 }
  0x3c   : > { %361 = vxpose.xlu1.b32.cont [10/16] %v313_v31, 128 }
  0x3d   : > { %329 = vxpose.xlu0.b32.cont [10/16] %v297_v32, 128 }
  0x40   : > { %362 = vxpose.xlu1.b32.cont [11/16] %v314_v37, 128 }
  0x41   : > { %330 = vxpose.xlu0.b32.cont [11/16] %v298_v39, 128 }
  0x44   : > { %363 = vxpose.xlu1.b32.cont [12/16] %v315_v45, 128 }
  0x45   : > { %331 = vxpose.xlu0.b32.cont [12/16] %v299_v47, 128 }
  0x48   : > { %364 = vxpose.xlu1.b32.cont [13/16] %v316_v55, 128 }
  0x49   : > { %332 = vxpose.xlu0.b32.cont [13/16] %v300_v56, 128 }
  0x4c   : > { %365 = vxpose.xlu1.b32.cont [14/16] %v317_v63, 128 }
  0x4d   : > { %333 = vxpose.xlu0.b32.cont [14/16] %v301_v0, 128 }
  0x50   : > { %366 = vxpose.xlu1.b32.cont [15/16] %v318_v3, 128 }
  0x51   : > { %334 = vxpose.xlu0.b32.cont [15/16] %v302_v4, 128 }
  0x54   : > { %367 = vxpose.xlu1.b32.end [16/16] %v319_v9, 128 }
  0x55   : > { %335 = vxpose.xlu0.b32.end [16/16] %v303_v10, 128 }
  0x98   : > { %v368_v6 = vpop.trf.xlu1 }
  0x99   : > { %v336_v7 = vpop.trf.xlu0  ;;  %385 = vst [vmem:[%s715_s21 + $0x8] sm:$0xff] %v368_v6 }
  0x9a   : > { %384 = vst [vmem:[%s715_s21] sm:$0xff] %v336_v7 }
  0x9c   : > { %v369_v11 = vpop.trf.xlu1 }
  0x9d   : > { %v337_v12 = vpop.trf.xlu0  ;;  %387 = vst [vmem:[%s715_s21 + $0x18] sm:$0xff] %v369_v11 }
  0x9e   : > { %386 = vst [vmem:[%s715_s21 + $0x10] sm:$0xff] %v337_v12 }
  0xa0   : > { %v370_v13 = vpop.trf.xlu1 }
  0xa1   : > { %v338_v14 = vpop.trf.xlu0  ;;  %389 = vst [vmem:[%s715_s21 + $0x28] sm:$0xff] %v370_v13 }
  0xa2   : > { %388 = vst [vmem:[%s715_s21 + $0x20] sm:$0xff] %v338_v14 }
  0xa4   : > { %v371_v15 = vpop.trf.xlu1 }
  0xa5   : > { %v339_v16 = vpop.trf.xlu0  ;;  %391 = vst [vmem:[%s715_s21 + $0x38] sm:$0xff] %v371_v15 }
  0xa6   : > { %390 = vst [vmem:[%s715_s21 + $0x30] sm:$0xff] %v339_v16 }
  0xa8   : > { %v372_v17 = vpop.trf.xlu1 }
  0xa9   : > { %v340_v18 = vpop.trf.xlu0  ;;  %393 = vst [vmem:[%s715_s21 + $0x48] sm:$0xff] %v372_v17 }
  0xaa   : > { %392 = vst [vmem:[%s715_s21 + $0x40] sm:$0xff] %v340_v18 }
  0xac   : > { %v373_v19 = vpop.trf.xlu1 }
  0xad   : > { %v341_v20 = vpop.trf.xlu0  ;;  %395 = vst [vmem:[%s715_s21 + $0x58] sm:$0xff] %v373_v19 }
  0xae   : > { %394 = vst [vmem:[%s715_s21 + $0x50] sm:$0xff] %v341_v20 }
  0xb0   : > { %v374_v21 = vpop.trf.xlu1 }
  0xb1   : > { %v342_v22 = vpop.trf.xlu0  ;;  %397 = vst [vmem:[%s715_s21 + $0x68] sm:$0xff] %v374_v21 }
  0xb2   : > { %396 = vst [vmem:[%s715_s21 + $0x60] sm:$0xff] %v342_v22 }
  0xb4   : > { %v375_v23 = vpop.trf.xlu1 }
  0xb5   : > { %v343_v24 = vpop.trf.xlu0  ;;  %399 = vst [vmem:[%s715_s21 + $0x78] sm:$0xff] %v375_v23 }
  0xb6   : > { %398 = vst [vmem:[%s715_s21 + $0x70] sm:$0xff] %v343_v24 }
  0xb8   : > { %v376_v25 = vpop.trf.xlu1 }
  0xb9   : > { %v344_v26 = vpop.trf.xlu0  ;;  %401 = vst [vmem:[%s715_s21 + $0x88] sm:$0xff] %v376_v25 }
  0xba   : > { %400 = vst [vmem:[%s715_s21 + $0x80] sm:$0xff] %v344_v26 }
  0xbc   : > { %v377_v27 = vpop.trf.xlu1 }
  0xbd   : > { %v345_v28 = vpop.trf.xlu0  ;;  %403 = vst [vmem:[%s715_s21 + $0x98] sm:$0xff] %v377_v27 }
  0xbe   : > { %402 = vst [vmem:[%s715_s21 + $0x90] sm:$0xff] %v345_v28 }
  0xc0   : > { %v378_v29 = vpop.trf.xlu1 }
  0xc1   : > { %v346_v30 = vpop.trf.xlu0  ;;  %405 = vst [vmem:[%s715_s21 + $0xa8] sm:$0xff] %v378_v29 }
  0xc2   : > { %404 = vst [vmem:[%s715_s21 + $0xa0] sm:$0xff] %v346_v30 }
  0xc4   : > { %v379_v31 = vpop.trf.xlu1 }
  0xc5   : > { %v347_v32 = vpop.trf.xlu0  ;;  %407 = vst [vmem:[%s715_s21 + $0xb8] sm:$0xff] %v379_v31 }
  0xc6   : > { %406 = vst [vmem:[%s715_s21 + $0xb0] sm:$0xff] %v347_v32 }
  0xc8   : > { %v380_v33 = vpop.trf.xlu1 }
  0xc9   : > { %v348_v34 = vpop.trf.xlu0  ;;  %409 = vst [vmem:[%s715_s21 + $0xc8] sm:$0xff] %v380_v33 }
  0xca   : > { %408 = vst [vmem:[%s715_s21 + $0xc0] sm:$0xff] %v348_v34 }
  0xcc   : > { %v381_v35 = vpop.trf.xlu1 }
  0xcd   : > { %v349_v36 = vpop.trf.xlu0  ;;  %411 = vst [vmem:[%s715_s21 + $0xd8] sm:$0xff] %v381_v35 }
  0xce   : > { %410 = vst [vmem:[%s715_s21 + $0xd0] sm:$0xff] %v349_v36 }
  0xd0   : > { %v382_v37 = vpop.trf.xlu1 }
  0xd1   : > { %v350_v38 = vpop.trf.xlu0  ;;  %413 = vst [vmem:[%s715_s21 + $0xe8] sm:$0xff] %v382_v37 }
  0xd2   : > { %412 = vst [vmem:[%s715_s21 + $0xe0] sm:$0xff] %v350_v38 }
  0xd4   : > { %v383_v39 = vpop.trf.xlu1 }
  0xd5   : > { %v351_v40 = vpop.trf.xlu0  ;;  %415 = vst [vmem:[%s715_s21 + $0xf8] sm:$0xff] %v383_v39 }
  0xd6   : > { %414 = vst [vmem:[%s715_s21 + $0xf0] sm:$0xff] %v351_v40 }
  0xd7 PF: > { %s12_s11 = sadd.s32 1, %s562_s11   ;;  %s761_s9 = smov %s558_s10 }
  0xd8   : > { %p9_p5 = scmp.ge.s32.totalorder %s12_s11, 4   ;;  %s762_s10 = smov %s764_s12 }
  0xda   :  { %11 = sbr.rel (!%p9_p5) target bundleno = 2 (0x2), region = 58 }

// kernel: aspp_forward.4
= control target key start
LH: loop header
LB: loop body
LE: loop exit
PB: predicated region body
PF: predicated region fallthrough
CT: control target
= control target key end

     0   :  { %s2008_s30 = smov 0   ;;  %s2010_s10 = smov 0   ;;  %s2587_s0 = inlined_call_operand.vmem [shape: f32[2,256,128], index: 0, kind: input, shape index: {}]   ;;  %s2588_s1 = inlined_call_operand.vmem [shape: f32[2,256,128], index: 1, kind: input, shape index: {}]   ;;  %s2589_s2 = inlined_call_operand.vmem [shape: f32[2,256,128], index: 2, kind: input, shape index: {}]   ;;  %s2590_s3 = inlined_call_operand.vmem [shape: f32[2,256,128], index: 3, kind: input, shape index: {}]   ;;  %s2591_s4 = inlined_call_operand.vmem [shape: f32[4,2,128], index: 4, kind: input, shape index: {}]   ;;  %s2592_s5 = inlined_call_operand.vmem [shape: f32[512,128], index: 5, kind: input, shape index: {}]   ;;  %s2593_s6 = inlined_call_operand.vmem [shape: f32[2,1,128], index: 6, kind: input, shape index: {}]   ;;  %s2594_s7 = inlined_call_operand.vmem [shape: f32[2,256,128], index: 7, kind: output, shape index: {0}]   ;;  %s2595_s8 = inlined_call_operand.vmem [shape: f32[2,2,1,128], index: 8, kind: output, shape index: {1}]   ;;  %s2596_s9 = inlined_call_operand.vmem [shape: f32[2,2,1,128], index: 9, kind: output, shape index: {2}]  }
   0x1   :  { %s2012_s11 = smov 0   ;;  %s2014_s12 = smov 0  }
   0x2   :  { %s2016_s13 = smov 0  }
   0x3 LB: > { %s29_s14 = sadd.s32 1, %s1948_s11  ;;  %s32_s15 = sadd.s32 1, %s1952_s12  ;;  %s1956_s13 = sphi %s2016_s13, %s20_s13   ;;  %s1952_s12 = sphi %s2014_s12, %s2601_s12   ;;  %s1948_s11 = sphi %s2012_s11, %s2600_s11   ;;  %s1944_s10 = sphi %s2010_s10, %s2599_s10   ;;  %s1940_s30 = sphi %s2008_s30, %s2598_s30  }
   0x4   : > { %p30_p0 = scmp.ge.s32.totalorder %s29_s14, 2  ;;  %p1630_p1 = scmp.ge.s32.totalorder %s1956_s13, 1 }
   0x5   : > { %p376_p2 = scmp.lt.s32.totalorder %s1956_s13, 5 }
   0x6   : > { %s2603_s14 = smov (%p30_p0, %s29_s14), 0  ;;  %s2605_s15 = smov (!%p30_p0, %s32_s15), %s1952_s12 }
   0x7   : > { %p377_p3 = pnand %p1630_p1, %p376_p2  ;;  %p34_p4 = scmp.ge.s32.totalorder %s2605_s15, 2 }
   0x8   : > { %v970_v0 = vld [vmem:[%s2592_s5 + $0x80] sm:$0xff] (!%p377_p3)  ;;  %v971_v1 = vld [vmem:[%s2592_s5 + $0x88] sm:$0xff] (!%p377_p3)  ;;  %s1631_s28 = sshll.u32 (!%p377_p3), %s1940_s30, 4  ;;  %p465_p5 = scmp.lt.s32.totalorder (!%p377_p3), %s1944_s10, 1  ;;  %v972_v11 = vld [vmem:[%s2592_s5 + $0x90] sm:$0xff] (!%p377_p3)  ;;  %v548_v47 = vlaneseq (!%p377_p3) }
   0x9   : > { %s2607_s15 = smov (%p34_p4, %s2605_s15), 0  ;;  %380 = sbr.rel (%p377_p3) target bundleno = 340 (0x154), region = 48 }
   0xa   : > { %v954_v2 = vld [vmem:[%s2592_s5] sm:$0xff] (!%p377_p3)  ;;  %v1814_v3 = vpack.c.bf16 (!%p377_p3), %v971_v1, %v970_v0  ;;  %v955_v4 = vld [vmem:[%s2592_s5 + $0x8] sm:$0xff] (!%p377_p3)  ;;  %v973_v13 = vld [vmem:[%s2592_s5 + $0x98] sm:$0xff] (!%p377_p3)  ;;  %p2091_p6 = scmp.lt.s32.totalorder (!%p377_p3), %s1631_s28, 31  ;;  %v549_v61 = vshrl.u32 (!%p377_p3), %v548_v47, 7  ;;  %p519_p7 = scmp.lt.s32.totalorder (!%p377_p3), %s1940_s30, 1 }
   0xb   : > { %v1002_v5 = vld [vmem:[%s2592_s5 + $0x180] sm:$0xff] (!%p377_p3)  ;;  %v1003_v6 = vld [vmem:[%s2592_s5 + $0x188] sm:$0xff] (!%p377_p3)  ;;  %v1816_v7 = vpack.c.bf16 (!%p377_p3), %v955_v4, %v954_v2  ;;  %v956_v14 = vld [vmem:[%s2592_s5 + $0x10] sm:$0xff] (!%p377_p3)  ;;  %v1818_v16 = vpack.c.bf16 (!%p377_p3), %v973_v13, %v972_v11 }
   0xc   : > { %v1846_v8 = vpack.c.bf16 (!%p377_p3), %v1003_v6, %v1002_v5  ;;  %v986_v9 = vld [vmem:[%s2592_s5 + $0x100] sm:$0xff] (!%p377_p3)  ;;  %v987_v10 = vld [vmem:[%s2592_s5 + $0x108] sm:$0xff] (!%p377_p3)  ;;  %1815 = vmatprep.subr.bf16.mxu0 (!%p377_p3), %v1814_v3  ;;  %v957_v15 = vld [vmem:[%s2592_s5 + $0x18] sm:$0xff] (!%p377_p3) }
   0xd   : > { %v1848_v12 = vpack.c.bf16 (!%p377_p3), %v987_v10, %v986_v9  ;;  %1817 = vmatpush3.bf16.msra.mxu0 (!%p377_p3), %v1816_v7  ;;  %v1820_v17 = vpack.c.bf16 (!%p377_p3), %v957_v15, %v956_v14  ;;  %v1004_v18 = vld [vmem:[%s2592_s5 + $0x190] sm:$0xff] (!%p377_p3)  ;;  %v1005_v19 = vld [vmem:[%s2592_s5 + $0x198] sm:$0xff] (!%p377_p3)  ;;  %v974_v23 = vld [vmem:[%s2592_s5 + $0xa0] sm:$0xff] (!%p377_p3)  ;;  %v550_v15 = vsub.s32 (!%p377_p3), 0, %v549_v61 }
   0xe   : > { %1847 = vmatprep.subr.bf16.mxu1 (!%p377_p3), %v1846_v8  ;;  %v988_v20 = vld [vmem:[%s2592_s5 + $0x110] sm:$0xff] (!%p377_p3)  ;;  %v1850_v21 = vpack.c.bf16 (!%p377_p3), %v1005_v19, %v1004_v18  ;;  %v989_v22 = vld [vmem:[%s2592_s5 + $0x118] sm:$0xff] (!%p377_p3)  ;;  %v975_v24 = vld [vmem:[%s2592_s5 + $0xa8] sm:$0xff] (!%p377_p3)  ;;  %1819 = vmatprep.subr.bf16.mxu0 (!%p377_p3), %v1818_v16  ;;  %v570_v16 = vsub.s32 (!%p377_p3), 1, %v549_v61 }
   0xf   : > { %1849 = vmatpush3.bf16.msra.mxu1 (!%p377_p3), %v1848_v12  ;;  %v1852_v25 = vpack.c.bf16 (!%p377_p3), %v989_v22, %v988_v20  ;;  %v1822_v26 = vpack.c.bf16 (!%p377_p3), %v975_v24, %v974_v23  ;;  %v958_v27 = vld [vmem:[%s2592_s5 + $0x20] sm:$0xff] (!%p377_p3)  ;;  %v959_v28 = vld [vmem:[%s2592_s5 + $0x28] sm:$0xff] (!%p377_p3)  ;;  %v976_v35 = vld [vmem:[%s2592_s5 + $0xb0] sm:$0xff] (!%p377_p3) }
  0x10   : > { %s2609_s10 = smov (!%p465_p5, %s1944_s10), 1  ;;  %v1006_v29 = vld [vmem:[%s2592_s5 + $0x1a0] sm:$0xff]  ;;  %1851 = vmatprep.subr.bf16.mxu1 %v1850_v21  ;;  %v1007_v30 = vld [vmem:[%s2592_s5 + $0x1a8] sm:$0xff]  ;;  %v1824_v33 = vpack.c.bf16 %v959_v28, %v958_v27  ;;  %v977_v36 = vld [vmem:[%s2592_s5 + $0xb8] sm:$0xff]  ;;  %s2611_s28 = smov (!%p2091_p6, %s1631_s28), 31 }
  0x11   : > { %v990_v31 = vld [vmem:[%s2592_s5 + $0x120] sm:$0xff]  ;;  %v991_v32 = vld [vmem:[%s2592_s5 + $0x128] sm:$0xff]  ;;  %1821 = vmatpush3.bf16.msra.mxu0 %v1820_v17  ;;  %v1854_v34 = vpack.c.bf16 %v1007_v30, %v1006_v29  ;;  %v960_v37 = vld [vmem:[%s2592_s5 + $0x30] sm:$0xff]  ;;  %v1826_v39 = vpack.c.bf16 %v977_v36, %v976_v35  ;;  %s1632_s27 = sshll.u32 %s2609_s10, 5  ;;  %s2613_s30 = smov (!%p519_p7, %s1940_s30), 1 }
  0x12   : > { %1823 = vmatprep.subr.bf16.mxu0 %v1822_v26  ;;  %v1856_v38 = vpack.c.bf16 %v991_v32, %v990_v31  ;;  %v961_v40 = vld [vmem:[%s2592_s5 + $0x38] sm:$0xff]  ;;  %v1008_v41 = vld [vmem:[%s2592_s5 + $0x1b0] sm:$0xff]  ;;  %v978_v46 = vld [vmem:[%s2592_s5 + $0xc0] sm:$0xff]  ;;  %s470_s20 = sadd.s32 %s1632_s27, %s2611_s28 }
  0x13   : > { %1853 = vmatpush3.bf16.msra.mxu1 %v1852_v25  ;;  %v1009_v42 = vld [vmem:[%s2592_s5 + $0x1b8] sm:$0xff]  ;;  %v992_v44 = vld [vmem:[%s2592_s5 + $0x130] sm:$0xff]  ;;  %v979_v48 = vld [vmem:[%s2592_s5 + $0xc8] sm:$0xff]  ;;  %v1828_v49 = vpack.c.bf16 %v961_v40, %v960_v37  ;;  %s2198_s28 = sshll.u32 %s470_s20, 3 }
  0x14   : > { %1855 = vmatprep.subr.bf16.mxu1 %v1854_v34  ;;  %v1858_v43 = vpack.c.bf16 %v1009_v42, %v1008_v41  ;;  %v993_v45 = vld [vmem:[%s2592_s5 + $0x138] sm:$0xff]  ;;  %v1010_v50 = vld [vmem:[%s2592_s5 + $0x1c0] sm:$0xff]  ;;  %v1011_v51 = vld [vmem:[%s2592_s5 + $0x1c8] sm:$0xff]  ;;  %v1830_v53 = vpack.c.bf16 %v979_v48, %v978_v46  ;;  %s2237_s16 = scalar_lea.vmem %s2588_s1, %s2198_s28  ;;  %s2258_s25 = scalar_lea.vmem %s2587_s0, %s2198_s28 }
  0x15   : > { %1825 = vmatpush3.bf16.msra.mxu0 %v1824_v33  ;;  %v1860_v52 = vpack.c.bf16 %v993_v45, %v992_v44  ;;  %v962_v54 = vld [vmem:[%s2592_s5 + $0x40] sm:$0xff]  ;;  %v963_v55 = vld [vmem:[%s2592_s5 + $0x48] sm:$0xff]  ;;  %v1862_v57 = vpack.c.bf16 %v1011_v51, %v1010_v50  ;;  %v980_v59 = vld [vmem:[%s2592_s5 + $0xd0] sm:$0xff]  ;;  %s2269_s18 = scalar_lea.vmem %s2590_s3, %s2198_s28  ;;  %s2275_s22 = scalar_lea.vmem %s2589_s2, %s2198_s28 }
  0x16   : > { %1827 = vmatprep.subr.bf16.mxu0 %v1826_v39  ;;  %v994_v56 = vld [vmem:[%s2592_s5 + $0x140] sm:$0xff]  ;;  %v995_v58 = vld [vmem:[%s2592_s5 + $0x148] sm:$0xff]  ;;  %v981_v60 = vld [vmem:[%s2592_s5 + $0xd8] sm:$0xff]  ;;  %v1832_v2 = vpack.c.bf16 %v963_v55, %v962_v54  ;;  %s2530_s23 = scalar_lea.vmem %s2594_s7, %s2198_s28  ;;  %s1646_s28 = sshll.u32 %s2609_s10, 1 }
  0x17   : > { %1857 = vmatpush3.bf16.msra.mxu1 %v1856_v38  ;;  %v964_v62 = vld [vmem:[%s2592_s5 + $0x50] sm:$0xff]  ;;  %v965_v63 = vld [vmem:[%s2592_s5 + $0x58] sm:$0xff]  ;;  %v982_v5 = vld [vmem:[%s2592_s5 + $0xe0] sm:$0xff]  ;;  %v1864_v6 = vpack.c.bf16 %v995_v58, %v994_v56  ;;  %v1834_v7 = vpack.c.bf16 %v981_v60, %v980_v59  ;;  %s522_s24 = sadd.s32 %s1646_s28, %s2613_s30 }
  0x18   : > { %1859 = vmatprep.subr.bf16.mxu1 %v1858_v43  ;;  %v1012_v0 = vld [vmem:[%s2592_s5 + $0x1d0] sm:$0xff]  ;;  %v1013_v1 = vld [vmem:[%s2592_s5 + $0x1d8] sm:$0xff]  ;;  %v983_v8 = vld [vmem:[%s2592_s5 + $0xe8] sm:$0xff]  ;;  %v1836_v20 = vpack.c.bf16 %v965_v63, %v964_v62  ;;  %s523_s20 = scalar_lea.vmem %s2595_s8, %s522_s24  ;;  %s530_s21 = scalar_lea.vmem %s2596_s9, %s522_s24 }
  0x19   : > { %1829 = vmatpush3.bf16.msra.mxu0 %v1828_v49  ;;  %v996_v3 = vld [vmem:[%s2592_s5 + $0x150] sm:$0xff]  ;;  %v997_v4 = vld [vmem:[%s2592_s5 + $0x158] sm:$0xff]  ;;  %v2215_v9 = vld [vmem:[%s2592_s5 + $0x60] sm:$0xff]  ;;  %v1866_v11 = vpack.c.bf16 %v1013_v1, %v1012_v0  ;;  %v1838_v23 = vpack.c.bf16 %v983_v8, %v982_v5 }
  0x1a   : > { %1831 = vmatprep.subr.bf16.mxu0 %v1830_v53  ;;  %v2220_v10 = vld [vmem:[%s2592_s5 + $0x68] sm:$0xff]  ;;  %v1014_v12 = vld [vmem:[%s2592_s5 + $0x1e0] sm:$0xff]  ;;  %v2247_v18 = vld [vmem:[%s2592_s5 + $0xf0] sm:$0xff]  ;;  %v1868_v21 = vpack.c.bf16 %v997_v4, %v996_v3 }
  0x1b   : > { %1861 = vmatpush3.bf16.msra.mxu1 %v1860_v52  ;;  %v1015_v13 = vld [vmem:[%s2592_s5 + $0x1e8] sm:$0xff]  ;;  %v2231_v14 = vld [vmem:[%s2592_s5 + $0x160] sm:$0xff]  ;;  %v2252_v19 = vld [vmem:[%s2592_s5 + $0xf8] sm:$0xff]  ;;  %v1840_v24 = vpack.c.bf16 %v2220_v10, %v2215_v9 }
  0x1c   : > { %1863 = vmatprep.subr.bf16.mxu1 %v1862_v57  ;;  %v2242_v17 = vld [vmem:[%s2592_s5 + $0x168] sm:$0xff]  ;;  %v2263_v22 = vld [vmem:[%s2592_s5 + $0x1f0] sm:$0xff]  ;;  %v1870_v25 = vpack.c.bf16 %v1015_v13, %v1014_v12  ;;  %v1017_v26 = vld [vmem:[%s2592_s5 + $0x1f8] sm:$0xff]  ;;  %v1842_v30 = vpack.c.bf16 %v2252_v19, %v2247_v18 }
  0x1d   : > { %1833 = vmatpush3.bf16.msra.mxu0 %v1832_v2  ;;  %v1648_v27 = vld [vmem:[%s2591_s4 + $0x2] sm:$0x3]  ;;  %v1872_v29 = vpack.c.bf16 %v2242_v17, %v2231_v14  ;;  %v531_v33 = vld [vmem:[%s2591_s4] sm:$0x3]  ;;  %v1650_v35 = vld [vmem:[%s2591_s4 + $0x6] sm:$0x3]  ;;  %v1874_v43 = vpack.c.bf16 %v1017_v26, %v2263_v22 }
  0x1e   : > { %1835 = vmatprep.subr.bf16.mxu0 %v1834_v7  ;;  %v622_v28 = vld [vmem:[%s2237_s16] sm:$0xff]  ;;  %v2290_v31 = vrot.slane %v1648_v27, %v550_v15  ;;  %v2292_v32 = vrot.slane %v1648_v27, %v570_v16  ;;  %v2301_v36 = vrot.slane %v531_v33, %v550_v15  ;;  %v2303_v37 = vrot.slane %v531_v33, %v570_v16  ;;  %v623_v47 = vld [vmem:[%s2237_s16 + $0x8] sm:$0xff]  ;;  %v968_v50 = vld [vmem:[%s2592_s5 + $0x70] sm:$0xff] }
  0x1f   : > { %1865 = vmatpush3.bf16.msra.mxu1 %v1864_v6  ;;  %v532_v34 = vld [vmem:[%s2258_s25] sm:$0xff]  ;;  %v2306_v39 = vrot.slane %v1650_v35, %v550_v15  ;;  %v2308_v40 = vrot.slane %v1650_v35, %v570_v16  ;;  %v533_v48 = vld [vmem:[%s2258_s25 + $0x8] sm:$0xff]  ;;  %v969_v51 = vld [vmem:[%s2592_s5 + $0x78] sm:$0xff] }
  0x20   : > { %1867 = vmatprep.subr.bf16.mxu1 %v1866_v11  ;;  %v802_v38 = vld [vmem:[%s2269_s18] sm:$0xff]  ;;  %v642_v44 = vmul.f32 %v2290_v31, %v622_v28  ;;  %v803_v49 = vld [vmem:[%s2269_s18 + $0x8] sm:$0xff]  ;;  %v552_v52 = vmul.f32 %v2301_v36, %v532_v34  ;;  %v643_v54 = vmul.f32 %v2290_v31, %v623_v47  ;;  %v1000_v56 = vld [vmem:[%s2592_s5 + $0x170] sm:$0xff]  ;;  %v553_v60 = vmul.f32 %v2301_v36, %v533_v48 }
  0x21   : > { %v1649_v41 = vld [vmem:[%s2591_s4 + $0x4] sm:$0x3]  ;;  %1837 = vmatpush3.bf16.msra.mxu0 %v1836_v20  ;;  %v822_v53 = vmul.f32 %v2306_v39, %v802_v38  ;;  %v713_v55 = vld [vmem:[%s2275_s22 + $0x8] sm:$0xff]  ;;  %v1001_v57 = vld [vmem:[%s2592_s5 + $0x178] sm:$0xff]  ;;  %v823_v61 = vmul.f32 %v2306_v39, %v803_v49  ;;  %v1844_v3 = vpack.c.bf16 %v969_v51, %v968_v50 }
  0x22   : > { %v712_v42 = vld [vmem:[%s2275_s22] sm:$0xff]  ;;  %v2316_v45 = vrot.slane %v1649_v41, %v550_v15  ;;  %v2318_v46 = vrot.slane %v1649_v41, %v570_v16  ;;  %1839 = vmatprep.subr.bf16.mxu0 %v1838_v23  ;;  %v662_v58 = vadd.f32 %v2292_v32, %v642_v44  ;;  %v572_v62 = vadd.f32 %v2303_v37, %v552_v52  ;;  %v624_v2 = vld [vmem:[%s2237_s16 + $0x10] sm:$0xff]  ;;  %v625_v12 = vld [vmem:[%s2237_s16 + $0x18] sm:$0xff] }
  0x23   : > { %1869 = vmatpush3.bf16.msra.mxu1 %v1868_v21  ;;  %v842_v63 = vadd.f32 %v2308_v40, %v822_v53  ;;  %v663_v0 = vadd.f32 %v2292_v32, %v643_v54  ;;  %v534_v6 = vld [vmem:[%s2258_s25 + $0x10] sm:$0xff]  ;;  %v1876_v8 = vpack.c.bf16 %v1001_v57, %v1000_v56  ;;  %v843_v10 = vadd.f32 %v2308_v40, %v823_v61  ;;  %v805_v16 = vld [vmem:[%s2269_s18 + $0x18] sm:$0xff]  ;;  %v806_v34 = vld [vmem:[%s2269_s18 + $0x20] sm:$0xff] }
  0x24   : > { %1871 = vmatprep.subr.bf16.mxu1 %v1870_v25  ;;  %v732_v59 = vmul.f32 %v2316_v45, %v712_v42  ;;  %v733_v1 = vmul.f32 %v2316_v45, %v713_v55  ;;  %v678_v4 = vmax.f32 %v662_v58, 0.0  ;;  %v804_v7 = vld [vmem:[%s2269_s18 + $0x10] sm:$0xff]  ;;  %v588_v13 = vmax.f32 %v572_v62, 0.0  ;;  %v535_v21 = vld [vmem:[%s2258_s25 + $0x18] sm:$0xff]  ;;  %v536_v49 = vld [vmem:[%s2258_s25 + $0x20] sm:$0xff] }
  0x25   : > { %1841 = vmatpush3.bf16.msra.mxu0 %v1840_v24  ;;  %v858_v9 = vmax.f32 %v842_v63, 0.0  ;;  %v714_v11 = vld [vmem:[%s2275_s22 + $0x10] sm:$0xff]  ;;  %v573_v14 = vadd.f32 %v2303_v37, %v553_v60  ;;  %v644_v15 = vmul.f32 %v2290_v31, %v624_v2  ;;  %v679_v17 = vmax.f32 %v663_v0, 0.0  ;;  %v715_v26 = vld [vmem:[%s2275_s22 + $0x18] sm:$0xff]  ;;  %v716_v50 = vld [vmem:[%s2275_s22 + $0x20] sm:$0xff] }
  0x26   : > { %v752_v5 = vadd.f32 %v2318_v46, %v732_v59  ;;  %1843 = vmatprep.subr.bf16.mxu0 %v1842_v30  ;;  %1089 = vmatprep.mubr.f32.mxu0 %v678_v4  ;;  %v753_v18 = vadd.f32 %v2318_v46, %v733_v1  ;;  %v554_v19 = vmul.f32 %v2301_v36, %v534_v6  ;;  %v859_v27 = vmax.f32 %v843_v10, 0.0  ;;  %v626_v30 = vld [vmem:[%s2237_s16 + $0x20] sm:$0xff]  ;;  %v627_v54 = vld [vmem:[%s2237_s16 + $0x28] sm:$0xff]  ;;  %v628_v6 = vld [vmem:[%s2237_s16 + $0x30] sm:$0xff] }
  0x27   : > { %1873 = vmatpush3.bf16.msra.mxu1 %v1872_v29  ;;  %1234 = vmatprep.mubr.f32.mxu1 %v858_v9  ;;  %v824_v20 = vmul.f32 %v2306_v39, %v804_v7  ;;  %v664_v23 = vadd.f32 %v2292_v32, %v644_v15  ;;  %v734_v24 = vmul.f32 %v2316_v45, %v714_v11  ;;  %v589_v35 = vmax.f32 %v573_v14, 0.0  ;;  %v807_v56 = vld [vmem:[%s2269_s18 + $0x28] sm:$0xff] }
  0x28   : > { %1875 = vmatprep.subr.bf16.mxu1 %v1874_v43  ;;  %v768_v22 = vmax.f32 %v752_v5, 0.0  ;;  %v645_v25 = vmul.f32 %v2290_v31, %v625_v12  ;;  %v825_v29 = vmul.f32 %v2306_v39, %v805_v16  ;;  %v555_v33 = vmul.f32 %v2301_v36, %v535_v21  ;;  %v537_v61 = vld [vmem:[%s2258_s25 + $0x28] sm:$0xff] }
  0x29   : > { %1845 = vmatpush3.bf16.msra.mxu0 %v1844_v3  ;;  %v844_v28 = vadd.f32 %v2308_v40, %v824_v20  ;;  %v769_v38 = vmax.f32 %v753_v18, 0.0  ;;  %v574_v41 = vadd.f32 %v2303_v37, %v554_v19  ;;  %v735_v42 = vmul.f32 %v2316_v45, %v715_v26  ;;  %v717_v5 = vld [vmem:[%s2275_s22 + $0x28] sm:$0xff]  ;;  %v718_v18 = vld [vmem:[%s2275_s22 + $0x30] sm:$0xff] }
  0x2a   : > { %v680_v43 = vmax.f32 %v664_v23, 0.0  ;;  %v754_v44 = vadd.f32 %v2318_v46, %v734_v24  ;;  %v665_v47 = vadd.f32 %v2292_v32, %v645_v25  ;;  %v646_v48 = vmul.f32 %v2290_v31, %v626_v30  ;;  %v809_v24 = vld [vmem:[%s2269_s18 + $0x38] sm:$0xff] }
  0x2b   : > { %1877 = vmatpush3.bf16.msra.mxu1 %v1876_v8  ;;  %v860_v51 = vmax.f32 %v844_v28, 0.0  ;;  %v845_v52 = vadd.f32 %v2308_v40, %v825_v29  ;;  %v826_v53 = vmul.f32 %v2306_v39, %v806_v34  ;;  %v575_v55 = vadd.f32 %v2303_v37, %v555_v33  ;;  %v808_v8 = vld [vmem:[%s2269_s18 + $0x30] sm:$0xff]  ;;  %v539_v29 = vld [vmem:[%s2258_s25 + $0x38] sm:$0xff] }
  0x2c   : > { %1090 = vmatmul.mubr.f32.vlgmr.msra.gmra.mrb[0].mxu0 %v588_v13  ;;  %v590_v57 = vmax.f32 %v574_v41, 0.0  ;;  %v755_v58 = vadd.f32 %v2318_v46, %v735_v42  ;;  %v556_v59 = vmul.f32 %v2301_v36, %v536_v49  ;;  %v736_v60 = vmul.f32 %v2316_v45, %v716_v50 }
  0x2d   : > { %1094 = vmatprep.mubr.f32.mxu0 %v679_v17  ;;  %v770_v62 = vmax.f32 %v754_v44, 0.0  ;;  %v681_v63 = vmax.f32 %v665_v47, 0.0  ;;  %v666_v0 = vadd.f32 %v2292_v32, %v646_v48  ;;  %v647_v1 = vmul.f32 %v2290_v31, %v627_v54  ;;  %v538_v17 = vld [vmem:[%s2258_s25 + $0x30] sm:$0xff]  ;;  %v630_v44 = vld [vmem:[%s2237_s16 + $0x40] sm:$0xff] }
  0x2e   : > { %1235 = vmatmul.mubr.f32.vlgmr.msra.gmra.mrb[0].mxu1 %v768_v22  ;;  %v861_v2 = vmax.f32 %v845_v52, 0.0  ;;  %v846_v3 = vadd.f32 %v2308_v40, %v826_v53  ;;  %v827_v4 = vmul.f32 %v2306_v39, %v807_v56  ;;  %v557_v7 = vmul.f32 %v2301_v36, %v537_v61  ;;  %v629_v22 = vld [vmem:[%s2237_s16 + $0x38] sm:$0xff]  ;;  %v810_v48 = vld [vmem:[%s2269_s18 + $0x40] sm:$0xff] }
  0x2f   : > { %1239 = vmatprep.mubr.f32.mxu1 %v859_v27  ;;  %v591_v9 = vmax.f32 %v575_v55, 0.0  ;;  %v771_v10 = vmax.f32 %v755_v58, 0.0  ;;  %v576_v11 = vadd.f32 %v2303_v37, %v556_v59  ;;  %v756_v12 = vadd.f32 %v2318_v46, %v736_v60  ;;  %v720_v61 = vld [vmem:[%s2275_s22 + $0x40] sm:$0xff] }
  0x30   : > { %1095 = vmatmul.mubr.f32.gmra.mrb[2].mxu0 %v589_v35  ;;  %v682_v13 = vmax.f32 %v666_v0, 0.0  ;;  %v667_v14 = vadd.f32 %v2292_v32, %v647_v1  ;;  %v737_v15 = vmul.f32 %v2316_v45, %v717_v5  ;;  %v648_v16 = vmul.f32 %v2290_v31, %v628_v6  ;;  %v811_v0 = vld [vmem:[%s2269_s18 + $0x48] sm:$0xff] }
  0x31   : > { %1099 = vmatprep.mubr.f32.mxu0 %v680_v43  ;;  %v862_v19 = vmax.f32 %v846_v3, 0.0  ;;  %v847_v20 = vadd.f32 %v2308_v40, %v827_v4  ;;  %v828_v21 = vmul.f32 %v2306_v39, %v808_v8  ;;  %v577_v23 = vadd.f32 %v2303_v37, %v557_v7  ;;  %v541_v5 = vld [vmem:[%s2258_s25 + $0x48] sm:$0xff] }
  0x32   : > { %1240 = vmatmul.mubr.f32.gmra.mrb[2].mxu1 %v769_v38  ;;  %v592_v25 = vmax.f32 %v576_v11, 0.0  ;;  %v772_v26 = vmax.f32 %v756_v12, 0.0  ;;  %v558_v27 = vmul.f32 %v2301_v36, %v538_v17  ;;  %v738_v28 = vmul.f32 %v2316_v45, %v718_v18  ;;  %v719_v38 = vld [vmem:[%s2275_s22 + $0x38] sm:$0xff] }
  0x33   : > { %1244 = vmatprep.mubr.f32.mxu1 %v860_v51  ;;  %v683_v30 = vmax.f32 %v667_v14, 0.0  ;;  %v757_v33 = vadd.f32 %v2318_v46, %v737_v15  ;;  %v668_v34 = vadd.f32 %v2292_v32, %v648_v16  ;;  %v649_v35 = vmul.f32 %v2290_v31, %v629_v22  ;;  %v632_v14 = vld [vmem:[%s2237_s16 + $0x50] sm:$0xff] }
  0x34   : > { %1100 = vmatmul.mubr.f32.gmra.mrb[4].mxu0 %v590_v57  ;;  %v863_v41 = vmax.f32 %v847_v20, 0.0  ;;  %v848_v42 = vadd.f32 %v2308_v40, %v828_v21  ;;  %v829_v43 = vmul.f32 %v2306_v39, %v809_v24  ;;  %v559_v47 = vmul.f32 %v2301_v36, %v539_v29  ;;  %v540_v57 = vld [vmem:[%s2258_s25 + $0x40] sm:$0xff]  ;;  %v812_v16 = vld [vmem:[%s2269_s18 + $0x50] sm:$0xff] }
  0x35   : > { %1104 = vmatprep.mubr.f32.mxu0 %v681_v63  ;;  %v593_v49 = vmax.f32 %v577_v23, 0.0  ;;  %v578_v50 = vadd.f32 %v2303_v37, %v558_v27  ;;  %v758_v51 = vadd.f32 %v2318_v46, %v738_v28  ;;  %v739_v52 = vmul.f32 %v2316_v45, %v719_v38 }
  0x36   : > { %1245 = vmatmul.mubr.f32.gmra.mrb[4].mxu1 %v770_v62  ;;  %v773_v53 = vmax.f32 %v757_v33, 0.0  ;;  %v684_v54 = vmax.f32 %v668_v34, 0.0  ;;  %v669_v55 = vadd.f32 %v2292_v32, %v649_v35  ;;  %v650_v56 = vmul.f32 %v2290_v31, %v630_v44  ;;  %v631_v62 = vld [vmem:[%s2237_s16 + $0x48] sm:$0xff]  ;;  %v813_v34 = vld [vmem:[%s2269_s18 + $0x58] sm:$0xff] }
  0x37   : > { %1249 = vmatprep.mubr.f32.mxu1 %v861_v2  ;;  %v864_v58 = vmax.f32 %v848_v42, 0.0  ;;  %v849_v59 = vadd.f32 %v2308_v40, %v829_v43  ;;  %v830_v60 = vmul.f32 %v2306_v39, %v810_v48  ;;  %v579_v63 = vadd.f32 %v2303_v37, %v559_v47  ;;  %v543_v43 = vld [vmem:[%s2258_s25 + $0x58] sm:$0xff] }
  0x38   : > { %1105 = vmatmul.mubr.f32.gmra.mrb[6].mxu0 %v591_v9  ;;  %v594_v1 = vmax.f32 %v578_v50, 0.0  ;;  %v774_v2 = vmax.f32 %v758_v51, 0.0  ;;  %v759_v3 = vadd.f32 %v2318_v46, %v739_v52  ;;  %v560_v4 = vmul.f32 %v2301_v36, %v540_v57 }
  0x39   : > { %1109 = vmatprep.mubr.f32.mxu0 %v682_v13  ;;  %v685_v6 = vmax.f32 %v669_v55, 0.0  ;;  %v670_v7 = vadd.f32 %v2292_v32, %v650_v56  ;;  %v740_v8 = vmul.f32 %v2316_v45, %v720_v61  ;;  %v651_v9 = vmul.f32 %v2290_v31, %v631_v62  ;;  %v814_v56 = vld [vmem:[%s2269_s18 + $0x60] sm:$0xff] }
  0x3a   : > { %1250 = vmatmul.mubr.f32.gmra.mrb[6].mxu1 %v771_v10  ;;  %v721_v10 = vld [vmem:[%s2275_s22 + $0x48] sm:$0xff]  ;;  %v865_v11 = vmax.f32 %v849_v59, 0.0  ;;  %v850_v12 = vadd.f32 %v2308_v40, %v830_v60  ;;  %v831_v13 = vmul.f32 %v2306_v39, %v811_v0  ;;  %v561_v15 = vmul.f32 %v2301_v36, %v541_v5 }
  0x3b   : > { %1254 = vmatprep.mubr.f32.mxu1 %v862_v19  ;;  %v595_v17 = vmax.f32 %v579_v63, 0.0  ;;  %v775_v18 = vmax.f32 %v759_v3, 0.0  ;;  %v580_v19 = vadd.f32 %v2303_v37, %v560_v4  ;;  %v741_v20 = vmul.f32 %v2316_v45, %v721_v10 }
  0x3c   : > { %1110 = vmatmul.mubr.f32.gmra.mrb[8].mxu0 %v592_v25  ;;  %v686_v21 = vmax.f32 %v670_v7, 0.0  ;;  %v760_v22 = vadd.f32 %v2318_v46, %v740_v8  ;;  %v671_v23 = vadd.f32 %v2292_v32, %v651_v9  ;;  %v652_v24 = vmul.f32 %v2290_v31, %v632_v14  ;;  %v542_v25 = vld [vmem:[%s2258_s25 + $0x50] sm:$0xff]  ;;  %v815_v8 = vld [vmem:[%s2269_s18 + $0x68] sm:$0xff] }
  0x3d   : > { %1114 = vmatprep.mubr.f32.mxu0 %v683_v30  ;;  %v866_v27 = vmax.f32 %v850_v12, 0.0  ;;  %v851_v28 = vadd.f32 %v2308_v40, %v831_v13  ;;  %v832_v29 = vmul.f32 %v2306_v39, %v812_v16  ;;  %v633_v30 = vld [vmem:[%s2237_s16 + $0x58] sm:$0xff]  ;;  %v581_v33 = vadd.f32 %v2303_v37, %v561_v15  ;;  %v545_v13 = vld [vmem:[%s2258_s25 + $0x68] sm:$0xff] }
  0x3e   : > { %1255 = vmatmul.mubr.f32.gmra.mrb[8].mxu1 %v772_v26  ;;  %v722_v26 = vld [vmem:[%s2275_s22 + $0x50] sm:$0xff]  ;;  %v596_v35 = vmax.f32 %v580_v19, 0.0  ;;  %v761_v38 = vadd.f32 %v2318_v46, %v741_v20  ;;  %v776_v44 = vmax.f32 %v760_v22, 0.0  ;;  %v687_v47 = vmax.f32 %v671_v23, 0.0 }
  0x3f   : > { %1259 = vmatprep.mubr.f32.mxu1 %v863_v41  ;;  %v562_v41 = vmul.f32 %v2301_v36, %v542_v25  ;;  %v742_v42 = vmul.f32 %v2316_v45, %v722_v26  ;;  %v672_v48 = vadd.f32 %v2292_v32, %v652_v24  ;;  %v867_v50 = vmax.f32 %v851_v28, 0.0  ;;  %v636_v22 = vld [vmem:[%s2237_s16 + $0x70] sm:$0xff] }
  0x40   : > { %1115 = vmatmul.mubr.f32.gmra.mrb[10].mxu0 %v593_v49  ;;  %v653_v49 = vmul.f32 %v2290_v31, %v633_v30  ;;  %v852_v51 = vadd.f32 %v2308_v40, %v832_v29  ;;  %v833_v52 = vmul.f32 %v2306_v39, %v813_v34  ;;  %v563_v55 = vmul.f32 %v2301_v36, %v543_v43  ;;  %v816_v24 = vld [vmem:[%s2269_s18 + $0x70] sm:$0xff] }
  0x41   : > { %1119 = vmatprep.mubr.f32.mxu0 %v684_v54  ;;  %v634_v54 = vld [vmem:[%s2237_s16 + $0x60] sm:$0xff]  ;;  %v597_v57 = vmax.f32 %v581_v33, 0.0  ;;  %v582_v59 = vadd.f32 %v2303_v37, %v562_v41  ;;  %v762_v60 = vadd.f32 %v2318_v46, %v742_v42  ;;  %v688_v61 = vmax.f32 %v672_v48, 0.0  ;;  %v726_v43 = vld [vmem:[%s2275_s22 + $0x70] sm:$0xff]  ;;  %v817_v48 = vld [vmem:[%s2269_s18 + $0x78] sm:$0xff]  ;;  %s506_s18 = scalar_lea.vmem %s2593_s6, %s2609_s10 }
  0x42   : > { %1260 = vmatmul.mubr.f32.gmra.mrb[10].mxu1 %v773_v53  ;;  %v723_v53 = vld [vmem:[%s2275_s22 + $0x58] sm:$0xff]  ;;  %v673_v62 = vadd.f32 %v2292_v32, %v653_v49  ;;  %v654_v0 = vmul.f32 %v2290_v31, %v634_v54  ;;  %v868_v3 = vmax.f32 %v852_v51, 0.0  ;;  %v853_v4 = vadd.f32 %v2308_v40, %v833_v52 }
  0x43   : > { %1264 = vmatprep.mubr.f32.mxu1 %v864_v58  ;;  %v777_v58 = vmax.f32 %v761_v38, 0.0  ;;  %v743_v63 = vmul.f32 %v2316_v45, %v723_v53  ;;  %v834_v5 = vmul.f32 %v2306_v39, %v814_v56  ;;  %v583_v7 = vadd.f32 %v2303_v37, %v563_v55 }
  0x44   : > { %1120 = vmatmul.mubr.f32.gmra.mrb[12].mxu0 %v594_v1  ;;  %v544_v1 = vld [vmem:[%s2258_s25 + $0x60] sm:$0xff]  ;;  %v598_v9 = vmax.f32 %v582_v59, 0.0  ;;  %v778_v10 = vmax.f32 %v762_v60, 0.0  ;;  %v689_v14 = vmax.f32 %v673_v62, 0.0  ;;  %v674_v16 = vadd.f32 %v2292_v32, %v654_v0 }
  0x45   : > { %1124 = vmatprep.mubr.f32.mxu0 %v685_v6  ;;  %v635_v6 = vld [vmem:[%s2237_s16 + $0x68] sm:$0xff]  ;;  %v763_v15 = vadd.f32 %v2318_v46, %v743_v63  ;;  %v869_v19 = vmax.f32 %v853_v4, 0.0  ;;  %v854_v20 = vadd.f32 %v2308_v40, %v834_v5  ;;  %v565_v23 = vmul.f32 %v2301_v36, %v545_v13 }
  0x46   : > { %1265 = vmatmul.mubr.f32.gmra.mrb[12].mxu1 %v774_v2  ;;  %v724_v2 = vld [vmem:[%s2275_s22 + $0x60] sm:$0xff]  ;;  %v599_v25 = vmax.f32 %v583_v7, 0.0  ;;  %v690_v30 = vmax.f32 %v674_v16, 0.0  ;;  %v656_v34 = vmul.f32 %v2290_v31, %v636_v22  ;;  %v836_v42 = vmul.f32 %v2306_v39, %v816_v24 }
  0x47   : > { %1269 = vmatprep.mubr.f32.mxu1 %v865_v11  ;;  %v564_v11 = vmul.f32 %v2301_v36, %v544_v1  ;;  %v744_v12 = vmul.f32 %v2316_v45, %v724_v2  ;;  %v779_v29 = vmax.f32 %v763_v15, 0.0  ;;  %v870_v38 = vmax.f32 %v854_v20, 0.0 }
  0x48   : > { %1125 = vmatmul.mubr.f32.gmra.mrb[14].mxu0 %v595_v17  ;;  %v655_v17 = vmul.f32 %v2290_v31, %v635_v6  ;;  %v676_v54 = vadd.f32 %v2292_v32, %v656_v34  ;;  %v746_v55 = vmul.f32 %v2316_v45, %v726_v43  ;;  %v856_v59 = vadd.f32 %v2308_v40, %v836_v42 }
  0x49   : > { %1129 = vmatprep.mubr.f32.mxu0 %v686_v21  ;;  %v835_v21 = vmul.f32 %v2306_v39, %v815_v8  ;;  %v584_v26 = vadd.f32 %v2303_v37, %v564_v11  ;;  %v837_v60 = vmul.f32 %v2306_v39, %v817_v48 }
  0x4a   : > { %1270 = vmatmul.mubr.f32.gmra.mrb[14].mxu1 %v775_v18  ;;  %v725_v18 = vld [vmem:[%s2275_s22 + $0x68] sm:$0xff]  ;;  %v675_v33 = vadd.f32 %v2292_v32, %v655_v17  ;;  %v692_v2 = vmax.f32 %v676_v54, 0.0  ;;  %v872_v5 = vmax.f32 %v856_v59, 0.0 }
  0x4b   : > { %1274 = vmatprep.mubr.f32.mxu1 %v866_v27  ;;  %v764_v27 = vadd.f32 %v2318_v46, %v744_v12  ;;  %v745_v28 = vmul.f32 %v2316_v45, %v725_v18  ;;  %v855_v41 = vadd.f32 %v2308_v40, %v835_v21  ;;  %v600_v49 = vmax.f32 %v584_v26, 0.0 }
  0x4c   : > { %1130 = vmatmul.mubr.f32.gmra.mrb[16].mxu0 %v596_v35  ;;  %v546_v35 = vld [vmem:[%s2258_s25 + $0x70] sm:$0xff]  ;;  %v691_v53 = vmax.f32 %v675_v33, 0.0  ;;  %v857_v39 = vadd.f32 %v2308_v40, %v837_v60  ;;  %v2523_v40 = vld [vmem:[%s506_s18] ss:$0 sm:$0xff] }
  0x4d   : > { %1134 = vmatprep.mubr.f32.mxu0 %v687_v47  ;;  %v585_v47 = vadd.f32 %v2303_v37, %v565_v23  ;;  %v765_v51 = vadd.f32 %v2318_v46, %v745_v28  ;;  %v566_v52 = vmul.f32 %v2301_v36, %v546_v35 }
  0x4e   : > { %1275 = vmatmul.mubr.f32.gmra.mrb[16].mxu1 %v776_v44  ;;  %v637_v44 = vld [vmem:[%s2237_s16 + $0x78] sm:$0xff] }
  0x4f   : > { %1279 = vmatprep.mubr.f32.mxu1 %v867_v50  ;;  %v780_v50 = vmax.f32 %v764_v27, 0.0  ;;  %v657_v56 = vmul.f32 %v2290_v31, %v637_v44  ;;  %v601_v62 = vmax.f32 %v585_v47, 0.0  ;;  %v781_v63 = vmax.f32 %v765_v51, 0.0 }
  0x50   : > { %1135 = vmatmul.mubr.f32.gmra.mrb[18].mxu0 %v597_v57  ;;  %v547_v57 = vld [vmem:[%s2258_s25 + $0x78] sm:$0xff]  ;;  %v586_v0 = vadd.f32 %v2303_v37, %v566_v52  ;;  %v766_v31 = vadd.f32 %v2318_v46, %v746_v55 }
  0x51   : > { %1139 = vmatprep.mubr.f32.mxu0 %v688_v61  ;;  %v727_v61 = vld [vmem:[%s2275_s22 + $0x78] sm:$0xff]  ;;  %v567_v1 = vmul.f32 %v2301_v36, %v547_v57 }
  0x52   : > { %1280 = vmatmul.mubr.f32.gmra.mrb[18].mxu1 %v777_v58  ;;  %v871_v58 = vmax.f32 %v855_v41, 0.0  ;;  %v747_v4 = vmul.f32 %v2316_v45, %v727_v61  ;;  %v602_v6 = vmax.f32 %v586_v0, 0.0  ;;  %v782_v36 = vmax.f32 %v766_v31, 0.0 }
  0x53   : > { %1284 = vmatprep.mubr.f32.mxu1 %v868_v3  ;;  %v677_v3 = vadd.f32 %v2292_v32, %v657_v56  ;;  %v587_v7 = vadd.f32 %v2303_v37, %v567_v1 }
  0x54   : > { %1140 = vmatmul.mubr.f32.gmra.mrb[20].mxu0 %v598_v9  ;;  %v767_v9 = vadd.f32 %v2318_v46, %v747_v4 }
  0x55   : > { %1144 = vmatprep.mubr.f32.mxu0 %v689_v14  ;;  %v693_v8 = vmax.f32 %v677_v3, 0.0  ;;  %v603_v32 = vmax.f32 %v587_v7, 0.0 }
  0x56   : > { %1285 = vmatmul.mubr.f32.gmra.mrb[20].mxu1 %v778_v10  ;;  %v873_v10 = vmax.f32 %v857_v39, 0.0  ;;  %v783_v45 = vmax.f32 %v767_v9, 0.0 }
  0x57   : > { %1289 = vmatprep.mubr.f32.mxu1 %v869_v19 }
  0x58   : > { %1145 = vmatmul.mubr.f32.gmra.mrb[22].mxu0 %v599_v25 }
  0x59   : > { %1149 = vmatprep.mubr.f32.mxu0 %v690_v30 }
  0x5a   : > { %1290 = vmatmul.mubr.f32.gmra.mrb[22].mxu1 %v779_v29 }
  0x5b   : > { %1294 = vmatprep.mubr.f32.mxu1 %v870_v38 }
  0x5c   : > { %1150 = vmatmul.mubr.f32.gmra.mrb[24].mxu0 %v600_v49 }
  0x5d   : > { %1154 = vmatprep.mubr.f32.mxu0 %v691_v53 }
  0x5e   : > { %1295 = vmatmul.mubr.f32.gmra.mrb[24].mxu1 %v780_v50 }
  0x5f   : > { %1299 = vmatprep.mubr.f32.mxu1 %v871_v58 }
  0x60   : > { %1155 = vmatmul.mubr.f32.gmra.mrb[26].mxu0 %v601_v62 }
  0x61   : > { %1159 = vmatprep.mubr.f32.mxu0 %v692_v2 }
  0x62   : > { %1300 = vmatmul.mubr.f32.gmra.mrb[26].mxu1 %v781_v63 }
  0x63   : > { %1304 = vmatprep.mubr.f32.mxu1 %v872_v5 }
  0x64   : > { %1160 = vmatmul.mubr.f32.gmra.mrb[28].mxu0 %v602_v6 }
  0x65   : > { %1164 = vmatprep.mubr.f32.mxu0 %v693_v8 }
  0x66   : > { %1305 = vmatmul.mubr.f32.gmra.mrb[28].mxu1 %v782_v36 }
  0x67   : > { %1309 = vmatprep.mubr.f32.mxu1 %v873_v10 }
  0x68   : > { %1165 = vmatmul.mubr.f32.gmra.mrb[30].mxu0 %v603_v32 }
  0x6a   : > { %1310 = vmatmul.mubr.f32.gmra.mrb[30].mxu1 %v783_v45 }
  0xff   : > { %v1686_v37 = vpop.f32.mrb[0].mxu0 }
 0x100   : > { %v1687_v11 = vpop.f32.mrb[1].mxu0 }
 0x101   : > { %v1766_v46 = vpop.f32.mrb[0].mxu1  ;;  %v1688_v12 = vadd.f32 %v1687_v11, %v1686_v37 }
 0x102   : > { %v1767_v13 = vpop.f32.mrb[1].mxu1 }
 0x103   : > { %v1768_v14 = vadd.f32 %v1767_v13, %v1766_v46  ;;  %v1092_v15 = vadd.f32 %v1688_v12, %v2523_v40  ;;  %v1689_v16 = vpop.f32.mrb[2].mxu0 }
 0x104   : > { %v1690_v17 = vpop.f32.mrb[3].mxu0 }
 0x105   : > { %v1769_v18 = vpop.f32.mrb[2].mxu1  ;;  %v1237_v19 = vadd.f32 %v1768_v14, %v1092_v15  ;;  %v1691_v20 = vadd.f32 %v1690_v17, %v1689_v16 }
 0x106   : > { %v1770_v21 = vpop.f32.mrb[3].mxu1 }
 0x107   : > { %v1771_v22 = vadd.f32 %v1770_v21, %v1769_v18  ;;  %1315 = vst [vmem:[%s2530_s23] sm:$0xff] %v1237_v19  ;;  %v1097_v23 = vadd.f32 %v1691_v20, %v2523_v40  ;;  %v1692_v24 = vpop.f32.mrb[4].mxu0  ;;  %v1353_v33 = vmul.f32 %v1237_v19, %v1237_v19 }
 0x108   : > { %v1693_v25 = vpop.f32.mrb[5].mxu0 }
 0x109   : > { %v1772_v26 = vpop.f32.mrb[4].mxu1  ;;  %v1242_v27 = vadd.f32 %v1771_v22, %v1097_v23  ;;  %v1694_v28 = vadd.f32 %v1693_v25, %v1692_v24 }
 0x10a   : > { %v1773_v29 = vpop.f32.mrb[5].mxu1 }
 0x10b   : > { %v1774_v30 = vadd.f32 %v1773_v29, %v1772_v26  ;;  %1316 = vst [vmem:[%s2530_s23 + $0x8] sm:$0xff] %v1242_v27  ;;  %v1331_v34 = vadd.f32 %v1242_v27, %v1237_v19  ;;  %v1354_v35 = vmul.f32 %v1242_v27, %v1242_v27  ;;  %v1102_v38 = vadd.f32 %v1694_v28, %v2523_v40  ;;  %v1695_v41 = vpop.f32.mrb[6].mxu0 }
 0x10c   : > { %v1696_v42 = vpop.f32.mrb[7].mxu0 }
 0x10d   : > { %v1775_v43 = vpop.f32.mrb[6].mxu1  ;;  %v1369_v44 = vadd.f32 %v1354_v35, %v1353_v33  ;;  %v1247_v47 = vadd.f32 %v1774_v30, %v1102_v38  ;;  %v1697_v48 = vadd.f32 %v1696_v42, %v1695_v41 }
 0x10e   : > { %v1776_v49 = vpop.f32.mrb[7].mxu1 }
 0x10f   : > { %v1777_v50 = vadd.f32 %v1776_v49, %v1775_v43  ;;  %1317 = vst [vmem:[%s2530_s23 + $0x10] sm:$0xff] %v1247_v47  ;;  %v1332_v51 = vadd.f32 %v1331_v34, %v1247_v47  ;;  %v1355_v52 = vmul.f32 %v1247_v47, %v1247_v47  ;;  %v1107_v53 = vadd.f32 %v1697_v48, %v2523_v40  ;;  %v1698_v54 = vpop.f32.mrb[8].mxu0 }
 0x110   : > { %v1699_v55 = vpop.f32.mrb[9].mxu0 }
 0x111   : > { %v1778_v56 = vpop.f32.mrb[8].mxu1  ;;  %v1370_v57 = vadd.f32 %v1369_v44, %v1355_v52  ;;  %v1252_v58 = vadd.f32 %v1777_v50, %v1107_v53  ;;  %v1700_v59 = vadd.f32 %v1699_v55, %v1698_v54 }
 0x112   : > { %v1779_v60 = vpop.f32.mrb[9].mxu1 }
 0x113   : > { %v1780_v61 = vadd.f32 %v1779_v60, %v1778_v56  ;;  %1318 = vst [vmem:[%s2530_s23 + $0x18] sm:$0xff] %v1252_v58  ;;  %v1333_v62 = vadd.f32 %v1332_v51, %v1252_v58  ;;  %v1356_v63 = vmul.f32 %v1252_v58, %v1252_v58  ;;  %v1112_v0 = vadd.f32 %v1700_v59, %v2523_v40  ;;  %v1701_v1 = vpop.f32.mrb[10].mxu0 }
 0x114   : > { %v1702_v2 = vpop.f32.mrb[11].mxu0 }
 0x115   : > { %v1781_v31 = vpop.f32.mrb[10].mxu1  ;;  %v1371_v3 = vadd.f32 %v1370_v57, %v1356_v63  ;;  %v1257_v4 = vadd.f32 %v1780_v61, %v1112_v0  ;;  %v1703_v5 = vadd.f32 %v1702_v2, %v1701_v1 }
 0x116   : > { %v1782_v39 = vpop.f32.mrb[11].mxu1 }
 0x117   : > { %v1783_v6 = vadd.f32 %v1782_v39, %v1781_v31  ;;  %1319 = vst [vmem:[%s2530_s23 + $0x20] sm:$0xff] %v1257_v4  ;;  %v1334_v7 = vadd.f32 %v1333_v62, %v1257_v4  ;;  %v1357_v36 = vmul.f32 %v1257_v4, %v1257_v4  ;;  %v1117_v8 = vadd.f32 %v1703_v5, %v2523_v40  ;;  %v1704_v9 = vpop.f32.mrb[12].mxu0 }
 0x118   : > { %v1705_v10 = vpop.f32.mrb[13].mxu0 }
 0x119   : > { %v1784_v32 = vpop.f32.mrb[12].mxu1  ;;  %v1372_v45 = vadd.f32 %v1371_v3, %v1357_v36  ;;  %v1262_v37 = vadd.f32 %v1783_v6, %v1117_v8  ;;  %v1706_v11 = vadd.f32 %v1705_v10, %v1704_v9 }
 0x11a   : > { %v1785_v46 = vpop.f32.mrb[13].mxu1 }
 0x11b   : > { %v1786_v12 = vadd.f32 %v1785_v46, %v1784_v32  ;;  %1320 = vst [vmem:[%s2530_s23 + $0x28] sm:$0xff] %v1262_v37  ;;  %v1335_v13 = vadd.f32 %v1334_v7, %v1262_v37  ;;  %v1358_v14 = vmul.f32 %v1262_v37, %v1262_v37  ;;  %v1122_v15 = vadd.f32 %v1706_v11, %v2523_v40  ;;  %v1707_v16 = vpop.f32.mrb[14].mxu0 }
 0x11c   : > { %v1708_v17 = vpop.f32.mrb[15].mxu0 }
 0x11d   : > { %v1787_v18 = vpop.f32.mrb[14].mxu1  ;;  %v1373_v19 = vadd.f32 %v1372_v45, %v1358_v14  ;;  %v1267_v20 = vadd.f32 %v1786_v12, %v1122_v15  ;;  %v1709_v21 = vadd.f32 %v1708_v17, %v1707_v16 }
 0x11e   : > { %v1788_v22 = vpop.f32.mrb[15].mxu1 }
 0x11f   : > { %v1789_v23 = vadd.f32 %v1788_v22, %v1787_v18  ;;  %1321 = vst [vmem:[%s2530_s23 + $0x30] sm:$0xff] %v1267_v20  ;;  %v1336_v24 = vadd.f32 %v1335_v13, %v1267_v20  ;;  %v1359_v25 = vmul.f32 %v1267_v20, %v1267_v20  ;;  %v1127_v26 = vadd.f32 %v1709_v21, %v2523_v40  ;;  %v1710_v27 = vpop.f32.mrb[16].mxu0 }
 0x120   : > { %v1711_v28 = vpop.f32.mrb[17].mxu0 }
 0x121   : > { %v1790_v29 = vpop.f32.mrb[16].mxu1  ;;  %v1374_v30 = vadd.f32 %v1373_v19, %v1359_v25  ;;  %v1272_v33 = vadd.f32 %v1789_v23, %v1127_v26  ;;  %v1712_v34 = vadd.f32 %v1711_v28, %v1710_v27 }
 0x122   : > { %v1791_v35 = vpop.f32.mrb[17].mxu1 }
 0x123   : > { %v1792_v38 = vadd.f32 %v1791_v35, %v1790_v29  ;;  %1322 = vst [vmem:[%s2530_s23 + $0x38] sm:$0xff] %v1272_v33  ;;  %v1337_v41 = vadd.f32 %v1336_v24, %v1272_v33  ;;  %v1360_v42 = vmul.f32 %v1272_v33, %v1272_v33  ;;  %v1132_v43 = vadd.f32 %v1712_v34, %v2523_v40  ;;  %v1713_v44 = vpop.f32.mrb[18].mxu0 }
 0x124   : > { %v1714_v47 = vpop.f32.mrb[19].mxu0 }
 0x125   : > { %v1793_v48 = vpop.f32.mrb[18].mxu1  ;;  %v1375_v49 = vadd.f32 %v1374_v30, %v1360_v42  ;;  %v1277_v50 = vadd.f32 %v1792_v38, %v1132_v43  ;;  %v1715_v51 = vadd.f32 %v1714_v47, %v1713_v44 }
 0x126   : > { %v1794_v52 = vpop.f32.mrb[19].mxu1 }
 0x127   : > { %v1795_v53 = vadd.f32 %v1794_v52, %v1793_v48  ;;  %1323 = vst [vmem:[%s2530_s23 + $0x40] sm:$0xff] %v1277_v50  ;;  %v1338_v54 = vadd.f32 %v1337_v41, %v1277_v50  ;;  %v1361_v55 = vmul.f32 %v1277_v50, %v1277_v50  ;;  %v1137_v56 = vadd.f32 %v1715_v51, %v2523_v40  ;;  %v1716_v57 = vpop.f32.mrb[20].mxu0 }
 0x128   : > { %v1717_v58 = vpop.f32.mrb[21].mxu0 }
 0x129   : > { %v1796_v59 = vpop.f32.mrb[20].mxu1  ;;  %v1376_v60 = vadd.f32 %v1375_v49, %v1361_v55  ;;  %v1282_v61 = vadd.f32 %v1795_v53, %v1137_v56  ;;  %v1718_v62 = vadd.f32 %v1717_v58, %v1716_v57 }
 0x12a   : > { %v1797_v63 = vpop.f32.mrb[21].mxu1 }
 0x12b   : > { %v1798_v0 = vadd.f32 %v1797_v63, %v1796_v59  ;;  %1324 = vst [vmem:[%s2530_s23 + $0x48] sm:$0xff] %v1282_v61  ;;  %v1339_v1 = vadd.f32 %v1338_v54, %v1282_v61  ;;  %v1362_v2 = vmul.f32 %v1282_v61, %v1282_v61  ;;  %v1142_v31 = vadd.f32 %v1718_v62, %v2523_v40  ;;  %v1719_v3 = vpop.f32.mrb[22].mxu0 }
 0x12c   : > { %v1720_v4 = vpop.f32.mrb[23].mxu0 }
 0x12d   : > { %v1799_v5 = vpop.f32.mrb[22].mxu1  ;;  %v1377_v39 = vadd.f32 %v1376_v60, %v1362_v2  ;;  %v1287_v6 = vadd.f32 %v1798_v0, %v1142_v31  ;;  %v1721_v7 = vadd.f32 %v1720_v4, %v1719_v3 }
 0x12e   : > { %v1800_v36 = vpop.f32.mrb[23].mxu1 }
 0x12f   : > { %v1801_v8 = vadd.f32 %v1800_v36, %v1799_v5  ;;  %1325 = vst [vmem:[%s2530_s23 + $0x50] sm:$0xff] %v1287_v6  ;;  %v1340_v9 = vadd.f32 %v1339_v1, %v1287_v6  ;;  %v1363_v10 = vmul.f32 %v1287_v6, %v1287_v6  ;;  %v1147_v32 = vadd.f32 %v1721_v7, %v2523_v40  ;;  %v1722_v45 = vpop.f32.mrb[24].mxu0 }
 0x130   : > { %v1723_v37 = vpop.f32.mrb[25].mxu0 }
 0x131   : > { %v1802_v11 = vpop.f32.mrb[24].mxu1  ;;  %v1378_v46 = vadd.f32 %v1377_v39, %v1363_v10  ;;  %v1292_v12 = vadd.f32 %v1801_v8, %v1147_v32  ;;  %v1724_v13 = vadd.f32 %v1723_v37, %v1722_v45 }
 0x132   : > { %v1803_v14 = vpop.f32.mrb[25].mxu1 }
 0x133   : > { %v1804_v15 = vadd.f32 %v1803_v14, %v1802_v11  ;;  %1326 = vst [vmem:[%s2530_s23 + $0x58] sm:$0xff] %v1292_v12  ;;  %v1341_v16 = vadd.f32 %v1340_v9, %v1292_v12  ;;  %v1364_v17 = vmul.f32 %v1292_v12, %v1292_v12  ;;  %v1152_v18 = vadd.f32 %v1724_v13, %v2523_v40  ;;  %v1725_v19 = vpop.f32.mrb[26].mxu0 }
 0x134   : > { %v1726_v20 = vpop.f32.mrb[27].mxu0 }
 0x135   : > { %v1805_v21 = vpop.f32.mrb[26].mxu1  ;;  %v1379_v22 = vadd.f32 %v1378_v46, %v1364_v17  ;;  %v1297_v23 = vadd.f32 %v1804_v15, %v1152_v18  ;;  %v1727_v24 = vadd.f32 %v1726_v20, %v1725_v19 }
 0x136   : > { %v1806_v25 = vpop.f32.mrb[27].mxu1 }
 0x137   : > { %v1807_v26 = vadd.f32 %v1806_v25, %v1805_v21  ;;  %1327 = vst [vmem:[%s2530_s23 + $0x60] sm:$0xff] %v1297_v23  ;;  %v1342_v27 = vadd.f32 %v1341_v16, %v1297_v23  ;;  %v1365_v28 = vmul.f32 %v1297_v23, %v1297_v23  ;;  %v1157_v29 = vadd.f32 %v1727_v24, %v2523_v40  ;;  %v1728_v30 = vpop.f32.mrb[28].mxu0 }
 0x138   : > { %v1729_v33 = vpop.f32.mrb[29].mxu0 }
 0x139   : > { %v1808_v34 = vpop.f32.mrb[28].mxu1  ;;  %v1380_v35 = vadd.f32 %v1379_v22, %v1365_v28  ;;  %v1302_v38 = vadd.f32 %v1807_v26, %v1157_v29  ;;  %v1730_v41 = vadd.f32 %v1729_v33, %v1728_v30 }
 0x13a   : > { %v1809_v42 = vpop.f32.mrb[29].mxu1 }
 0x13b   : > { %v1810_v43 = vadd.f32 %v1809_v42, %v1808_v34  ;;  %1328 = vst [vmem:[%s2530_s23 + $0x68] sm:$0xff] %v1302_v38  ;;  %v1343_v44 = vadd.f32 %v1342_v27, %v1302_v38  ;;  %v1366_v47 = vmul.f32 %v1302_v38, %v1302_v38  ;;  %v1162_v48 = vadd.f32 %v1730_v41, %v2523_v40  ;;  %v1731_v49 = vpop.f32.mrb[30].mxu0 }
 0x13c   : > { %v1732_v50 = vpop.f32.mrb[31].mxu0 }
 0x13d   : > { %v1811_v51 = vpop.f32.mrb[30].mxu1  ;;  %v1381_v52 = vadd.f32 %v1380_v35, %v1366_v47  ;;  %v1307_v53 = vadd.f32 %v1810_v43, %v1162_v48  ;;  %v1733_v54 = vadd.f32 %v1732_v50, %v1731_v49 }
 0x13e   : > { %v1812_v55 = vpop.f32.mrb[31].mxu1 }
 0x13f   : > { %v1813_v56 = vadd.f32 %v1812_v55, %v1811_v51  ;;  %1329 = vst [vmem:[%s2530_s23 + $0x70] sm:$0xff] %v1307_v53  ;;  %v1344_v57 = vadd.f32 %v1343_v44, %v1307_v53  ;;  %v1367_v58 = vmul.f32 %v1307_v53, %v1307_v53  ;;  %v1167_v59 = vadd.f32 %v1733_v54, %v2523_v40 }
 0x141   : > { %v1382_v60 = vadd.f32 %v1381_v52, %v1367_v58  ;;  %v1312_v61 = vadd.f32 %v1813_v56, %v1167_v59 }
 0x143   : > { %1330 = vst [vmem:[%s2530_s23 + $0x78] sm:$0xff] %v1312_v61  ;;  %v1345_v62 = vadd.f32 %v1344_v57, %v1312_v61  ;;  %v1368_v63 = vmul.f32 %v1312_v61, %v1312_v61 }
 0x145   : > { %v1346_v0 = vrot.slane %v1345_v62, 4  ;;  %v1383_v1 = vadd.f32 %v1382_v60, %v1368_v63 }
 0x147   : > { %v1347_v2 = vadd.f32 %v1346_v0, %v1345_v62  ;;  %v1384_v31 = vrot.slane %v1383_v1, 4 }
 0x149   : > { %v1348_v3 = vrot.slane %v1347_v2, 2  ;;  %v1385_v4 = vadd.f32 %v1384_v31, %v1383_v1 }
 0x14b   : > { %v1349_v5 = vadd.f32 %v1348_v3, %v1347_v2  ;;  %v1386_v39 = vrot.slane %v1385_v4, 2 }
 0x14d   : > { %v1350_v6 = vrot.slane %v1349_v5, 1  ;;  %v1387_v7 = vadd.f32 %v1386_v39, %v1385_v4 }
 0x14f   : > { %v1351_v40 = vadd.f32 %v1350_v6, %v1349_v5  ;;  %v1388_v36 = vrot.slane %v1387_v7, 1 }
 0x151   : > { %1352 = vst [vmem:[%s523_s20] sm:$0x1] %v1351_v40  ;;  %v1389_v8 = vadd.f32 %v1388_v36, %v1387_v7 }
 0x153   : > { %1390 = vst [vmem:[%s530_s21] sm:$0x1] %v1389_v8 }
 0x154 PF: > { %s20_s13 = sadd.s32 1, %s1956_s13   ;;  %s2598_s30 = smov %s1948_s11 }
 0x155   : > { %p17_p8 = scmp.ge.s32.totalorder %s20_s13, 6   ;;  %s2599_s10 = smov %s1952_s12 }
 0x156   : > { %s2600_s11 = smov %s2603_s14  ;;  %s2601_s12 = smov %s2607_s15 }
 0x157   :  { %19 = sbr.rel (!%p17_p8) target bundleno = 3 (0x3), region = 117 }

// kernel: aspp_forward.3
= control target key start
LH: loop header
LB: loop body
LE: loop exit
PB: predicated region body
PF: predicated region fallthrough
CT: control target
= control target key end

     0   :  { %s10122_s25 = smov 0   ;;  %s10124_s26 = smov 0   ;;  %s12115_s0 = inlined_call_operand.vmem [shape: f32[2,22,22,4], index: 0, kind: input, shape index: {}]   ;;  %s12116_s1 = inlined_call_operand.vmem [shape: f32[28,4,128], index: 1, kind: input, shape index: {}]   ;;  %s12117_s2 = inlined_call_operand.vmem [shape: f32[2,256,128], index: 2, kind: output, shape index: {0}]   ;;  %s12118_s3 = inlined_call_operand.vmem [shape: f32[2,256,128], index: 3, kind: output, shape index: {1}]   ;;  %s12119_s4 = inlined_call_operand.vmem [shape: f32[2,256,128], index: 4, kind: output, shape index: {2}]   ;;  %s12120_s5 = inlined_call_operand.vmem [shape: f32[2,256,128], index: 5, kind: output, shape index: {3}]   ;;  %s12121_s6 = inlined_call_operand.vmem [shape: f32[2,2,1,128], index: 6, kind: output, shape index: {4}]   ;;  %s12122_s7 = inlined_call_operand.vmem [shape: f32[2,2,1,128], index: 7, kind: output, shape index: {5}]   ;;  %s12123_s8 = inlined_call_operand.vmem [shape: f32[2,2,1,128], index: 8, kind: output, shape index: {6}]   ;;  %s12124_s9 = inlined_call_operand.vmem [shape: f32[2,2,1,128], index: 9, kind: output, shape index: {7}]   ;;  %s12125_s10 = inlined_call_operand.vmem [shape: f32[2,2,1,128], index: 10, kind: output, shape index: {8}]   ;;  %s12126_s11 = inlined_call_operand.vmem [shape: f32[2,2,1,128], index: 11, kind: output, shape index: {9}]   ;;  %s12127_s12 = inlined_call_operand.vmem [shape: f32[2,2,1,128], index: 12, kind: output, shape index: {10}]   ;;  %s12128_s13 = inlined_call_operand.vmem [shape: f32[2,2,1,128], index: 13, kind: output, shape index: {11}]  }
   0x1   :  { %12200 = sst [smem:[#allocation28_spill]] %s12115_s0  ;;  %s10126_s27 = smov 0  }
   0x2   :  { %s10128_s28 = smov 0   ;;  %s10130_s29 = smov 0  }
   0x3 LB: > { %s33_s30 = sadd.s32 1, %s10042_s27  ;;  %s36_s14 = sadd.s32 1, %s10046_s28  ;;  %s10050_s29 = sphi %s10130_s29, %s24_s29   ;;  %s10046_s28 = sphi %s10128_s28, %s12310_s28   ;;  %s10042_s27 = sphi %s10126_s27, %s12309_s27   ;;  %s10038_s26 = sphi %s10124_s26, %s12308_s26   ;;  %s10034_s25 = sphi %s10122_s25, %s12307_s25  }
   0x4   : > { %p34_p0 = scmp.ge.s32.totalorder %s33_s30, 2  ;;  %p7827_p1 = scmp.ge.s32.totalorder %s10050_s29, 1 }
   0x5   : > { %p446_p2 = scmp.lt.s32.totalorder %s10050_s29, 5 }
   0x6   : > { %s12312_s30 = smov (%p34_p0, %s33_s30), 0  ;;  %s12314_s14 = smov (!%p34_p0, %s36_s14), %s10046_s28 }
   0x7   : > { %p447_p3 = pnand %p7827_p1, %p446_p2  ;;  %p38_p4 = scmp.ge.s32.totalorder %s12314_s14, 2 }
   0x9   : > { %s12316_s14 = smov (%p38_p4, %s12314_s14), 0  ;;  %450 = sbr.rel (%p447_p3) target bundleno = 708 (0x2c4), region = 28 }
  0x10   : > { %v788_v0 = vld [vmem:[%s12116_s1] sm:$0xf]  ;;  %vm822_vm0 = vcmask 1043456   ;;  %v7940_v1 = vld [vmem:[%s12116_s1 + $0x14] sm:$0xf]  ;;  %p577_p5 = scmp.lt.s32.totalorder %s10038_s26, 1 }
  0x11   : > { %8832 = vmatprep.subr.msk.mxu0 %vm822_vm0, %v788_v0  ;;  %8962 = vmatprep.subr.msk.mxu1 %vm822_vm0, %v7940_v1  ;;  %v7868_v2 = vld [vmem:[%s12116_s1 + $0x4] sm:$0xf]  ;;  %v7958_v3 = vld [vmem:[%s12116_s1 + $0x18] sm:$0xf]  ;;  %s7850_s23 = smul.u32 192, %s10034_s25  ;;  %s12201_s0 = sld [smem:[#allocation28_spill]] }
  0x12   : > { %8833 = vmatpush3.msk.msra.mxu0 %vm822_vm0, %v788_v0  ;;  %8963 = vmatpush3.msk.msra.mxu1 %vm822_vm0, %v7940_v1  ;;  %s12318_s26 = smov (!%p577_p5, %s10038_s26), 1  ;;  %vm747_vm1 = vcmask 1044480   ;;  %vm789_vm2 = vcmask 31744   ;;  %v10242_v26 = vld [vmem:[%s12116_s1 + $0x8] sm:$0xf]  ;;  %vm1082_vm3 = vcmask 1045504  }
  0x13   : > { %8858 = vmatprep.subr.msk.mxu0 %vm822_vm0, %v7868_v2  ;;  %8988 = vmatprep.subr.msk.mxu1 %vm822_vm0, %v7958_v3  ;;  %s9944_s24 = smul.u32 528, %s12318_s26  ;;  %v10247_v27 = vld [vmem:[%s12116_s1 + $0x1c] sm:$0xf]  ;;  %vm3129_vm4 = vcmask 1046528   ;;  %s7829_s15 = sshll.u32 %s10034_s25, 4  ;;  %vm3575_vm5 = vcmask 1042432  }
  0x14   : > { %p585_p6 = scmp.lt.s32.totalorder %s7829_s15, 31  ;;  %s7830_s21 = sshll.u32 %s12318_s26, 5  ;;  %vm5618_vm6 = vcmask 1041408  }
  0x15   : > { %p624_p7 = scmp.lt.s32.totalorder %s10034_s25, 1 }
  0x16   : > { %s12320_s15 = smov (!%p585_p6, %s7829_s15), 31 }
  0x17   : > { %s581_s17 = scalar_lea.vmem %s12201_s0, %s9944_s24  ;;  %s588_s22 = sadd.s32 %s7830_s21, %s12320_s15 }
  0x18   : > { %s10179_s18 = scalar_lea.vmem %s581_s17, %s7850_s23  ;;  %s11121_s23 = sshll.u32 %s588_s22, 3 }
  0x19   : > { %v10182_v4 = vld [vmem:[%s10179_s18 + $0x48] sm:$0xff]  ;;  %v10185_v5 = vld [vmem:[%s10179_s18 + $0x50] sm:$0xff]  ;;  %v10188_v6 = vld [vmem:[%s10179_s18 + $0x58] sm:$0x3f]  ;;  %s11131_s16 = scalar_lea.vmem %s12117_s2, %s11121_s23  ;;  %s12322_s25 = smov (!%p624_p7, %s10034_s25), 1 }
  0x1a   : > { %12202 = vst [vmem:[#allocation3_spill] sm:$0xff] %v10182_v4  ;;  %12203 = vst [vmem:[#allocation4_spill] sm:$0xff] %v10185_v5  ;;  %v748_v7 = vrot.slane %v10182_v4, 3  ;;  %v749_v8 = vrot.slane %v10185_v5, 3  ;;  %v751_v9 = vrot.slane %v10188_v6, 3  ;;  %v10194_v10 = vld [vmem:[%s10179_s18 + $0x60] sm:$0xff]  ;;  %s11714_s0 = scalar_lea.vmem %s12118_s3, %s11121_s23  ;;  %s12044_s24 = scalar_lea.vmem %s12119_s4, %s11121_s23 }
  0x1b   : > { %12204 = vst [vmem:[#allocation5_spill] sm:$0xff] %v10188_v6  ;;  %12205 = vst [vmem:[#allocation6_spill] sm:$0xff] %v10194_v10  ;;  %v10197_v11 = vld [vmem:[%s10179_s18 + $0x68] sm:$0xff]  ;;  %v10200_v12 = vld [vmem:[%s10179_s18 + $0x78] sm:$0xff]  ;;  %v753_v13 = vrot.slane %v10194_v10, 3  ;;  %s7841_s22 = sshll.u32 %s12318_s26, 1  ;;  %s12050_s17 = scalar_lea.vmem %s12120_s5, %s11121_s23 }
  0x1c   : > { %12206 = vst [vmem:[#allocation7_spill] sm:$0xff] %v10197_v11  ;;  %12207 = vst [vmem:[#allocation8_spill] sm:$0xff] %v10200_v12  ;;  %v754_v14 = vrot.slane %v10197_v11, 3  ;;  %v10205_v15 = vld [vmem:[%s10179_s18 + $0x70] sm:$0x3f]  ;;  %v10208_v16 = vld [vmem:[%s10179_s18 + $0x80] sm:$0xff]  ;;  %v10212_v18 = vsel %vm747_vm1, %v748_v7, %v749_v8  ;;  %v10215_v19 = vsel %vm747_vm1, %v749_v8, %v751_v9  ;;  %s11412_s26 = sadd.s32 %s7841_s22, %s12322_s25 }
  0x1d   : > { %12208 = vst [vmem:[#allocation9_spill] sm:$0xff] %v10205_v15  ;;  %12209 = vst [vmem:[#allocation10_spill] sm:$0xff] %v10208_v16  ;;  %v758_v17 = vrot.slane %v10200_v12, 3  ;;  %v756_v20 = vrot.slane %v10205_v15, 3  ;;  %v759_v21 = vrot.slane %v10208_v16, 3  ;;  %8834 = vmatprep.mubr.msk.f32.mxu0 %vm789_vm2, %v10212_v18  ;;  %8964 = vmatprep.mubr.msk.f32.mxu1 %vm789_vm2, %v10212_v18  ;;  %v10230_v24 = vld [vmem:[%s10179_s18 + $0x90] sm:$0xff]  ;;  %s628_s15 = scalar_lea.vmem %s12121_s6, %s11412_s26  ;;  %s656_s19 = scalar_lea.vmem %s12125_s10, %s11412_s26 }
  0x1e   : > { %12210 = vst [vmem:[#allocation11_spill] sm:$0xff] %v10212_v18  ;;  %12211 = vst [vmem:[#allocation12_spill] sm:$0xff] %v10215_v19  ;;  %v10220_v22 = vld [vmem:[%s10179_s18 + $0x88] sm:$0x3f]  ;;  %v10227_v23 = vsel %vm747_vm1, %v753_v13, %v754_v14  ;;  %v10233_v25 = vld [vmem:[%s10179_s18 + $0x98] sm:$0xff]  ;;  %8835 = vmatmul.mubr.msk.f32.vlgmr.msra.gmra.mrb[0].mxu0 %vm789_vm2, %v10215_v19  ;;  %8965 = vmatmul.mubr.msk.f32.vlgmr.msra.gmra.mrb[0].mxu1 %vm789_vm2, %v10215_v19  ;;  %v763_v31 = vrot.slane %v10230_v24, 3  ;;  %s635_s20 = scalar_lea.vmem %s12122_s7, %s11412_s26 }
  0x1f   : > { %12212 = vst [vmem:[#allocation13_spill] sm:$0xff] %v10220_v22  ;;  %12213 = vst [vmem:[#allocation14_spill] sm:$0xff] %v10230_v24  ;;  %8859 = vmatpush3.msk.msra.mxu0 %vm822_vm0, %v7868_v2  ;;  %8989 = vmatpush3.msk.msra.mxu1 %vm822_vm0, %v7958_v3  ;;  %v10252_v28 = vsel %vm747_vm1, %v754_v14, %v756_v20  ;;  %v761_v29 = vrot.slane %v10220_v22, 3  ;;  %v10260_v30 = vsel %vm747_vm1, %v758_v17, %v759_v21  ;;  %v10265_v33 = vld [vmem:[%s10179_s18 + $0xa0] sm:$0x3f]  ;;  %v10268_v34 = vld [vmem:[%s10179_s18 + $0xa8] sm:$0xff] }
  0x20   : > { %12214 = vst [vmem:[#allocation15_spill] sm:$0xff] %v10233_v25  ;;  %8837 = vmatprep.mubr.msk.f32.mxu0 %vm789_vm2, %v10227_v23  ;;  %8967 = vmatprep.mubr.msk.f32.mxu1 %vm789_vm2, %v10227_v23  ;;  %v764_v32 = vrot.slane %v10233_v25, 3  ;;  %12215 = vst [vmem:[#allocation16_spill] sm:$0xff] %v10265_v33  ;;  %v10271_v35 = vld [vmem:[%s10179_s18 + $0xb0] sm:$0xff]  ;;  %v766_v37 = vrot.slane %v10265_v33, 3  ;;  %v768_v39 = vrot.slane %v10268_v34, 3 }
  0x21   : > { %12216 = vst [vmem:[#allocation17_spill] sm:$0xff] %v10268_v34  ;;  %12217 = vst [vmem:[#allocation18_spill] sm:$0xff] %v10271_v35  ;;  %8884 = vmatprep.subr.msk.mxu0 %vm822_vm0, %v10242_v26  ;;  %9014 = vmatprep.subr.msk.mxu1 %vm822_vm0, %v10247_v27  ;;  %v10286_v36 = vsel %vm747_vm1, %v759_v21, %v761_v29  ;;  %v769_v40 = vrot.slane %v10271_v35, 3  ;;  %v10295_v41 = vld [vmem:[%s10179_s18 + $0xb8] sm:$0x3f]  ;;  %v10298_v42 = vld [vmem:[%s10179_s18 + $0xc0] sm:$0xff] }
  0x22   : > { %8838 = vmatmul.mubr.msk.f32.gmra.mrb[2].mxu0 %vm789_vm2, %v10252_v28  ;;  %8968 = vmatmul.mubr.msk.f32.gmra.mrb[2].mxu1 %vm789_vm2, %v10252_v28  ;;  %v10290_v38 = vsel %vm747_vm1, %v763_v31, %v764_v32  ;;  %12218 = vst [vmem:[#allocation19_spill] sm:$0xff] %v10295_v41  ;;  %12219 = vst [vmem:[#allocation20_spill] sm:$0xff] %v10298_v42  ;;  %v10301_v43 = vld [vmem:[%s10179_s18 + $0xc8] sm:$0xff]  ;;  %v10312_v44 = vsel %vm747_vm1, %v764_v32, %v766_v37  ;;  %v771_v45 = vrot.slane %v10295_v41, 3  ;;  %v10321_v49 = vld [vmem:[%s10179_s18 + $0xd0] sm:$0x3f] }
  0x23   : > { %8840 = vmatprep.mubr.msk.f32.mxu0 %vm789_vm2, %v10260_v30  ;;  %8970 = vmatprep.mubr.msk.f32.mxu1 %vm789_vm2, %v10260_v30  ;;  %12220 = vst [vmem:[#allocation21_spill] sm:$0xff] %v10301_v43  ;;  %v10316_v46 = vsel %vm747_vm1, %v768_v39, %v769_v40  ;;  %v773_v47 = vrot.slane %v10298_v42, 3  ;;  %v774_v48 = vrot.slane %v10301_v43, 3  ;;  %12221 = vst [vmem:[#allocation22_spill] sm:$0xff] %v10321_v49  ;;  %v10324_v50 = vld [vmem:[%s10179_s18 + $0xd8] sm:$0xff]  ;;  %v10327_v51 = vld [vmem:[%s10179_s18 + $0xe0] sm:$0xff] }
  0x24   : > { %v10338_v52 = vsel %vm747_vm1, %v769_v40, %v771_v45  ;;  %v776_v53 = vrot.slane %v10321_v49, 3  ;;  %v778_v55 = vrot.slane %v10324_v50, 3  ;;  %v779_v56 = vrot.slane %v10327_v51, 3  ;;  %v10347_v57 = vld [vmem:[%s10179_s18 + $0xe8] sm:$0x3f]  ;;  %v10350_v58 = vld [vmem:[%s10179_s18 + $0xf0] sm:$0xff] }
  0x25   : > { %v10342_v54 = vsel %vm747_vm1, %v773_v47, %v774_v48  ;;  %v10353_v59 = vld [vmem:[%s10179_s18 + $0xf8] sm:$0xff]  ;;  %v781_v61 = vrot.slane %v10347_v57, 3  ;;  %v783_v63 = vrot.slane %v10350_v58, 3  ;;  %v10373_v1 = vld [vmem:[%s10179_s18 + $0x100] sm:$0x3f]  ;;  %v10376_v2 = vld [vmem:[%s10179_s18 + $0x30] sm:$0xff] }
  0x26   : > { %8841 = vmatmul.mubr.msk.f32.gmra.mrb[4].mxu0 %vm789_vm2, %v10286_v36  ;;  %8971 = vmatmul.mubr.msk.f32.gmra.mrb[4].mxu1 %vm789_vm2, %v10286_v36  ;;  %v10364_v60 = vsel %vm747_vm1, %v774_v48, %v776_v53  ;;  %v10368_v62 = vsel %vm747_vm1, %v778_v55, %v779_v56  ;;  %v784_v0 = vrot.slane %v10353_v59, 3  ;;  %v10379_v3 = vld [vmem:[%s10179_s18 + $0x38] sm:$0xff]  ;;  %v786_v8 = vrot.slane %v10373_v1, 3  ;;  %v10395_v13 = vld [vmem:[%s10179_s18 + $0x40] sm:$0x3f] }
  0x27   : > { %8843 = vmatprep.mubr.msk.f32.mxu0 %vm789_vm2, %v10290_v38  ;;  %8973 = vmatprep.mubr.msk.f32.mxu1 %vm789_vm2, %v10290_v38  ;;  %v10390_v7 = vsel %vm747_vm1, %v779_v56, %v781_v61  ;;  %v1083_v9 = vrot.slane %v10376_v2, 2  ;;  %v1084_v17 = vrot.slane %v10379_v3, 2  ;;  %v1533_v20 = vrot.slane %v10182_v4, 4 }
  0x28   : > { %v10398_v14 = vsel %vm747_vm1, %v783_v63, %v784_v0  ;;  %v1534_v21 = vrot.slane %v10185_v5, 4  ;;  %v1086_v29 = vrot.slane %v10395_v13, 2  ;;  %v1536_v31 = vrot.slane %v10188_v6, 4 }
  0x29   : > { %12222 = vst [vmem:[#allocation23_spill] sm:$0xff] %v10398_v14  ;;  %v10414_v32 = vsel %vm747_vm1, %v784_v0, %v786_v8  ;;  %v1085_v37 = vsel %vm1082_vm3, %v1083_v9, %v1084_v17  ;;  %v1088_v40 = vrot.slane %v10182_v4, 2  ;;  %v1089_v45 = vrot.slane %v10185_v5, 2 }
  0x2a   : > { %8844 = vmatmul.mubr.msk.f32.gmra.mrb[6].mxu0 %vm789_vm2, %v10312_v44  ;;  %8974 = vmatmul.mubr.msk.f32.gmra.mrb[6].mxu1 %vm789_vm2, %v10312_v44  ;;  %12223 = vst [vmem:[#allocation24_spill] sm:$0xff] %v10414_v32  ;;  %v10418_v39 = vsel %vm822_vm0, %v1533_v20, %v1534_v21  ;;  %v1538_v47 = vrot.slane %v10194_v10, 4  ;;  %v1539_v48 = vrot.slane %v10197_v11, 4  ;;  %v1087_v53 = vsel %vm1082_vm3, %v1084_v17, %v1086_v29 }
  0x2b   : > { %8846 = vmatprep.mubr.msk.f32.mxu0 %vm789_vm2, %v10316_v46  ;;  %8976 = vmatprep.mubr.msk.f32.mxu1 %vm789_vm2, %v10316_v46  ;;  %v10430_v55 = vsel %vm822_vm0, %v1534_v21, %v1536_v31  ;;  %v1091_v56 = vrot.slane %v10188_v6, 2  ;;  %v1541_v61 = vrot.slane %v10205_v15, 4  ;;  %v1093_v63 = vrot.slane %v10194_v10, 2 }
  0x2c   : > { %v1094_v0 = vrot.slane %v10197_v11, 2  ;;  %v1543_v8 = vrot.slane %v10200_v12, 4  ;;  %v1544_v9 = vrot.slane %v10208_v16, 4  ;;  %v10442_v17 = vsel %vm1082_vm3, %v1088_v40, %v1089_v45  ;;  %v10463_v40 = vld [vmem:[%s12116_s1 + $0x20] sm:$0xf] }
  0x2d   : > { %v10445_v20 = vsel %vm822_vm0, %v1538_v47, %v1539_v48  ;;  %v10451_v21 = vsel %vm1082_vm3, %v1089_v45, %v1091_v56  ;;  %v1096_v29 = vrot.slane %v10205_v15, 2  ;;  %v1546_v31 = vrot.slane %v10220_v22, 4 }
  0x2e   : > { %8847 = vmatmul.mubr.msk.f32.gmra.mrb[8].mxu0 %vm789_vm2, %v10338_v52  ;;  %8977 = vmatmul.mubr.msk.f32.gmra.mrb[8].mxu1 %vm789_vm2, %v10338_v52  ;;  %12224 = vst [vmem:[#allocation25_spill] sm:$0xff] %v10451_v21  ;;  %v10470_v45 = vsel %vm822_vm0, %v1539_v48, %v1541_v61  ;;  %v10473_v47 = vsel %vm1082_vm3, %v1093_v63, %v1094_v0  ;;  %v1099_v56 = vrot.slane %v10208_v16, 2  ;;  %v1549_v48 = vrot.slane %v10233_v25, 4 }
  0x2f   : > { %8849 = vmatprep.mubr.msk.f32.mxu0 %vm789_vm2, %v10342_v54  ;;  %8979 = vmatprep.mubr.msk.f32.mxu1 %vm789_vm2, %v10342_v54  ;;  %v10495_v61 = vsel %vm1082_vm3, %v1094_v0, %v1096_v29  ;;  %v10498_v63 = vsel %vm822_vm0, %v1544_v9, %v1546_v31  ;;  %v1551_v16 = vrot.slane %v10265_v33, 4  ;;  %v1104_v15 = vrot.slane %v10233_v25, 2 }
  0x30   : > { %v1553_v0 = vrot.slane %v10268_v34, 4  ;;  %v1554_v29 = vrot.slane %v10271_v35, 4  ;;  %v1106_v25 = vrot.slane %v10265_v33, 2  ;;  %v1558_v33 = vrot.slane %v10298_v42, 4 }
  0x31   : > { %v1559_v10 = vrot.slane %v10301_v43, 4  ;;  %v2204_v6 = vrot.slane %v10353_v59, 4  ;;  %v1321_v4 = vrot.slane %v10376_v2, 3 }
  0x32   : > { %8850 = vmatmul.mubr.msk.f32.gmra.mrb[10].mxu0 %vm789_vm2, %v10364_v60  ;;  %8980 = vmatmul.mubr.msk.f32.gmra.mrb[10].mxu1 %vm789_vm2, %v10364_v60  ;;  %v10536_v11 = vsel %vm822_vm0, %v1553_v0, %v1554_v29  ;;  %v1561_v0 = vrot.slane %v10321_v49, 4 }
  0x33   : > { %8852 = vmatprep.mubr.msk.f32.mxu0 %vm789_vm2, %v10368_v62  ;;  %8982 = vmatprep.mubr.msk.f32.mxu1 %vm789_vm2, %v10368_v62 }
  0x36   : > { %8853 = vmatmul.mubr.msk.f32.gmra.mrb[12].mxu0 %vm789_vm2, %v10390_v7  ;;  %8983 = vmatmul.mubr.msk.f32.gmra.mrb[12].mxu1 %vm789_vm2, %v10390_v7 }
  0x37   : > { %8855 = vmatprep.mubr.msk.f32.mxu0 %vm789_vm2, %v10398_v14  ;;  %8985 = vmatprep.mubr.msk.f32.mxu1 %vm789_vm2, %v10398_v14 }
  0x3a   : > { %8856 = vmatmul.mubr.msk.f32.gmra.mrb[14].mxu0 %vm789_vm2, %v10414_v32  ;;  %8986 = vmatmul.mubr.msk.f32.gmra.mrb[14].mxu1 %vm789_vm2, %v10414_v32 }
  0x3b   : > { %8860 = vmatprep.mubr.msk.f32.mxu0 %vm789_vm2, %v1085_v37  ;;  %8990 = vmatprep.mubr.msk.f32.mxu1 %vm789_vm2, %v10418_v39  ;;  %v10458_v37 = vld [vmem:[%s12116_s1 + $0xc] sm:$0xf] }
  0x3e   : > { %8861 = vmatmul.mubr.msk.f32.vlgmr.msra.gmra.mrb[16].mxu0 %vm789_vm2, %v1087_v53  ;;  %8991 = vmatmul.mubr.msk.f32.vlgmr.msra.gmra.mrb[0].mxu1 %vm789_vm2, %v10430_v55  ;;  %v10476_v53 = vsel %vm822_vm0, %v1543_v8, %v1544_v9  ;;  %v1101_v8 = vrot.slane %v10220_v22, 2  ;;  %v1556_v22 = vrot.slane %v10295_v41, 4 }
  0x3f   : > { %8885 = vmatpush3.msk.msra.mxu0 %vm822_vm0, %v10242_v26  ;;  %9015 = vmatpush3.msk.msra.mxu1 %vm822_vm0, %v10247_v27  ;;  %v1098_v26 = vrot.slane %v10200_v12, 2  ;;  %v1548_v27 = vrot.slane %v10230_v24, 4  ;;  %v1103_v12 = vrot.slane %v10230_v24, 2 }
  0x40   : > { %8863 = vmatprep.mubr.msk.f32.mxu0 %vm789_vm2, %v10442_v17  ;;  %8993 = vmatprep.mubr.msk.f32.mxu1 %vm789_vm2, %v10445_v20  ;;  %v10521_v24 = vsel %vm1082_vm3, %v1099_v56, %v1101_v8  ;;  %v1109_v8 = vrot.slane %v10271_v35, 2  ;;  %v1113_v35 = vrot.slane %v10298_v42, 2 }
  0x41   : > { %8910 = vmatprep.subr.msk.mxu0 %vm822_vm0, %v10458_v37  ;;  %9040 = vmatprep.subr.msk.mxu1 %vm822_vm0, %v10463_v40  ;;  %v10511_v9 = vsel %vm1082_vm3, %v1098_v26, %v1099_v56  ;;  %v10514_v31 = vsel %vm822_vm0, %v1548_v27, %v1549_v48  ;;  %v10530_v26 = vsel %vm822_vm0, %v1549_v48, %v1551_v16  ;;  %v1108_v56 = vrot.slane %v10268_v34, 2 }
  0x42   : > { %8864 = vmatmul.mubr.msk.f32.gmra.mrb[18].mxu0 %vm789_vm2, %v10451_v21  ;;  %8994 = vmatmul.mubr.msk.f32.gmra.mrb[2].mxu1 %vm789_vm2, %v10470_v45  ;;  %v10533_v27 = vsel %vm1082_vm3, %v1103_v12, %v1104_v15  ;;  %v10547_v12 = vsel %vm1082_vm3, %v1104_v15, %v1106_v25  ;;  %v10550_v16 = vsel %vm822_vm0, %v1554_v29, %v1556_v22  ;;  %v1111_v48 = vrot.slane %v10295_v41, 2 }
  0x43   : > { %8866 = vmatprep.mubr.msk.f32.mxu0 %vm789_vm2, %v10473_v47  ;;  %8996 = vmatprep.mubr.msk.f32.mxu1 %vm789_vm2, %v10476_v53  ;;  %v1114_v34 = vrot.slane %v10301_v43, 2  ;;  %v1563_v15 = vrot.slane %v10324_v50, 4  ;;  %v1564_v25 = vrot.slane %v10327_v51, 4  ;;  %v10563_v22 = vsel %vm1082_vm3, %v1108_v56, %v1109_v8 }
  0x44   : > { %v10566_v29 = vsel %vm822_vm0, %v1558_v33, %v1559_v10  ;;  %v10573_v42 = vsel %vm1082_vm3, %v1109_v8, %v1111_v48  ;;  %v10576_v43 = vsel %vm822_vm0, %v1559_v10, %v1561_v0  ;;  %v1116_v41 = vrot.slane %v10321_v49, 2 }
  0x45   : > { %v10583_v33 = vsel %vm1082_vm3, %v1113_v35, %v1114_v34  ;;  %v10586_v56 = vsel %vm822_vm0, %v1563_v15, %v1564_v25  ;;  %v1566_v8 = vrot.slane %v10347_v57, 4  ;;  %v1118_v48 = vrot.slane %v10324_v50, 2 }
  0x46   : > { %8867 = vmatmul.mubr.msk.f32.gmra.mrb[20].mxu0 %vm789_vm2, %v10495_v61  ;;  %8997 = vmatmul.mubr.msk.f32.gmra.mrb[4].mxu1 %vm789_vm2, %v10498_v63  ;;  %v1119_v10 = vrot.slane %v10327_v51, 2  ;;  %v2203_v0 = vrot.slane %v10350_v58, 4  ;;  %v10603_v35 = vsel %vm1082_vm3, %v1114_v34, %v1116_v41  ;;  %v1121_v51 = vrot.slane %v10347_v57, 2 }
  0x47   : > { %8869 = vmatprep.mubr.msk.f32.mxu0 %vm789_vm2, %v10511_v9  ;;  %8999 = vmatprep.mubr.msk.f32.mxu1 %vm789_vm2, %v10514_v31  ;;  %v10606_v50 = vsel %vm822_vm0, %v1564_v25, %v1566_v8  ;;  %v2206_v15 = vrot.slane %v10373_v1, 4  ;;  %v1322_v21 = vrot.slane %v10379_v3, 3  ;;  %v1324_v57 = vrot.slane %v10395_v13, 3  ;;  %v8012_v8 = vld [vmem:[%s12116_s1 + $0x24] sm:$0xf] }
  0x48   : > { %v10611_v49 = vsel %vm1082_vm3, %v1118_v48, %v1119_v10  ;;  %v10614_v5 = vsel %vm822_vm0, %v2203_v0, %v2204_v6  ;;  %v10627_v34 = vsel %vm1082_vm3, %v1119_v10, %v1121_v51  ;;  %v10697_v48 = vld [vmem:[%s10179_s18 + $0x110] sm:$0xff]  ;;  %v10714_v51 = vld [vmem:[%s10179_s18 + $0x118] sm:$0x3f] }
  0x49   : > { %v10630_v41 = vsel %vm822_vm0, %v2204_v6, %v2206_v15  ;;  %v10634_v25 = vsel %vm747_vm1, %v1321_v4, %v1322_v21  ;;  %v10645_v6 = vsel %vm747_vm1, %v1322_v21, %v1324_v57  ;;  %v7922_v4 = vld [vmem:[%s12116_s1 + $0x10] sm:$0xf]  ;;  %v1798_v21 = vrot.slane %v10350_v58, 2 }
  0x4a   : > { %8870 = vmatmul.mubr.msk.f32.gmra.mrb[22].mxu0 %vm789_vm2, %v10521_v24  ;;  %9000 = vmatmul.mubr.msk.f32.gmra.mrb[6].mxu1 %vm789_vm2, %v10530_v26  ;;  %v1801_v58 = vrot.slane %v10373_v1, 2  ;;  %v2414_v0 = vrot.slane %v10697_v48, 2  ;;  %v2416_v15 = vrot.slane %v10714_v51, 2 }
  0x4b   : > { %8872 = vmatprep.mubr.msk.f32.mxu0 %vm789_vm2, %v10533_v27  ;;  %9002 = vmatprep.mubr.msk.f32.mxu1 %vm789_vm2, %v10536_v11 }
  0x4e   : > { %8873 = vmatmul.mubr.msk.f32.gmra.mrb[24].mxu0 %vm789_vm2, %v10547_v12  ;;  %9003 = vmatmul.mubr.msk.f32.gmra.mrb[8].mxu1 %vm789_vm2, %v10550_v16 }
  0x4f   : > { %8875 = vmatprep.mubr.msk.f32.mxu0 %vm789_vm2, %v10563_v22  ;;  %9005 = vmatprep.mubr.msk.f32.mxu1 %vm789_vm2, %v10566_v29 }
  0x52   : > { %8876 = vmatmul.mubr.msk.f32.gmra.mrb[26].mxu0 %vm789_vm2, %v10573_v42  ;;  %9006 = vmatmul.mubr.msk.f32.gmra.mrb[10].mxu1 %vm789_vm2, %v10576_v43 }
  0x53   : > { %8878 = vmatprep.mubr.msk.f32.mxu0 %vm789_vm2, %v10583_v33  ;;  %9008 = vmatprep.mubr.msk.f32.mxu1 %vm789_vm2, %v10586_v56 }
  0x56   : > { %8879 = vmatmul.mubr.msk.f32.gmra.mrb[28].mxu0 %vm789_vm2, %v10603_v35  ;;  %9009 = vmatmul.mubr.msk.f32.gmra.mrb[12].mxu1 %vm789_vm2, %v10606_v50 }
  0x57   : > { %8881 = vmatprep.mubr.msk.f32.mxu0 %vm789_vm2, %v10611_v49  ;;  %9011 = vmatprep.mubr.msk.f32.mxu1 %vm789_vm2, %v10614_v5 }
  0x5a   : > { %8882 = vmatmul.mubr.msk.f32.gmra.mrb[30].mxu0 %vm789_vm2, %v10627_v34  ;;  %9012 = vmatmul.mubr.msk.f32.gmra.mrb[14].mxu1 %vm789_vm2, %v10630_v41 }
  0x5b   : > { %8886 = vmatprep.mubr.msk.f32.mxu0 %vm789_vm2, %v10634_v25  ;;  %9016 = vmatprep.mubr.msk.f32.mxu1 %vm789_vm2, %v10473_v47 }
  0x5e   : > { %8887 = vmatmul.mubr.msk.f32.vlgmr.msra.gmra.mrb[16].mxu0 %vm789_vm2, %v10645_v6  ;;  %9017 = vmatmul.mubr.msk.f32.vlgmr.msra.gmra.mrb[0].mxu1 %vm789_vm2, %v10495_v61 }
  0x5f   : > { %8911 = vmatpush3.msk.msra.mxu0 %vm822_vm0, %v10458_v37  ;;  %9041 = vmatpush3.msk.msra.mxu1 %vm822_vm0, %v10463_v40  ;;  %v1799_v37 = vrot.slane %v10353_v59, 2  ;;  %v10694_v40 = vld [vmem:[%s10179_s18 + $0x108] sm:$0xff] }
  0x60   : > { %8889 = vmatprep.mubr.msk.f32.mxu0 %vm789_vm2, %v10212_v18  ;;  %9019 = vmatprep.mubr.msk.f32.mxu1 %vm789_vm2, %v10511_v9  ;;  %v2413_v10 = vrot.slane %v10694_v40, 2 }
  0x61   : > { %8936 = vmatprep.subr.msk.mxu0 %vm822_vm0, %v7922_v4  ;;  %9066 = vmatprep.subr.msk.mxu1 %vm822_vm0, %v8012_v8  ;;  %v10709_v59 = vsel %vm1082_vm3, %v1798_v21, %v1799_v37  ;;  %v10725_v1 = vsel %vm1082_vm3, %v1799_v37, %v1801_v58  ;;  %v1528_v21 = vrot.slane %v10376_v2, 4  ;;  %v2417_v37 = vsel %vm1082_vm3, %v2414_v0, %v2416_v15  ;;  %v8192_v15 = vld [vmem:[%s12116_s1 + $0x4c] sm:$0xf] }
  0x62   : > { %8890 = vmatmul.mubr.msk.f32.gmra.mrb[18].mxu0 %vm789_vm2, %v10215_v19  ;;  %9020 = vmatmul.mubr.msk.f32.gmra.mrb[2].mxu1 %vm789_vm2, %v10521_v24  ;;  %v2415_v57 = vsel %vm1082_vm3, %v2413_v10, %v2414_v0  ;;  %v1529_v19 = vrot.slane %v10379_v3, 4  ;;  %v1531_v58 = vrot.slane %v10395_v13, 4  ;;  %v8030_v0 = vld [vmem:[%s12116_s1 + $0x28] sm:$0xf] }
  0x63   : > { %8892 = vmatprep.mubr.msk.f32.mxu0 %vm789_vm2, %v10227_v23  ;;  %9022 = vmatprep.mubr.msk.f32.mxu1 %vm789_vm2, %v10533_v27 }
  0x64   : > { %v1530_v10 = vsel %vm822_vm0, %v1528_v21, %v1529_v19  ;;  %v1532_v18 = vsel %vm822_vm0, %v1529_v19, %v1531_v58  ;;  %v2621_v19 = vrot.slane %v10697_v48, 3  ;;  %v8210_v21 = vld [vmem:[%s12116_s1 + $0x50] sm:$0xf] }
  0x66   : > { %8893 = vmatmul.mubr.msk.f32.gmra.mrb[20].mxu0 %vm789_vm2, %v10252_v28  ;;  %9023 = vmatmul.mubr.msk.f32.gmra.mrb[4].mxu1 %vm789_vm2, %v10547_v12 }
  0x67   : > { %8895 = vmatprep.mubr.msk.f32.mxu0 %vm789_vm2, %v10260_v30  ;;  %9025 = vmatprep.mubr.msk.f32.mxu1 %vm789_vm2, %v10563_v22 }
  0x6a   : > { %8896 = vmatmul.mubr.msk.f32.gmra.mrb[22].mxu0 %vm789_vm2, %v10286_v36  ;;  %9026 = vmatmul.mubr.msk.f32.gmra.mrb[6].mxu1 %vm789_vm2, %v10573_v42 }
  0x6b   : > { %8898 = vmatprep.mubr.msk.f32.mxu0 %vm789_vm2, %v10290_v38  ;;  %9028 = vmatprep.mubr.msk.f32.mxu1 %vm789_vm2, %v10583_v33 }
  0x6e   : > { %8899 = vmatmul.mubr.msk.f32.gmra.mrb[24].mxu0 %vm789_vm2, %v10312_v44  ;;  %9029 = vmatmul.mubr.msk.f32.gmra.mrb[8].mxu1 %vm789_vm2, %v10603_v35 }
  0x6f   : > { %8901 = vmatprep.mubr.msk.f32.mxu0 %vm789_vm2, %v10316_v46  ;;  %9031 = vmatprep.mubr.msk.f32.mxu1 %vm789_vm2, %v10611_v49 }
  0x72   : > { %8902 = vmatmul.mubr.msk.f32.gmra.mrb[26].mxu0 %vm789_vm2, %v10338_v52  ;;  %9032 = vmatmul.mubr.msk.f32.gmra.mrb[10].mxu1 %vm789_vm2, %v10627_v34 }
  0x73   : > { %8904 = vmatprep.mubr.msk.f32.mxu0 %vm789_vm2, %v10342_v54  ;;  %9034 = vmatprep.mubr.msk.f32.mxu1 %vm789_vm2, %v10709_v59 }
  0x76   : > { %8905 = vmatmul.mubr.msk.f32.gmra.mrb[28].mxu0 %vm789_vm2, %v10364_v60  ;;  %9035 = vmatmul.mubr.msk.f32.gmra.mrb[12].mxu1 %vm789_vm2, %v10725_v1 }
  0x77   : > { %8907 = vmatprep.mubr.msk.f32.mxu0 %vm789_vm2, %v10368_v62  ;;  %9037 = vmatprep.mubr.msk.f32.mxu1 %vm789_vm2, %v2415_v57  ;;  %v8048_v57 = vld [vmem:[%s12116_s1 + $0x2c] sm:$0xf] }
  0x7a   : > { %8908 = vmatmul.mubr.msk.f32.gmra.mrb[30].mxu0 %vm789_vm2, %v10390_v7  ;;  %9038 = vmatmul.mubr.msk.f32.gmra.mrb[14].mxu1 %vm789_vm2, %v2417_v37 }
  0x7b   : > { %8912 = vmatprep.mubr.msk.f32.mxu0 %vm789_vm2, %v1530_v10  ;;  %9042 = vmatprep.mubr.msk.f32.mxu1 %vm789_vm2, %v10227_v23  ;;  %v12233_v10 = vld [vmem:[#allocation9_spill] sm:$0xff] }
  0x7e   : > { %8913 = vmatmul.mubr.msk.f32.vlgmr.msra.gmra.mrb[16].mxu0 %vm789_vm2, %v1532_v18  ;;  %9043 = vmatmul.mubr.msk.f32.vlgmr.msra.gmra.mrb[0].mxu1 %vm789_vm2, %v10252_v28  ;;  %v2620_v18 = vrot.slane %v10694_v40, 3 }
  0x7f   : > { %8937 = vmatpush3.msk.msra.mxu0 %vm822_vm0, %v7922_v4  ;;  %9067 = vmatpush3.msk.msra.mxu1 %vm822_vm0, %v8012_v8  ;;  %v12227_v8 = vld [vmem:[#allocation25_spill] sm:$0xff] }
  0x80   : > { %8915 = vmatprep.mubr.msk.f32.mxu0 %vm789_vm2, %v10418_v39  ;;  %9045 = vmatprep.mubr.msk.f32.mxu1 %vm789_vm2, %v10260_v30  ;;  %v2623_v39 = vrot.slane %v10714_v51, 3 }
  0x81   : > { %9092 = vmatprep.subr.msk.mxu0 %vm822_vm0, %v8030_v0  ;;  %9326 = vmatprep.subr.msk.mxu1 %vm822_vm0, %v8192_v15 }
  0x82   : > { %8916 = vmatmul.mubr.msk.f32.gmra.mrb[18].mxu0 %vm789_vm2, %v10430_v55  ;;  %9046 = vmatmul.mubr.msk.f32.gmra.mrb[2].mxu1 %vm789_vm2, %v10286_v36  ;;  %v10809_v55 = vsel %vm747_vm1, %v2620_v18, %v2621_v19  ;;  %v10820_v4 = vsel %vm747_vm1, %v2621_v19, %v2623_v39  ;;  %v12234_v18 = vld [vmem:[#allocation8_spill] sm:$0xff]  ;;  %v12235_v39 = vld [vmem:[#allocation10_spill] sm:$0xff] }
  0x83   : > { %8918 = vmatprep.mubr.msk.f32.mxu0 %vm789_vm2, %v10445_v20  ;;  %9048 = vmatprep.mubr.msk.f32.mxu1 %vm789_vm2, %v10290_v38  ;;  %12225 = vst [vmem:[#allocation26_spill] sm:$0xff] %v10809_v55  ;;  %12226 = vst [vmem:[#allocation27_spill] sm:$0xff] %v10820_v4  ;;  %v3150_v19 = vrot.slane %v12234_v18, 1 }
  0x86   : > { %8919 = vmatmul.mubr.msk.f32.gmra.mrb[20].mxu0 %vm789_vm2, %v10470_v45  ;;  %9049 = vmatmul.mubr.msk.f32.gmra.mrb[4].mxu1 %vm789_vm2, %v10312_v44 }
  0x87   : > { %8921 = vmatprep.mubr.msk.f32.mxu0 %vm789_vm2, %v10476_v53  ;;  %9051 = vmatprep.mubr.msk.f32.mxu1 %vm789_vm2, %v10316_v46 }
  0x8a   : > { %8922 = vmatmul.mubr.msk.f32.gmra.mrb[22].mxu0 %vm789_vm2, %v10498_v63  ;;  %9052 = vmatmul.mubr.msk.f32.gmra.mrb[6].mxu1 %vm789_vm2, %v10338_v52 }
  0x8b   : > { %8924 = vmatprep.mubr.msk.f32.mxu0 %vm789_vm2, %v10514_v31  ;;  %9054 = vmatprep.mubr.msk.f32.mxu1 %vm789_vm2, %v10342_v54 }
  0x8e   : > { %8925 = vmatmul.mubr.msk.f32.gmra.mrb[24].mxu0 %vm789_vm2, %v10530_v26  ;;  %9055 = vmatmul.mubr.msk.f32.gmra.mrb[8].mxu1 %vm789_vm2, %v10364_v60 }
  0x8f   : > { %8927 = vmatprep.mubr.msk.f32.mxu0 %vm789_vm2, %v10536_v11  ;;  %9057 = vmatprep.mubr.msk.f32.mxu1 %vm789_vm2, %v10368_v62 }
  0x92   : > { %8928 = vmatmul.mubr.msk.f32.gmra.mrb[26].mxu0 %vm789_vm2, %v10550_v16  ;;  %9058 = vmatmul.mubr.msk.f32.gmra.mrb[10].mxu1 %vm789_vm2, %v10390_v7 }
  0x93   : > { %8930 = vmatprep.mubr.msk.f32.mxu0 %vm789_vm2, %v10566_v29  ;;  %9060 = vmatprep.mubr.msk.f32.mxu1 %vm789_vm2, %v10398_v14 }
  0x96   : > { %8931 = vmatmul.mubr.msk.f32.gmra.mrb[28].mxu0 %vm789_vm2, %v10576_v43  ;;  %9061 = vmatmul.mubr.msk.f32.gmra.mrb[12].mxu1 %vm789_vm2, %v10414_v32 }
  0x97   : > { %8933 = vmatprep.mubr.msk.f32.mxu0 %vm789_vm2, %v10586_v56  ;;  %9063 = vmatprep.mubr.msk.f32.mxu1 %vm789_vm2, %v10809_v55 }
  0x9a   : > { %8934 = vmatmul.mubr.msk.f32.gmra.mrb[30].mxu0 %vm789_vm2, %v10606_v50  ;;  %9064 = vmatmul.mubr.msk.f32.gmra.mrb[14].mxu1 %vm789_vm2, %v10820_v4 }
  0x9b   : > { %8938 = vmatprep.mubr.msk.f32.mxu0 %vm789_vm2, %v10442_v17  ;;  %9068 = vmatprep.mubr.msk.f32.mxu1 %vm789_vm2, %v10445_v20  ;;  %v10883_v17 = vld [vmem:[%s10179_s18 + $0x18] sm:$0xff]  ;;  %v10886_v20 = vld [vmem:[%s10179_s18 + $0x20] sm:$0xff] }
  0x9e   : > { %8939 = vmatmul.mubr.msk.f32.vlgmr.msra.gmra.mrb[16].mxu0 %vm789_vm2, %v12227_v8  ;;  %9069 = vmatmul.mubr.msk.f32.vlgmr.msra.gmra.mrb[0].mxu1 %vm789_vm2, %v10470_v45  ;;  %v3130_v45 = vrot.slane %v10883_v17, 1  ;;  %v3151_v8 = vrot.slane %v12235_v39, 1 }
  0x9f   : > { %9093 = vmatpush3.msk.msra.mxu0 %vm822_vm0, %v8030_v0  ;;  %9327 = vmatpush3.msk.msra.mxu1 %vm822_vm0, %v8192_v15  ;;  %v3148_v0 = vrot.slane %v12233_v10, 1 }
  0xa0   : > { %8941 = vmatprep.mubr.msk.f32.mxu0 %vm789_vm2, %v10473_v47  ;;  %9071 = vmatprep.mubr.msk.f32.mxu1 %vm789_vm2, %v10476_v53  ;;  %v3131_v47 = vrot.slane %v10886_v20, 1  ;;  %v10901_v53 = vld [vmem:[%s10179_s18 + $0x28] sm:$0x3f] }
  0xa1   : > { %9118 = vmatprep.subr.msk.mxu0 %vm822_vm0, %v8048_v57  ;;  %9352 = vmatprep.subr.msk.mxu1 %vm822_vm0, %v8210_v21 }
  0xa2   : > { %8942 = vmatmul.mubr.msk.f32.gmra.mrb[18].mxu0 %vm789_vm2, %v10495_v61  ;;  %9072 = vmatmul.mubr.msk.f32.gmra.mrb[2].mxu1 %vm789_vm2, %v10498_v63  ;;  %v3132_v61 = vsel %vm3129_vm4, %v3130_v45, %v3131_v47  ;;  %v10914_v63 = vld [vmem:[%s10179_s18] sm:$0xff] }
  0xa3   : > { %8944 = vmatprep.mubr.msk.f32.mxu0 %vm789_vm2, %v10511_v9  ;;  %9074 = vmatprep.mubr.msk.f32.mxu1 %vm789_vm2, %v10514_v31  ;;  %v3135_v9 = vrot.slane %v10376_v2, 1  ;;  %v3136_v31 = vrot.slane %v10379_v3, 1  ;;  %v12238_v45 = vld [vmem:[#allocation15_spill] sm:$0xff] }
  0xa6   : > { %8945 = vmatmul.mubr.msk.f32.gmra.mrb[20].mxu0 %vm789_vm2, %v10521_v24  ;;  %9075 = vmatmul.mubr.msk.f32.gmra.mrb[4].mxu1 %vm789_vm2, %v10530_v26  ;;  %v2828_v24 = vrot.slane %v10697_v48, 4 }
  0xa7   : > { %8947 = vmatprep.mubr.msk.f32.mxu0 %vm789_vm2, %v10533_v27  ;;  %9077 = vmatprep.mubr.msk.f32.mxu1 %vm789_vm2, %v10536_v11  ;;  %v2827_v11 = vrot.slane %v10694_v40, 4  ;;  %v10926_v27 = vld [vmem:[%s10179_s18 + $0x8] sm:$0xff] }
  0xaa   : > { %8948 = vmatmul.mubr.msk.f32.gmra.mrb[22].mxu0 %vm789_vm2, %v10547_v12  ;;  %9078 = vmatmul.mubr.msk.f32.gmra.mrb[6].mxu1 %vm789_vm2, %v10550_v16  ;;  %v3138_v12 = vrot.slane %v10395_v13, 1  ;;  %v12228_v16 = vld [vmem:[#allocation3_spill] sm:$0xff] }
  0xab   : > { %8950 = vmatprep.mubr.msk.f32.mxu0 %vm789_vm2, %v10563_v22  ;;  %9080 = vmatprep.mubr.msk.f32.mxu1 %vm789_vm2, %v10566_v29  ;;  %v3140_v22 = vrot.slane %v12228_v16, 1  ;;  %v12229_v29 = vld [vmem:[#allocation4_spill] sm:$0xff] }
  0xae   : > { %8951 = vmatmul.mubr.msk.f32.gmra.mrb[24].mxu0 %vm789_vm2, %v10573_v42  ;;  %9081 = vmatmul.mubr.msk.f32.gmra.mrb[8].mxu1 %vm789_vm2, %v10576_v43  ;;  %v2830_v42 = vrot.slane %v10714_v51, 4  ;;  %v2829_v43 = vsel %vm822_vm0, %v2827_v11, %v2828_v24 }
  0xaf   : > { %8953 = vmatprep.mubr.msk.f32.mxu0 %vm789_vm2, %v10583_v33  ;;  %9083 = vmatprep.mubr.msk.f32.mxu1 %vm789_vm2, %v10586_v56  ;;  %v3141_v33 = vrot.slane %v12229_v29, 1  ;;  %v3137_v56 = vsel %vm3129_vm4, %v3135_v9, %v3136_v31 }
  0xb1   : > { %v10953_v48 = vsel %vm3129_vm4, %v3140_v22, %v3141_v33 }
  0xb2   : > { %8954 = vmatmul.mubr.msk.f32.gmra.mrb[26].mxu0 %vm789_vm2, %v10603_v35  ;;  %9084 = vmatmul.mubr.msk.f32.gmra.mrb[10].mxu1 %vm789_vm2, %v10606_v50  ;;  %v10938_v35 = vld [vmem:[%s12116_s1 + $0x30] sm:$0xf]  ;;  %v10943_v50 = vld [vmem:[%s12116_s1 + $0x54] sm:$0xf] }
  0xb3   : > { %8956 = vmatprep.mubr.msk.f32.mxu0 %vm789_vm2, %v10611_v49  ;;  %9086 = vmatprep.mubr.msk.f32.mxu1 %vm789_vm2, %v10614_v5  ;;  %v2831_v5 = vsel %vm822_vm0, %v2828_v24, %v2830_v42  ;;  %v3133_v49 = vrot.slane %v10901_v53, 1  ;;  %v10990_v24 = vsel %vm3129_vm4, %v3150_v19, %v3151_v8  ;;  %v12237_v42 = vld [vmem:[#allocation14_spill] sm:$0xff]  ;;  %v3369_v19 = vrot.slane %v10886_v20, 3 }
  0xb5   : > { %v3134_v26 = vsel %vm3129_vm4, %v3131_v47, %v3133_v49  ;;  %v3156_v47 = vrot.slane %v12238_v45, 1  ;;  %v12239_v49 = vld [vmem:[#allocation16_spill] sm:$0xff] }
  0xb6   : > { %8957 = vmatmul.mubr.msk.f32.gmra.mrb[28].mxu0 %vm789_vm2, %v10627_v34  ;;  %9087 = vmatmul.mubr.msk.f32.gmra.mrb[12].mxu1 %vm789_vm2, %v10630_v41  ;;  %v3139_v34 = vsel %vm3129_vm4, %v3136_v31, %v3138_v12  ;;  %v12230_v41 = vld [vmem:[#allocation5_spill] sm:$0xff]  ;;  %v12241_v12 = vld [vmem:[#allocation18_spill] sm:$0xff] }
  0xb7   : > { %8959 = vmatprep.mubr.msk.f32.mxu0 %vm789_vm2, %v10709_v59  ;;  %9089 = vmatprep.mubr.msk.f32.mxu1 %vm789_vm2, %v2829_v43  ;;  %v3143_v40 = vrot.slane %v12230_v41, 1  ;;  %v12231_v59 = vld [vmem:[#allocation6_spill] sm:$0xff]  ;;  %v3155_v43 = vrot.slane %v12237_v42, 1  ;;  %v12240_v31 = vld [vmem:[#allocation17_spill] sm:$0xff] }
  0xb8   : > { %v3145_v51 = vrot.slane %v12231_v59, 1 }
  0xb9   : > { %v10969_v58 = vsel %vm3129_vm4, %v3141_v33, %v3143_v40  ;;  %v11007_v9 = vsel %vm3129_vm4, %v3155_v43, %v3156_v47  ;;  %v12244_v40 = vld [vmem:[#allocation21_spill] sm:$0xff] }
  0xba   : > { %8960 = vmatmul.mubr.msk.f32.gmra.mrb[30].mxu0 %vm789_vm2, %v10725_v1  ;;  %9090 = vmatmul.mubr.msk.f32.gmra.mrb[14].mxu1 %vm789_vm2, %v2831_v5  ;;  %v12232_v1 = vld [vmem:[#allocation7_spill] sm:$0xff] }
  0xbb   : > { %9094 = vmatprep.mubr.msk.f32.mxu0 %vm789_vm2, %v3132_v61  ;;  %9328 = vmatprep.mubr.msk.f32.mxu1 %vm789_vm2, %v10914_v63  ;;  %v3146_v37 = vrot.slane %v12232_v1, 1  ;;  %v3158_v61 = vrot.slane %v12239_v49, 1 }
  0xbd   : > { %v10973_v15 = vsel %vm3129_vm4, %v3145_v51, %v3146_v37  ;;  %v11020_v22 = vsel %vm3129_vm4, %v3156_v47, %v3158_v61  ;;  %v5411_v51 = vrot.slane %v10914_v63, 3  ;;  %v11079_v61 = vld [vmem:[%s12116_s1 + $0x34] sm:$0xf] }
  0xbe   : > { %9095 = vmatmul.mubr.msk.f32.vlgmr.msra.gmra.mrb[32].mxu0 %vm789_vm2, %v3134_v26  ;;  %9329 = vmatmul.mubr.msk.f32.vlgmr.msra.gmra.mrb[16].mxu1 %vm789_vm2, %v10926_v27  ;;  %v3160_v26 = vrot.slane %v12240_v31, 1 }
  0xbf   : > { %9119 = vmatpush3.msk.msra.mxu0 %vm822_vm0, %v8048_v57  ;;  %9353 = vmatpush3.msk.msra.mxu1 %vm822_vm0, %v8210_v21  ;;  %v10986_v57 = vsel %vm3129_vm4, %v3146_v37, %v3148_v0  ;;  %v12236_v21 = vld [vmem:[#allocation13_spill] sm:$0xff]  ;;  %v12245_v37 = vld [vmem:[#allocation22_spill] sm:$0xff] }
  0xc0   : > { %9097 = vmatprep.mubr.msk.f32.mxu0 %vm789_vm2, %v3137_v56  ;;  %9331 = vmatprep.mubr.msk.f32.mxu1 %vm789_vm2, %v10883_v17  ;;  %v3153_v11 = vrot.slane %v12236_v21, 1  ;;  %v3168_v10 = vrot.slane %v12245_v37, 1  ;;  %v3581_v37 = vrot.slane %v10376_v2, 5 }
  0xc1   : > { %9144 = vmatprep.subr.msk.mxu0 %vm822_vm0, %v10938_v35  ;;  %9378 = vmatprep.subr.msk.mxu1 %vm822_vm0, %v10943_v50 }
  0xc2   : > { %9098 = vmatmul.mubr.msk.f32.gmra.mrb[34].mxu0 %vm789_vm2, %v3139_v34  ;;  %9332 = vmatmul.mubr.msk.f32.gmra.mrb[18].mxu1 %vm789_vm2, %v10886_v20  ;;  %v11003_v5 = vsel %vm3129_vm4, %v3151_v8, %v3153_v11  ;;  %v12243_v34 = vld [vmem:[#allocation20_spill] sm:$0xff]  ;;  %v11048_v8 = vld [vmem:[%s10179_s18 + $0x10] sm:$0x3f]  ;;  %v3371_v11 = vrot.slane %v10901_v53, 3 }
  0xc3   : > { %9100 = vmatprep.mubr.msk.f32.mxu0 %vm789_vm2, %v10953_v48  ;;  %9334 = vmatprep.mubr.msk.f32.mxu1 %vm789_vm2, %v10376_v2  ;;  %v3165_v41 = vrot.slane %v12243_v34, 1  ;;  %v5622_v34 = vrot.slane %v11048_v8, 6 }
  0xc6   : > { %9101 = vmatmul.mubr.msk.f32.gmra.mrb[36].mxu0 %vm789_vm2, %v10969_v58  ;;  %9335 = vmatmul.mubr.msk.f32.gmra.mrb[20].mxu1 %vm789_vm2, %v10379_v3 }
  0xc7   : > { %9103 = vmatprep.mubr.msk.f32.mxu0 %vm789_vm2, %v10973_v15  ;;  %9337 = vmatprep.mubr.msk.f32.mxu1 %vm789_vm2, %v12228_v16  ;;  %v3161_v16 = vrot.slane %v12241_v12, 1 }
  0xc9   : > { %v11024_v56 = vsel %vm3129_vm4, %v3160_v26, %v3161_v16  ;;  %v3576_v26 = vrot.slane %v10883_v17, 5 }
  0xca   : > { %9104 = vmatmul.mubr.msk.f32.gmra.mrb[38].mxu0 %vm789_vm2, %v10986_v57  ;;  %9338 = vmatmul.mubr.msk.f32.gmra.mrb[22].mxu1 %vm789_vm2, %v12229_v29  ;;  %v12242_v29 = vld [vmem:[#allocation19_spill] sm:$0xff] }
  0xcb   : > { %9106 = vmatprep.mubr.msk.f32.mxu0 %vm789_vm2, %v10990_v24  ;;  %9340 = vmatprep.mubr.msk.f32.mxu1 %vm789_vm2, %v12231_v59  ;;  %v3163_v33 = vrot.slane %v12242_v29, 1  ;;  %v3166_v59 = vrot.slane %v12244_v40, 1 }
  0xcd   : > { %v11042_v0 = vsel %vm3129_vm4, %v3165_v41, %v3166_v59  ;;  %v11059_v21 = vsel %vm3129_vm4, %v3166_v59, %v3168_v10  ;;  %v3582_v10 = vrot.slane %v10379_v3, 5 }
  0xce   : > { %9107 = vmatmul.mubr.msk.f32.gmra.mrb[40].mxu0 %vm789_vm2, %v11003_v5  ;;  %9341 = vmatmul.mubr.msk.f32.gmra.mrb[24].mxu1 %vm789_vm2, %v12232_v1  ;;  %v11038_v1 = vsel %vm3129_vm4, %v3161_v16, %v3163_v33  ;;  %v5620_v16 = vrot.slane %v10926_v27, 6 }
  0xcf   : > { %9109 = vmatprep.mubr.msk.f32.mxu0 %vm789_vm2, %v11007_v9  ;;  %9343 = vmatprep.mubr.msk.f32.mxu1 %vm789_vm2, %v12234_v18  ;;  %v3368_v18 = vrot.slane %v10883_v17, 3 }
  0xd1   : > { %v3370_v43 = vsel %vm747_vm1, %v3368_v18, %v3369_v19 }
  0xd2   : > { %9110 = vmatmul.mubr.msk.f32.gmra.mrb[42].mxu0 %vm789_vm2, %v11020_v22  ;;  %9344 = vmatmul.mubr.msk.f32.gmra.mrb[26].mxu1 %vm789_vm2, %v12235_v39  ;;  %v5412_v39 = vrot.slane %v10926_v27, 3 }
  0xd3   : > { %9112 = vmatprep.mubr.msk.f32.mxu0 %vm789_vm2, %v11024_v56  ;;  %9346 = vmatprep.mubr.msk.f32.mxu1 %vm789_vm2, %v12237_v42  ;;  %v5414_v42 = vrot.slane %v11048_v8, 3  ;;  %v5623_v8 = vsel %vm5618_vm6, %v5620_v16, %v5622_v34  ;;  %v5630_v34 = vrot.slane %v10379_v3, 6 }
  0xd4   : > { %v5413_v47 = vsel %vm747_vm1, %v5411_v51, %v5412_v39 }
  0xd5   : > { %v5415_v49 = vsel %vm747_vm1, %v5412_v39, %v5414_v42 }
  0xd6   : > { %9113 = vmatmul.mubr.msk.f32.gmra.mrb[44].mxu0 %vm789_vm2, %v11038_v1  ;;  %9347 = vmatmul.mubr.msk.f32.gmra.mrb[28].mxu1 %vm789_vm2, %v12238_v45  ;;  %v3372_v45 = vsel %vm747_vm1, %v3369_v19, %v3371_v11 }
  0xd7   : > { %9115 = vmatprep.mubr.msk.f32.mxu0 %vm789_vm2, %v11042_v0  ;;  %9349 = vmatprep.mubr.msk.f32.mxu1 %vm789_vm2, %v12240_v31  ;;  %v11084_v31 = vld [vmem:[%s12116_s1 + $0x58] sm:$0xf] }
  0xda   : > { %9116 = vmatmul.mubr.msk.f32.gmra.mrb[46].mxu0 %vm789_vm2, %v11059_v21  ;;  %9350 = vmatmul.mubr.msk.f32.gmra.mrb[30].mxu1 %vm789_vm2, %v12241_v12  ;;  %v3577_v12 = vrot.slane %v10886_v20, 5 }
  0xdb   : > { %9120 = vmatprep.mubr.msk.f32.mxu0 %vm789_vm2, %v3370_v43  ;;  %9354 = vmatprep.mubr.msk.f32.mxu1 %vm789_vm2, %v5413_v47  ;;  %v5625_v47 = vrot.slane %v10886_v20, 6  ;;  %v3583_v20 = vsel %vm3575_vm5, %v3581_v37, %v3582_v10 }
  0xdc   : > { %v3578_v51 = vsel %vm3575_vm5, %v3576_v26, %v3577_v12  ;;  %v11178_v26 = vld [vmem:[%s10179_s18 + $0x50] sm:$0xff] }
  0xde   : > { %9121 = vmatmul.mubr.msk.f32.vlgmr.msra.gmra.mrb[32].mxu0 %vm789_vm2, %v3372_v45  ;;  %9355 = vmatmul.mubr.msk.f32.vlgmr.msra.gmra.mrb[16].mxu1 %vm789_vm2, %v5415_v49  ;;  %v5627_v49 = vrot.slane %v10901_v53, 6 }
  0xdf   : > { %9145 = vmatpush3.msk.msra.mxu0 %vm822_vm0, %v10938_v35  ;;  %9379 = vmatpush3.msk.msra.mxu1 %vm822_vm0, %v10943_v50  ;;  %v12246_v35 = vld [vmem:[#allocation11_spill] sm:$0xff]  ;;  %v12247_v50 = vld [vmem:[#allocation12_spill] sm:$0xff] }
  0xe0   : > { %9123 = vmatprep.mubr.msk.f32.mxu0 %vm789_vm2, %v10634_v25  ;;  %9357 = vmatprep.mubr.msk.f32.mxu1 %vm789_vm2, %v3370_v43  ;;  %v5624_v43 = vrot.slane %v10883_v17, 6 }
  0xe1   : > { %9170 = vmatprep.subr.msk.mxu0 %vm822_vm0, %v11079_v61  ;;  %9404 = vmatprep.subr.msk.mxu1 %vm822_vm0, %v11084_v31 }
  0xe2   : > { %9124 = vmatmul.mubr.msk.f32.gmra.mrb[34].mxu0 %vm789_vm2, %v10645_v6  ;;  %9358 = vmatmul.mubr.msk.f32.gmra.mrb[18].mxu1 %vm789_vm2, %v3372_v45  ;;  %v3584_v45 = vrot.slane %v10395_v13, 5 }
  0xe3   : > { %9126 = vmatprep.mubr.msk.f32.mxu0 %vm789_vm2, %v12246_v35  ;;  %9360 = vmatprep.mubr.msk.f32.mxu1 %vm789_vm2, %v10634_v25  ;;  %v5619_v25 = vrot.slane %v10914_v63, 6  ;;  %v3579_v63 = vrot.slane %v10901_v53, 5  ;;  %v5629_v53 = vrot.slane %v10376_v2, 6  ;;  %v5626_v2 = vsel %vm5618_vm6, %v5624_v43, %v5625_v47 }
  0xe4   : > { %v3585_v3 = vsel %vm3575_vm5, %v3582_v10, %v3584_v45  ;;  %v11216_v45 = vld [vmem:[%s10179_s18 + $0x68] sm:$0xff] }
  0xe5   : > { %v5621_v19 = vsel %vm5618_vm6, %v5619_v25, %v5620_v16  ;;  %v3580_v39 = vsel %vm3575_vm5, %v3577_v12, %v3579_v63  ;;  %v11174_v25 = vld [vmem:[%s10179_s18 + $0x48] sm:$0xff]  ;;  %v3587_v12 = vrot.slane %v11178_v26, 5  ;;  %v5631_v10 = vsel %vm5618_vm6, %v5629_v53, %v5630_v34 }
  0xe6   : > { %9127 = vmatmul.mubr.msk.f32.gmra.mrb[36].mxu0 %vm789_vm2, %v12247_v50  ;;  %9361 = vmatmul.mubr.msk.f32.gmra.mrb[20].mxu1 %vm789_vm2, %v10645_v6  ;;  %v5635_v53 = vrot.slane %v11178_v26, 6 }
  0xe7   : > { %9129 = vmatprep.mubr.msk.f32.mxu0 %vm789_vm2, %v10227_v23  ;;  %9363 = vmatprep.mubr.msk.f32.mxu1 %vm789_vm2, %v12246_v35 }
  0xea   : > { %9130 = vmatmul.mubr.msk.f32.gmra.mrb[38].mxu0 %vm789_vm2, %v10252_v28  ;;  %9364 = vmatmul.mubr.msk.f32.gmra.mrb[22].mxu1 %vm789_vm2, %v12247_v50 }
  0xeb   : > { %9132 = vmatprep.mubr.msk.f32.mxu0 %vm789_vm2, %v10260_v30  ;;  %9366 = vmatprep.mubr.msk.f32.mxu1 %vm789_vm2, %v10227_v23 }
  0xee   : > { %9133 = vmatmul.mubr.msk.f32.gmra.mrb[40].mxu0 %vm789_vm2, %v10286_v36  ;;  %9367 = vmatmul.mubr.msk.f32.gmra.mrb[24].mxu1 %vm789_vm2, %v10252_v28 }
  0xef   : > { %9135 = vmatprep.mubr.msk.f32.mxu0 %vm789_vm2, %v10290_v38  ;;  %9369 = vmatprep.mubr.msk.f32.mxu1 %vm789_vm2, %v10260_v30 }
  0xf1   : > { %v8836_v6 = vpop.f32.mrb[0].mxu0 }
  0xf2   : > { %1004 = vst [vmem:[%s11131_s16 + $0x8] sm:$0xff] %v8836_v6  ;;  %v1042_v29 = vmul.f32 %v8836_v6, %v8836_v6  ;;  %v892_v33 = vpop.f32.mrb[1].mxu0  ;;  %9136 = vmatmul.mubr.msk.f32.gmra.mrb[42].mxu0 %vm789_vm2, %v10312_v44  ;;  %9370 = vmatmul.mubr.msk.f32.gmra.mrb[26].mxu1 %vm789_vm2, %v10286_v36 }
  0xf3   : > { %1003 = vst [vmem:[%s11131_s16] sm:$0xff] %v892_v33  ;;  %v1019_v41 = vadd.f32 %v8836_v6, %v892_v33  ;;  %v1041_v40 = vmul.f32 %v892_v33, %v892_v33  ;;  %9138 = vmatprep.mubr.msk.f32.mxu0 %vm789_vm2, %v10316_v46  ;;  %9372 = vmatprep.mubr.msk.f32.mxu1 %vm789_vm2, %v10290_v38  ;;  %v3586_v6 = vrot.slane %v11174_v25, 5 }
  0xf5   : > { %v1057_v27 = vadd.f32 %v1042_v29, %v1041_v40  ;;  %v8839_v59 = vpop.f32.mrb[2].mxu0 }
  0xf6   : > { %1006 = vst [vmem:[%s11131_s16 + $0x18] sm:$0xff] %v8839_v59  ;;  %v902_v18 = vpop.f32.mrb[3].mxu0  ;;  %9139 = vmatmul.mubr.msk.f32.gmra.mrb[44].mxu0 %vm789_vm2, %v10338_v52  ;;  %9373 = vmatmul.mubr.msk.f32.gmra.mrb[28].mxu1 %vm789_vm2, %v10312_v44  ;;  %v1044_v16 = vmul.f32 %v8839_v59, %v8839_v59 }
  0xf7   : > { %1005 = vst [vmem:[%s11131_s16 + $0x10] sm:$0xff] %v902_v18  ;;  %v1020_v11 = vadd.f32 %v1019_v41, %v902_v18  ;;  %v1043_v42 = vmul.f32 %v902_v18, %v902_v18  ;;  %9141 = vmatprep.mubr.msk.f32.mxu0 %vm789_vm2, %v10342_v54  ;;  %9375 = vmatprep.mubr.msk.f32.mxu1 %vm789_vm2, %v10316_v46  ;;  %v11190_v41 = vld [vmem:[%s10179_s18 + $0x58] sm:$0x3f] }
  0xf8   : > { %v3589_v40 = vrot.slane %v11190_v41, 5 }
  0xf9   : > { %v1058_v29 = vadd.f32 %v1057_v27, %v1043_v42  ;;  %v8842_v33 = vpop.f32.mrb[4].mxu0  ;;  %v1021_v17 = vadd.f32 %v8839_v59, %v1020_v11  ;;  %v5632_v27 = vrot.slane %v10395_v13, 6  ;;  %v5628_v11 = vsel %vm5618_vm6, %v5625_v47, %v5627_v49 }
  0xfa   : > { %1008 = vst [vmem:[%s11131_s16 + $0x28] sm:$0xff] %v8842_v33  ;;  %v912_v63 = vpop.f32.mrb[5].mxu0  ;;  %9142 = vmatmul.mubr.msk.f32.gmra.mrb[46].mxu0 %vm789_vm2, %v10364_v60  ;;  %9376 = vmatmul.mubr.msk.f32.gmra.mrb[30].mxu1 %vm789_vm2, %v10338_v52  ;;  %v11201_v42 = vsel %vm3575_vm5, %v3586_v6, %v3587_v12  ;;  %v1046_v13 = vmul.f32 %v8842_v33, %v8842_v33  ;;  %v3592_v49 = vrot.slane %v11216_v45, 5  ;;  %v11222_v6 = vld [vmem:[%s12116_s1 + $0x38] sm:$0xf] }
  0xfb   : > { %1007 = vst [vmem:[%s11131_s16 + $0x20] sm:$0xff] %v912_v63  ;;  %v1022_v59 = vadd.f32 %v1021_v17, %v912_v63  ;;  %v1045_v37 = vmul.f32 %v912_v63, %v912_v63  ;;  %v1059_v18 = vadd.f32 %v1058_v29, %v1044_v16  ;;  %9146 = vmatprep.mubr.msk.f32.mxu0 %vm789_vm2, %v3578_v51  ;;  %12248 = vst [vmem:[#allocation25_spill] sm:$0xff] %v11201_v42  ;;  %v11204_v16 = vld [vmem:[%s10179_s18 + $0x60] sm:$0xff] }
  0xfc   : > { %9380 = vmatprep.mubr.msk.f32.mxu1 %vm789_vm2, %v5621_v19  ;;  %v3591_v51 = vrot.slane %v11204_v16, 5  ;;  %v11212_v43 = vsel %vm3575_vm5, %v3587_v12, %v3589_v40  ;;  %v5633_v47 = vsel %vm5618_vm6, %v5630_v34, %v5632_v27  ;;  %v9990_v34 = vld [vmem:[%s10179_s18 + $0x70] sm:$0x3f]  ;;  %v11241_v27 = vld [vmem:[%s10179_s18 + $0x78] sm:$0xff] }
  0xfd   : > { %v1060_v4 = vadd.f32 %v1059_v18, %v1045_v37  ;;  %v8845_v17 = vpop.f32.mrb[6].mxu0  ;;  %v1023_v63 = vadd.f32 %v8842_v33, %v1022_v59  ;;  %12249 = vst [vmem:[#allocation3_spill] sm:$0xff] %v11212_v43  ;;  %v5634_v33 = vrot.slane %v11174_v25, 6  ;;  %v3594_v40 = vrot.slane %v9990_v34, 5 }
  0xfe   : > { %1010 = vst [vmem:[%s11131_s16 + $0x38] sm:$0xff] %v8845_v17  ;;  %v922_v19 = vpop.f32.mrb[7].mxu0  ;;  %9147 = vmatmul.mubr.msk.f32.vlgmr.msra.gmra.mrb[32].mxu0 %vm789_vm2, %v3580_v39  ;;  %9381 = vmatmul.mubr.msk.f32.vlgmr.msra.gmra.mrb[16].mxu1 %vm789_vm2, %v5623_v8  ;;  %v11227_v39 = vld [vmem:[%s12116_s1 + $0x5c] sm:$0xf]  ;;  %v1048_v59 = vmul.f32 %v8845_v17, %v8845_v17 }
  0xff   : > { %1009 = vst [vmem:[%s11131_s16 + $0x30] sm:$0xff] %v922_v19  ;;  %v1024_v8 = vadd.f32 %v1023_v63, %v922_v19  ;;  %v1047_v12 = vmul.f32 %v922_v19, %v922_v19  ;;  %v1061_v29 = vadd.f32 %v1060_v4, %v1046_v13  ;;  %9171 = vmatpush3.msk.msra.mxu0 %vm822_vm0, %v11079_v61  ;;  %v5637_v4 = vrot.slane %v11190_v41, 6  ;;  %v11258_v63 = vld [vmem:[%s10179_s18 + $0x88] sm:$0x3f] }
 0x100   : > { %9405 = vmatpush3.msk.msra.mxu1 %vm822_vm0, %v11084_v31  ;;  %9149 = vmatprep.mubr.msk.f32.mxu0 %vm789_vm2, %v3583_v20  ;;  %v3596_v61 = vrot.slane %v11241_v27, 5  ;;  %v11245_v20 = vld [vmem:[%s10179_s18 + $0x80] sm:$0xff]  ;;  %v5639_v13 = vrot.slane %v11204_v16, 6  ;;  %v3599_v19 = vrot.slane %v11258_v63, 5  ;;  %v11272_v32 = vsel %vm3575_vm5, %v3592_v49, %v3594_v40 }
 0x101   : > { %9383 = vmatprep.mubr.msk.f32.mxu1 %vm789_vm2, %v5626_v2  ;;  %v1062_v31 = vadd.f32 %v1061_v29, %v1047_v12  ;;  %v8848_v37 = vpop.f32.mrb[8].mxu0  ;;  %v1025_v18 = vadd.f32 %v8845_v17, %v1024_v8  ;;  %v3597_v2 = vrot.slane %v11245_v20, 5  ;;  %9196 = vmatprep.subr.msk.mxu0 %vm822_vm0, %v11222_v6  ;;  %v5640_v17 = vrot.slane %v11216_v45, 6  ;;  %12252 = vst [vmem:[#allocation6_spill] sm:$0xff] %v11272_v32 }
 0x102   : > { %9430 = vmatprep.subr.msk.mxu1 %vm822_vm0, %v11227_v39  ;;  %1012 = vst [vmem:[%s11131_s16 + $0x48] sm:$0xff] %v8848_v37  ;;  %v932_v41 = vpop.f32.mrb[9].mxu0  ;;  %9150 = vmatmul.mubr.msk.f32.gmra.mrb[34].mxu0 %vm789_vm2, %v3585_v3  ;;  %v5642_v8 = vrot.slane %v9990_v34, 6  ;;  %v11266_v3 = vsel %vm3575_vm5, %v3591_v51, %v3592_v49  ;;  %v11275_v34 = vsel %vm5618_vm6, %v5635_v53, %v5637_v4 }
 0x103   : > { %9384 = vmatmul.mubr.msk.f32.gmra.mrb[18].mxu1 %vm789_vm2, %v5628_v11  ;;  %1011 = vst [vmem:[%s11131_s16 + $0x40] sm:$0xff] %v932_v41  ;;  %v1026_v12 = vadd.f32 %v1025_v18, %v932_v41  ;;  %v1049_v29 = vmul.f32 %v932_v41, %v932_v41  ;;  %v1063_v55 = vadd.f32 %v1062_v31, %v1048_v59  ;;  %12250 = vst [vmem:[#allocation4_spill] sm:$0xff] %v11266_v3 }
 0x104   : > { %9152 = vmatprep.mubr.msk.f32.mxu0 %vm789_vm2, %v11201_v42  ;;  %9386 = vmatprep.mubr.msk.f32.mxu1 %vm789_vm2, %v5631_v10  ;;  %v11269_v11 = vsel %vm5618_vm6, %v5634_v33, %v5635_v53  ;;  %12253 = vst [vmem:[#allocation7_spill] sm:$0xff] %v11275_v34  ;;  %v1050_v18 = vmul.f32 %v8848_v37, %v8848_v37 }
 0x105   : > { %12251 = vst [vmem:[#allocation5_spill] sm:$0xff] %v11269_v11  ;;  %v1064_v59 = vadd.f32 %v1063_v55, %v1049_v29  ;;  %v8851_v31 = vpop.f32.mrb[10].mxu0  ;;  %v1027_v41 = vadd.f32 %v8848_v37, %v1026_v12  ;;  %v11278_v10 = vsel %vm3575_vm5, %v3596_v61, %v3597_v2  ;;  %v11285_v49 = vsel %vm5618_vm6, %v5639_v13, %v5640_v17  ;;  %v11303_v37 = vld [vmem:[%s10179_s18 + $0x98] sm:$0xff] }
 0x106   : > { %12254 = vst [vmem:[#allocation9_spill] sm:$0xff] %v11278_v10  ;;  %1014 = vst [vmem:[%s11131_s16 + $0x58] sm:$0xff] %v8851_v31  ;;  %v942_v51 = vpop.f32.mrb[11].mxu0  ;;  %9153 = vmatmul.mubr.msk.f32.gmra.mrb[36].mxu0 %vm789_vm2, %v11212_v43  ;;  %v11288_v55 = vsel %vm3575_vm5, %v3597_v2, %v3599_v19  ;;  %v11291_v33 = vsel %vm5618_vm6, %v5640_v17, %v5642_v8  ;;  %v3602_v2 = vrot.slane %v11303_v37, 5  ;;  %v5644_v13 = vrot.slane %v11241_v27, 6 }
 0x107   : > { %9387 = vmatmul.mubr.msk.f32.gmra.mrb[20].mxu1 %vm789_vm2, %v5633_v47  ;;  %12255 = vst [vmem:[#allocation8_spill] sm:$0xff] %v11285_v49  ;;  %12256 = vst [vmem:[#allocation10_spill] sm:$0xff] %v11288_v55  ;;  %v1028_v53 = vadd.f32 %v1027_v41, %v942_v51  ;;  %v1051_v40 = vmul.f32 %v942_v51, %v942_v51  ;;  %v1065_v4 = vadd.f32 %v1064_v59, %v1050_v18  ;;  %v11299_v47 = vld [vmem:[%s10179_s18 + $0x90] sm:$0xff]  ;;  %v9996_v19 = vld [vmem:[%s10179_s18 + $0xa0] sm:$0x3f] }
 0x108   : > { %12257 = vst [vmem:[#allocation13_spill] sm:$0xff] %v11291_v33  ;;  %1013 = vst [vmem:[%s11131_s16 + $0x50] sm:$0xff] %v942_v51  ;;  %9155 = vmatprep.mubr.msk.f32.mxu0 %vm789_vm2, %v11266_v3  ;;  %9389 = vmatprep.mubr.msk.f32.mxu1 %vm789_vm2, %v11269_v11  ;;  %v3601_v61 = vrot.slane %v11299_v47, 5  ;;  %v5645_v17 = vrot.slane %v11245_v20, 6  ;;  %v3604_v8 = vrot.slane %v9996_v19, 5  ;;  %v1052_v12 = vmul.f32 %v8851_v31, %v8851_v31  ;;  %v11316_v3 = vld [vmem:[%s10179_s18 + $0xa8] sm:$0xff] }
 0x109   : > { %v1066_v29 = vadd.f32 %v1065_v4, %v1051_v40  ;;  %v8854_v18 = vpop.f32.mrb[12].mxu0  ;;  %v1029_v59 = vadd.f32 %v8851_v31, %v1028_v53  ;;  %v5647_v41 = vrot.slane %v11258_v63, 6  ;;  %v3606_v43 = vrot.slane %v11316_v3, 5  ;;  %v11320_v11 = vld [vmem:[%s10179_s18 + $0xb0] sm:$0xff] }
 0x10a   : > { %1016 = vst [vmem:[%s11131_s16 + $0x68] sm:$0xff] %v8854_v18  ;;  %v952_v51 = vpop.f32.mrb[13].mxu0  ;;  %9156 = vmatmul.mubr.msk.f32.gmra.mrb[38].mxu0 %vm789_vm2, %v11272_v32  ;;  %v3607_v40 = vrot.slane %v11320_v11, 5  ;;  %v5649_v31 = vrot.slane %v11299_v47, 6  ;;  %v5650_v63 = vrot.slane %v11303_v37, 6  ;;  %v11334_v42 = vsel %vm5618_vm6, %v5644_v13, %v5645_v17 }
 0x10b   : > { %9390 = vmatmul.mubr.msk.f32.gmra.mrb[22].mxu1 %vm789_vm2, %v11275_v34  ;;  %1015 = vst [vmem:[%s11131_s16 + $0x60] sm:$0xff] %v952_v51  ;;  %v1030_v53 = vadd.f32 %v1029_v59, %v952_v51  ;;  %v1053_v4 = vmul.f32 %v952_v51, %v952_v51  ;;  %v1067_v32 = vadd.f32 %v1066_v29, %v1052_v12  ;;  %12259 = vst [vmem:[#allocation15_spill] sm:$0xff] %v11334_v42 }
 0x10c   : > { %9158 = vmatprep.mubr.msk.f32.mxu0 %vm789_vm2, %v11278_v10  ;;  %9392 = vmatprep.mubr.msk.f32.mxu1 %vm789_vm2, %v11285_v49  ;;  %v11331_v34 = vsel %vm3575_vm5, %v3601_v61, %v3602_v2  ;;  %v11337_v14 = vsel %vm3575_vm5, %v3602_v2, %v3604_v8  ;;  %v1054_v59 = vmul.f32 %v8854_v18, %v8854_v18  ;;  %v9999_v2 = vld [vmem:[%s10179_s18 + $0xb8] sm:$0x3f] }
 0x10d   : > { %12258 = vst [vmem:[#allocation14_spill] sm:$0xff] %v11331_v34  ;;  %12260 = vst [vmem:[#allocation16_spill] sm:$0xff] %v11337_v14  ;;  %v1068_v51 = vadd.f32 %v1067_v32, %v1053_v4  ;;  %v8857_v12 = vpop.f32.mrb[14].mxu0  ;;  %v1031_v29 = vadd.f32 %v8854_v18, %v1030_v53  ;;  %v11340_v10 = vsel %vm5618_vm6, %v5645_v17, %v5647_v41  ;;  %v3609_v13 = vrot.slane %v9999_v2, 5  ;;  %v11360_v53 = vld [vmem:[%s10179_s18 + $0xc0] sm:$0xff] }
 0x10e   : > { %1018 = vst [vmem:[%s11131_s16 + $0x78] sm:$0xff] %v8857_v12  ;;  %v962_v49 = vpop.f32.mrb[15].mxu0  ;;  %9159 = vmatmul.mubr.msk.f32.gmra.mrb[40].mxu0 %vm789_vm2, %v11288_v55  ;;  %v11348_v61 = vsel %vm3575_vm5, %v3606_v43, %v3607_v40  ;;  %v11351_v32 = vsel %vm5618_vm6, %v5649_v31, %v5650_v63  ;;  %v5652_v17 = vrot.slane %v9996_v19, 6  ;;  %v3611_v43 = vrot.slane %v11360_v53, 5  ;;  %v11364_v31 = vld [vmem:[%s10179_s18 + $0xc8] sm:$0xff] }
 0x10f   : > { %9393 = vmatmul.mubr.msk.f32.gmra.mrb[24].mxu1 %vm789_vm2, %v11291_v33  ;;  %12261 = vst [vmem:[#allocation17_spill] sm:$0xff] %v11348_v61  ;;  %1017 = vst [vmem:[%s11131_s16 + $0x70] sm:$0xff] %v962_v49  ;;  %v1032_v8 = vadd.f32 %v1031_v29, %v962_v49  ;;  %v1055_v18 = vmul.f32 %v962_v49, %v962_v49  ;;  %v1069_v41 = vadd.f32 %v1068_v51, %v1054_v59 }
 0x110   : > { %9161 = vmatprep.mubr.msk.f32.mxu0 %vm789_vm2, %v11331_v34  ;;  %9395 = vmatprep.mubr.msk.f32.mxu1 %vm789_vm2, %v11334_v42  ;;  %v3612_v4 = vrot.slane %v11364_v31, 5  ;;  %v5654_v19 = vrot.slane %v11316_v3, 6  ;;  %v5655_v49 = vrot.slane %v11320_v11, 6  ;;  %v1056_v59 = vmul.f32 %v8857_v12, %v8857_v12 }
 0x111   : > { %v1033_v51 = vadd.f32 %v8857_v12, %v1032_v8  ;;  %v1070_v29 = vadd.f32 %v1069_v41, %v1055_v18  ;;  %v11375_v34 = vsel %vm3575_vm5, %v3607_v40, %v3609_v13  ;;  %v11378_v55 = vsel %vm5618_vm6, %v5650_v63, %v5652_v17  ;;  %v11385_v12 = vld [vmem:[%s10179_s18 + $0xd0] sm:$0x3f] }
 0x112   : > { %9162 = vmatmul.mubr.msk.f32.gmra.mrb[42].mxu0 %vm789_vm2, %v11337_v14  ;;  %12262 = vst [vmem:[#allocation18_spill] sm:$0xff] %v11375_v34  ;;  %v3614_v8 = vrot.slane %v11385_v12, 5  ;;  %v5657_v18 = vrot.slane %v9999_v2, 6  ;;  %v11389_v41 = vsel %vm3575_vm5, %v3611_v43, %v3612_v4  ;;  %v11392_v40 = vsel %vm5618_vm6, %v5654_v19, %v5655_v49 }
 0x113   : > { %9396 = vmatmul.mubr.msk.f32.gmra.mrb[26].mxu1 %vm789_vm2, %v11340_v10  ;;  %v1034_v42 = vrot.slane %v1033_v51, 4  ;;  %v1071_v33 = vadd.f32 %v1070_v29, %v1056_v59  ;;  %9164 = vmatprep.mubr.msk.f32.mxu0 %vm789_vm2, %v11348_v61  ;;  %12263 = vst [vmem:[#allocation19_spill] sm:$0xff] %v11389_v41  ;;  %12264 = vst [vmem:[#allocation20_spill] sm:$0xff] %v11392_v40 }
 0x114   : > { %9398 = vmatprep.mubr.msk.f32.mxu1 %vm789_vm2, %v11351_v32  ;;  %v11407_v2 = vsel %vm3575_vm5, %v3612_v4, %v3614_v8 }
 0x115   : > { %v1035_v63 = vadd.f32 %v1034_v42, %v1033_v51  ;;  %v1072_v13 = vrot.slane %v1071_v33, 4  ;;  %12265 = vst [vmem:[#allocation21_spill] sm:$0xff] %v11407_v2  ;;  %v11410_v42 = vsel %vm5618_vm6, %v5655_v49, %v5657_v18 }
 0x116   : > { %9165 = vmatmul.mubr.msk.f32.gmra.mrb[44].mxu0 %vm789_vm2, %v11375_v34  ;;  %12266 = vst [vmem:[#allocation22_spill] sm:$0xff] %v11410_v42 }
 0x117   : > { %9399 = vmatmul.mubr.msk.f32.gmra.mrb[28].mxu1 %vm789_vm2, %v11378_v55  ;;  %v1036_v17 = vrot.slane %v1035_v63, 2  ;;  %v1073_v59 = vadd.f32 %v1072_v13, %v1071_v33  ;;  %9167 = vmatprep.mubr.msk.f32.mxu0 %vm789_vm2, %v11389_v41 }
 0x118   : > { %9401 = vmatprep.mubr.msk.f32.mxu1 %vm789_vm2, %v11392_v40 }
 0x119   : > { %v1037_v43 = vadd.f32 %v1036_v17, %v1035_v63  ;;  %v1074_v19 = vrot.slane %v1073_v59, 2  ;;  %v11517_v63 = vld [vmem:[%s10179_s18 + $0x100] sm:$0x3f] }
 0x11a   : > { %9168 = vmatmul.mubr.msk.f32.gmra.mrb[46].mxu0 %vm789_vm2, %v11407_v2  ;;  %v3854_v13 = vrot.slane %v11517_v63, 1 }
 0x11b   : > { %9402 = vmatmul.mubr.msk.f32.gmra.mrb[30].mxu1 %vm789_vm2, %v11410_v42  ;;  %v1038_v33 = vrot.slane %v1037_v43, 1  ;;  %v1075_v51 = vadd.f32 %v1074_v19, %v1073_v59  ;;  %9172 = vmatprep.mubr.msk.f32.mxu0 %vm789_vm2, %v10953_v48  ;;  %v8120_v48 = vld [vmem:[%s12116_s1 + $0x3c] sm:$0xf]  ;;  %v8300_v19 = vld [vmem:[%s12116_s1 + $0x64] sm:$0xf] }
 0x11c   : > { %9406 = vmatprep.mubr.msk.f32.mxu1 %vm789_vm2, %v11174_v25  ;;  %v8282_v25 = vld [vmem:[%s12116_s1 + $0x60] sm:$0xf] }
 0x11d   : > { %v1039_v4 = vadd.f32 %v1038_v33, %v1037_v43  ;;  %v1076_v49 = vrot.slane %v1075_v51, 1  ;;  %v8138_v43 = vld [vmem:[%s12116_s1 + $0x40] sm:$0xf] }
 0x11e   : > { %9173 = vmatmul.mubr.msk.f32.vlgmr.msra.gmra.mrb[32].mxu0 %vm789_vm2, %v10969_v58  ;;  %v11475_v58 = vld [vmem:[%s10179_s18 + $0xd8] sm:$0xff] }
 0x11f   : > { %9407 = vmatmul.mubr.msk.f32.vlgmr.msra.gmra.mrb[16].mxu1 %vm789_vm2, %v11178_v26  ;;  %1040 = vst [vmem:[%s628_s15] sm:$0x1] %v1039_v4  ;;  %v1077_v29 = vadd.f32 %v1076_v49, %v1075_v51  ;;  %9197 = vmatpush3.msk.msra.mxu0 %vm822_vm0, %v11222_v6  ;;  %v12269_v4 = vld [vmem:[#allocation24_spill] sm:$0xff]  ;;  %v12270_v49 = vld [vmem:[#allocation25_spill] sm:$0xff] }
 0x120   : > { %9431 = vmatpush3.msk.msra.mxu1 %vm822_vm0, %v11227_v39  ;;  %9175 = vmatprep.mubr.msk.f32.mxu0 %vm789_vm2, %v10973_v15  ;;  %v3846_v15 = vrot.slane %v11475_v58, 1  ;;  %v11498_v39 = vld [vmem:[%s10179_s18 + $0xf0] sm:$0xff] }
 0x121   : > { %9409 = vmatprep.mubr.msk.f32.mxu1 %vm789_vm2, %v11204_v16  ;;  %1078 = vst [vmem:[%s656_s19] sm:$0x1] %v1077_v29  ;;  %9222 = vmatprep.subr.msk.mxu0 %vm822_vm0, %v8120_v48  ;;  %v11491_v16 = vld [vmem:[%s10179_s18 + $0xe8] sm:$0x3f]  ;;  %v12273_v29 = vld [vmem:[#allocation7_spill] sm:$0xff] }
 0x122   : > { %9456 = vmatprep.subr.msk.mxu1 %vm822_vm0, %v8282_v25  ;;  %9176 = vmatmul.mubr.msk.f32.gmra.mrb[34].mxu0 %vm789_vm2, %v10986_v57  ;;  %v11479_v57 = vld [vmem:[%s10179_s18 + $0xe0] sm:$0xff] }
 0x123   : > { %9410 = vmatmul.mubr.msk.f32.gmra.mrb[18].mxu1 %vm789_vm2, %v11216_v45  ;;  %9178 = vmatprep.mubr.msk.f32.mxu0 %vm789_vm2, %v10990_v24  ;;  %v3847_v26 = vrot.slane %v11479_v57, 1  ;;  %v3849_v45 = vrot.slane %v11491_v16, 1 }
 0x124   : > { %9412 = vmatprep.mubr.msk.f32.mxu1 %vm789_vm2, %v11241_v27  ;;  %v3851_v27 = vrot.slane %v11498_v39, 1 }
 0x125   : > { %v11495_v6 = vsel %vm3129_vm4, %v3846_v15, %v3847_v26  ;;  %v11514_v18 = vsel %vm3129_vm4, %v3847_v26, %v3849_v45  ;;  %v11636_v15 = vld [vmem:[%s12116_s1 + $0x44] sm:$0xf]  ;;  %v11641_v26 = vld [vmem:[%s12116_s1 + $0x68] sm:$0xf] }
 0x126   : > { %9179 = vmatmul.mubr.msk.f32.gmra.mrb[36].mxu0 %vm789_vm2, %v11003_v5  ;;  %v12274_v45 = vld [vmem:[#allocation4_spill] sm:$0xff] }
 0x127   : > { %9413 = vmatmul.mubr.msk.f32.gmra.mrb[20].mxu1 %vm789_vm2, %v11245_v20  ;;  %9181 = vmatprep.mubr.msk.f32.mxu0 %vm789_vm2, %v11007_v9  ;;  %v11502_v20 = vld [vmem:[%s10179_s18 + $0xf8] sm:$0xff] }
 0x128   : > { %9415 = vmatprep.mubr.msk.f32.mxu1 %vm789_vm2, %v11299_v47  ;;  %v3852_v8 = vrot.slane %v11502_v20, 1 }
 0x12a   : > { %9182 = vmatmul.mubr.msk.f32.gmra.mrb[38].mxu0 %vm789_vm2, %v11020_v22  ;;  %v11521_v17 = vsel %vm3129_vm4, %v3851_v27, %v3852_v8  ;;  %v11532_v59 = vsel %vm3129_vm4, %v3852_v8, %v3854_v13  ;;  %v12275_v27 = vld [vmem:[#allocation8_spill] sm:$0xff]  ;;  %v12276_v8 = vld [vmem:[#allocation6_spill] sm:$0xff]  ;;  %v12277_v13 = vld [vmem:[#allocation13_spill] sm:$0xff] }
 0x12b   : > { %9416 = vmatmul.mubr.msk.f32.gmra.mrb[22].mxu1 %vm789_vm2, %v11303_v37  ;;  %9184 = vmatprep.mubr.msk.f32.mxu0 %vm789_vm2, %v11024_v56 }
 0x12c   : > { %9418 = vmatprep.mubr.msk.f32.mxu1 %vm789_vm2, %v11316_v3 }
 0x12e   : > { %9185 = vmatmul.mubr.msk.f32.gmra.mrb[40].mxu0 %vm789_vm2, %v11038_v1 }
 0x12f   : > { %9419 = vmatmul.mubr.msk.f32.gmra.mrb[24].mxu1 %vm789_vm2, %v11320_v11  ;;  %9187 = vmatprep.mubr.msk.f32.mxu0 %vm789_vm2, %v11042_v0 }
 0x130   : > { %9421 = vmatprep.mubr.msk.f32.mxu1 %vm789_vm2, %v11360_v53 }
 0x132   : > { %9188 = vmatmul.mubr.msk.f32.gmra.mrb[42].mxu0 %vm789_vm2, %v11059_v21 }
 0x133   : > { %9422 = vmatmul.mubr.msk.f32.gmra.mrb[26].mxu1 %vm789_vm2, %v11364_v31  ;;  %9190 = vmatprep.mubr.msk.f32.mxu0 %vm789_vm2, %v11495_v6 }
 0x134   : > { %9424 = vmatprep.mubr.msk.f32.mxu1 %vm789_vm2, %v11475_v58 }
 0x136   : > { %9191 = vmatmul.mubr.msk.f32.gmra.mrb[44].mxu0 %vm789_vm2, %v11514_v18 }
 0x137   : > { %9425 = vmatmul.mubr.msk.f32.gmra.mrb[28].mxu1 %vm789_vm2, %v11479_v57  ;;  %9193 = vmatprep.mubr.msk.f32.mxu0 %vm789_vm2, %v11521_v17 }
 0x138   : > { %9427 = vmatprep.mubr.msk.f32.mxu1 %vm789_vm2, %v11498_v39 }
 0x13a   : > { %9194 = vmatmul.mubr.msk.f32.gmra.mrb[46].mxu0 %vm789_vm2, %v11532_v59 }
 0x13b   : > { %9428 = vmatmul.mubr.msk.f32.gmra.mrb[30].mxu1 %vm789_vm2, %v11502_v20  ;;  %9198 = vmatprep.mubr.msk.f32.mxu0 %vm789_vm2, %v12246_v35 }
 0x13c   : > { %9432 = vmatprep.mubr.msk.f32.mxu1 %vm789_vm2, %v12246_v35 }
 0x13e   : > { %9199 = vmatmul.mubr.msk.f32.vlgmr.msra.gmra.mrb[32].mxu0 %vm789_vm2, %v12247_v50 }
 0x13f   : > { %9433 = vmatmul.mubr.msk.f32.vlgmr.msra.gmra.mrb[16].mxu1 %vm789_vm2, %v12247_v50  ;;  %9223 = vmatpush3.msk.msra.mxu0 %vm822_vm0, %v8120_v48  ;;  %v12267_v50 = vld [vmem:[#allocation23_spill] sm:$0xff]  ;;  %v12271_v48 = vld [vmem:[#allocation5_spill] sm:$0xff] }
 0x140   : > { %9457 = vmatpush3.msk.msra.mxu1 %vm822_vm0, %v8282_v25  ;;  %9201 = vmatprep.mubr.msk.f32.mxu0 %vm789_vm2, %v10227_v23  ;;  %v12272_v25 = vld [vmem:[#allocation3_spill] sm:$0xff] }
 0x141   : > { %9435 = vmatprep.mubr.msk.f32.mxu1 %vm789_vm2, %v10227_v23  ;;  %9248 = vmatprep.subr.msk.mxu0 %vm822_vm0, %v8138_v43  ;;  %v11601_v23 = vld [vmem:[%s10179_s18 + $0x128] sm:$0xff] }
 0x142   : > { %9482 = vmatprep.subr.msk.mxu1 %vm822_vm0, %v8300_v19  ;;  %9202 = vmatmul.mubr.msk.f32.gmra.mrb[34].mxu0 %vm789_vm2, %v10252_v28  ;;  %v12185_v35 = vrot.slane %v11601_v23, 5 }
 0x143   : > { %9436 = vmatmul.mubr.msk.f32.gmra.mrb[18].mxu1 %vm789_vm2, %v10252_v28  ;;  %9204 = vmatprep.mubr.msk.f32.mxu0 %vm789_vm2, %v10260_v30  ;;  %v11608_v28 = vld [vmem:[%s10179_s18 + $0x130] sm:$0x3f] }
 0x144   : > { %9438 = vmatprep.mubr.msk.f32.mxu1 %vm789_vm2, %v10260_v30  ;;  %v4910_v33 = vrot.slane %v11608_v28, 5 }
 0x146   : > { %9205 = vmatmul.mubr.msk.f32.gmra.mrb[36].mxu0 %vm789_vm2, %v10286_v36  ;;  %v11619_v51 = vsel %vm3575_vm5, %v12185_v35, %v4910_v33  ;;  %v12280_v33 = vld [vmem:[#allocation10_spill] sm:$0xff]  ;;  %v4263_v35 = vrot.slane %v11491_v16, 5 }
 0x147   : > { %9439 = vmatmul.mubr.msk.f32.gmra.mrb[20].mxu1 %vm789_vm2, %v10286_v36  ;;  %9207 = vmatprep.mubr.msk.f32.mxu0 %vm789_vm2, %v10290_v38  ;;  %12268 = vst [vmem:[#allocation11_spill] sm:$0xff] %v11619_v51  ;;  %v6305_v51 = vrot.slane %v11491_v16, 6 }
 0x148   : > { %9441 = vmatprep.mubr.msk.f32.mxu1 %vm789_vm2, %v10290_v38 }
 0x14a   : > { %9208 = vmatmul.mubr.msk.f32.gmra.mrb[38].mxu0 %vm789_vm2, %v10312_v44 }
 0x14b   : > { %9442 = vmatmul.mubr.msk.f32.gmra.mrb[22].mxu1 %vm789_vm2, %v10312_v44  ;;  %9210 = vmatprep.mubr.msk.f32.mxu0 %vm789_vm2, %v10316_v46 }
 0x14c   : > { %9444 = vmatprep.mubr.msk.f32.mxu1 %vm789_vm2, %v10316_v46 }
 0x14e   : > { %9211 = vmatmul.mubr.msk.f32.gmra.mrb[40].mxu0 %vm789_vm2, %v10338_v52 }
 0x14f   : > { %9445 = vmatmul.mubr.msk.f32.gmra.mrb[24].mxu1 %vm789_vm2, %v10338_v52  ;;  %9213 = vmatprep.mubr.msk.f32.mxu0 %vm789_vm2, %v10342_v54 }
 0x150   : > { %9447 = vmatprep.mubr.msk.f32.mxu1 %vm789_vm2, %v10342_v54 }
 0x152   : > { %9214 = vmatmul.mubr.msk.f32.gmra.mrb[42].mxu0 %vm789_vm2, %v10364_v60 }
 0x153   : > { %9448 = vmatmul.mubr.msk.f32.gmra.mrb[26].mxu1 %vm789_vm2, %v10364_v60  ;;  %9216 = vmatprep.mubr.msk.f32.mxu0 %vm789_vm2, %v10368_v62 }
 0x154   : > { %9450 = vmatprep.mubr.msk.f32.mxu1 %vm789_vm2, %v10368_v62 }
 0x156   : > { %9217 = vmatmul.mubr.msk.f32.gmra.mrb[44].mxu0 %vm789_vm2, %v10390_v7 }
 0x157   : > { %9451 = vmatmul.mubr.msk.f32.gmra.mrb[28].mxu1 %vm789_vm2, %v10390_v7  ;;  %9219 = vmatprep.mubr.msk.f32.mxu0 %vm789_vm2, %v12267_v50 }
 0x158   : > { %9453 = vmatprep.mubr.msk.f32.mxu1 %vm789_vm2, %v12267_v50 }
 0x15a   : > { %9220 = vmatmul.mubr.msk.f32.gmra.mrb[46].mxu0 %vm789_vm2, %v12269_v4 }
 0x15b   : > { %9454 = vmatmul.mubr.msk.f32.gmra.mrb[30].mxu1 %vm789_vm2, %v12269_v4  ;;  %9224 = vmatprep.mubr.msk.f32.mxu0 %vm789_vm2, %v12270_v49  ;;  %v12281_v49 = vld [vmem:[#allocation14_spill] sm:$0xff] }
 0x15c   : > { %9458 = vmatprep.mubr.msk.f32.mxu1 %vm789_vm2, %v12271_v48  ;;  %v6297_v48 = vrot.slane %v11360_v53, 6 }
 0x15e   : > { %9225 = vmatmul.mubr.msk.f32.vlgmr.msra.gmra.mrb[32].mxu0 %vm789_vm2, %v12272_v25  ;;  %v6298_v25 = vrot.slane %v11364_v31, 6 }
 0x15f   : > { %9459 = vmatmul.mubr.msk.f32.vlgmr.msra.gmra.mrb[16].mxu1 %vm789_vm2, %v12273_v29  ;;  %9249 = vmatpush3.msk.msra.mxu0 %vm822_vm0, %v8138_v43  ;;  %v12278_v43 = vld [vmem:[#allocation9_spill] sm:$0xff]  ;;  %v6300_v29 = vrot.slane %v11385_v12, 6 }
 0x160   : > { %9483 = vmatpush3.msk.msra.mxu1 %vm822_vm0, %v8300_v19  ;;  %9227 = vmatprep.mubr.msk.f32.mxu0 %vm789_vm2, %v12274_v45  ;;  %v12279_v19 = vld [vmem:[#allocation15_spill] sm:$0xff]  ;;  %v4261_v45 = vrot.slane %v11479_v57, 5 }
 0x161   : > { %9461 = vmatprep.mubr.msk.f32.mxu1 %vm789_vm2, %v12275_v27  ;;  %9274 = vmatprep.subr.msk.mxu0 %vm822_vm0, %v11636_v15  ;;  %v6302_v27 = vrot.slane %v11475_v58, 6  ;;  %v11692_v12 = vsel %vm5618_vm6, %v6298_v25, %v6300_v29  ;;  %v6307_v29 = vrot.slane %v11498_v39, 6 }
 0x162   : > { %9508 = vmatprep.subr.msk.mxu1 %vm822_vm0, %v11641_v26  ;;  %9228 = vmatmul.mubr.msk.f32.gmra.mrb[34].mxu0 %vm789_vm2, %v12276_v8  ;;  %v6303_v8 = vrot.slane %v11479_v57, 6  ;;  %12283 = vst [vmem:[#allocation23_spill] sm:$0xff] %v11692_v12 }
 0x163   : > { %9462 = vmatmul.mubr.msk.f32.gmra.mrb[18].mxu1 %vm789_vm2, %v12277_v13  ;;  %9230 = vmatprep.mubr.msk.f32.mxu0 %vm789_vm2, %v12278_v43  ;;  %v11685_v13 = vsel %vm5618_vm6, %v6297_v48, %v6298_v25  ;;  %v4266_v25 = vrot.slane %v11502_v20, 5 }
 0x164   : > { %9464 = vmatprep.mubr.msk.f32.mxu1 %vm789_vm2, %v12279_v19  ;;  %12282 = vst [vmem:[#allocation12_spill] sm:$0xff] %v11685_v13  ;;  %v11702_v48 = vsel %vm5618_vm6, %v6302_v27, %v6303_v8 }
 0x165   : > { %12285 = vst [vmem:[#allocation25_spill] sm:$0xff] %v11702_v48 }
 0x166   : > { %9231 = vmatmul.mubr.msk.f32.gmra.mrb[36].mxu0 %vm789_vm2, %v12280_v33 }
 0x167   : > { %9465 = vmatmul.mubr.msk.f32.gmra.mrb[20].mxu1 %vm789_vm2, %v11340_v10  ;;  %9233 = vmatprep.mubr.msk.f32.mxu0 %vm789_vm2, %v12281_v49  ;;  %v4260_v10 = vrot.slane %v11475_v58, 5 }
 0x168   : > { %9467 = vmatprep.mubr.msk.f32.mxu1 %vm789_vm2, %v11351_v32 }
 0x169   : > { %v11699_v19 = vsel %vm3575_vm5, %v4260_v10, %v4261_v45 }
 0x16a   : > { %9234 = vmatmul.mubr.msk.f32.gmra.mrb[38].mxu0 %vm789_vm2, %v11337_v14  ;;  %12284 = vst [vmem:[#allocation24_spill] sm:$0xff] %v11699_v19 }
 0x16b   : > { %9468 = vmatmul.mubr.msk.f32.gmra.mrb[22].mxu1 %vm789_vm2, %v11378_v55  ;;  %9236 = vmatprep.mubr.msk.f32.mxu0 %vm789_vm2, %v11348_v61 }
 0x16c   : > { %9470 = vmatprep.mubr.msk.f32.mxu1 %vm789_vm2, %v11392_v40 }
 0x16e   : > { %9237 = vmatmul.mubr.msk.f32.gmra.mrb[40].mxu0 %vm789_vm2, %v11375_v34  ;;  %v4265_v34 = vrot.slane %v11498_v39, 5 }
 0x16f   : > { %9471 = vmatmul.mubr.msk.f32.gmra.mrb[24].mxu1 %vm789_vm2, %v11410_v42  ;;  %9239 = vmatprep.mubr.msk.f32.mxu0 %vm789_vm2, %v11389_v41  ;;  %v6308_v41 = vrot.slane %v11502_v20, 6  ;;  %v4268_v42 = vrot.slane %v11517_v63, 5 }
 0x170   : > { %9473 = vmatprep.mubr.msk.f32.mxu1 %vm789_vm2, %v11685_v13 }
 0x171   : > { %v8940_v61 = vpop.f32.mrb[16].mxu0  ;;  %v9070_v10 = vpop.f32.mrb[0].mxu1 }
 0x172   : > { %v9560_v27 = vadd.f32 %v9070_v10, %v8940_v61  ;;  %v1878_v13 = vpop.f32.mrb[17].mxu0  ;;  %v2907_v16 = vpop.f32.mrb[1].mxu1  ;;  %9240 = vmatmul.mubr.msk.f32.gmra.mrb[42].mxu0 %vm789_vm2, %v11407_v2  ;;  %v11726_v61 = vsel %vm3575_vm5, %v4261_v45, %v4263_v35  ;;  %v11729_v10 = vsel %vm5618_vm6, %v6303_v8, %v6305_v51  ;;  %v6310_v2 = vrot.slane %v11517_v63, 6 }
 0x173   : > { %9474 = vmatmul.mubr.msk.f32.gmra.mrb[26].mxu1 %vm789_vm2, %v11692_v12  ;;  %v9561_v14 = vadd.f32 %v2907_v16, %v1878_v13  ;;  %9242 = vmatprep.mubr.msk.f32.mxu0 %vm789_vm2, %v11699_v19  ;;  %v11734_v12 = vsel %vm3575_vm5, %v4265_v34, %v4266_v25  ;;  %v11737_v13 = vsel %vm5618_vm6, %v6307_v29, %v6308_v41 }
 0x174   : > { %9476 = vmatprep.mubr.msk.f32.mxu1 %vm789_vm2, %v11702_v48  ;;  %3051 = vst [vmem:[%s11714_s0 + $0x8] sm:$0xff] %v9560_v27  ;;  %v3089_v40 = vmul.f32 %v9560_v27, %v9560_v27  ;;  %12286 = vst [vmem:[#allocation5_spill] sm:$0xff] %v11734_v12  ;;  %v11745_v34 = vsel %vm3575_vm5, %v4266_v25, %v4268_v42 }
 0x175   : > { %3050 = vst [vmem:[%s11714_s0] sm:$0xff] %v9561_v14  ;;  %v3066_v16 = vadd.f32 %v9561_v14, %v9560_v27  ;;  %v3088_v19 = vmul.f32 %v9561_v14, %v9561_v14  ;;  %v8943_v35 = vpop.f32.mrb[18].mxu0  ;;  %v9073_v45 = vpop.f32.mrb[2].mxu1  ;;  %12287 = vst [vmem:[#allocation3_spill] sm:$0xff] %v11745_v34  ;;  %v11752_v14 = vsel %vm5618_vm6, %v6308_v41, %v6310_v2 }
 0x176   : > { %v9562_v48 = vadd.f32 %v9073_v45, %v8943_v35  ;;  %v1888_v51 = vpop.f32.mrb[19].mxu0  ;;  %v2917_v8 = vpop.f32.mrb[3].mxu1  ;;  %9243 = vmatmul.mubr.msk.f32.gmra.mrb[44].mxu0 %vm789_vm2, %v11726_v61  ;;  %12288 = vst [vmem:[#allocation7_spill] sm:$0xff] %v11752_v14 }
 0x177   : > { %9477 = vmatmul.mubr.msk.f32.gmra.mrb[28].mxu1 %vm789_vm2, %v11729_v10  ;;  %v3104_v63 = vadd.f32 %v3089_v40, %v3088_v19  ;;  %v9563_v29 = vadd.f32 %v2917_v8, %v1888_v51  ;;  %9245 = vmatprep.mubr.msk.f32.mxu0 %vm789_vm2, %v11734_v12 }
 0x178   : > { %9479 = vmatprep.mubr.msk.f32.mxu1 %vm789_vm2, %v11737_v13  ;;  %3053 = vst [vmem:[%s11714_s0 + $0x18] sm:$0xff] %v9562_v48  ;;  %v3091_v25 = vmul.f32 %v9562_v48, %v9562_v48 }
 0x179   : > { %3052 = vst [vmem:[%s11714_s0 + $0x10] sm:$0xff] %v9563_v29  ;;  %v3067_v27 = vadd.f32 %v9563_v29, %v3066_v16  ;;  %v3090_v35 = vmul.f32 %v9563_v29, %v9563_v29  ;;  %v8946_v45 = vpop.f32.mrb[20].mxu0  ;;  %v9076_v42 = vpop.f32.mrb[4].mxu1 }
 0x17a   : > { %v9564_v40 = vadd.f32 %v9076_v42, %v8946_v45  ;;  %v1898_v19 = vpop.f32.mrb[21].mxu0  ;;  %v2927_v51 = vpop.f32.mrb[5].mxu1  ;;  %9246 = vmatmul.mubr.msk.f32.gmra.mrb[46].mxu0 %vm789_vm2, %v11745_v34 }
 0x17b   : > { %9480 = vmatmul.mubr.msk.f32.gmra.mrb[30].mxu1 %vm789_vm2, %v11752_v14  ;;  %v3105_v41 = vadd.f32 %v3104_v63, %v3090_v35  ;;  %v9565_v2 = vadd.f32 %v2927_v51, %v1898_v19  ;;  %v3068_v8 = vadd.f32 %v9562_v48, %v3067_v27  ;;  %9250 = vmatprep.mubr.msk.f32.mxu0 %vm789_vm2, %v10990_v24  ;;  %v11773_v24 = vld [vmem:[%s12116_s1 + $0x48] sm:$0xf] }
 0x17c   : > { %9484 = vmatprep.mubr.msk.f32.mxu1 %vm789_vm2, %v11299_v47  ;;  %3055 = vst [vmem:[%s11714_s0 + $0x28] sm:$0xff] %v9564_v40  ;;  %v3093_v12 = vmul.f32 %v9564_v40, %v9564_v40  ;;  %v11778_v47 = vld [vmem:[%s12116_s1 + $0x6c] sm:$0xf] }
 0x17d   : > { %3054 = vst [vmem:[%s11714_s0 + $0x20] sm:$0xff] %v9565_v2  ;;  %v3069_v16 = vadd.f32 %v9565_v2, %v3068_v8  ;;  %v3092_v29 = vmul.f32 %v9565_v2, %v9565_v2  ;;  %v3106_v45 = vadd.f32 %v3105_v41, %v3091_v25  ;;  %v8949_v42 = vpop.f32.mrb[22].mxu0  ;;  %v9079_v34 = vpop.f32.mrb[6].mxu1 }
 0x17e   : > { %v9566_v14 = vadd.f32 %v9079_v34, %v8949_v42  ;;  %v1908_v63 = vpop.f32.mrb[23].mxu0  ;;  %v2937_v35 = vpop.f32.mrb[7].mxu1  ;;  %9251 = vmatmul.mubr.msk.f32.vlgmr.msra.gmra.mrb[32].mxu0 %vm789_vm2, %v11003_v5 }
 0x17f   : > { %9485 = vmatmul.mubr.msk.f32.vlgmr.msra.gmra.mrb[16].mxu1 %vm789_vm2, %v11303_v37  ;;  %v3107_v48 = vadd.f32 %v3106_v45, %v3092_v29  ;;  %v9567_v34 = vadd.f32 %v2937_v35, %v1908_v63  ;;  %v3070_v27 = vadd.f32 %v9564_v40, %v3069_v16  ;;  %9275 = vmatpush3.msk.msra.mxu0 %vm822_vm0, %v11636_v15 }
 0x180   : > { %9509 = vmatpush3.msk.msra.mxu1 %vm822_vm0, %v11641_v26  ;;  %3057 = vst [vmem:[%s11714_s0 + $0x38] sm:$0xff] %v9566_v14  ;;  %9253 = vmatprep.mubr.msk.f32.mxu0 %vm789_vm2, %v11007_v9  ;;  %v3095_v15 = vmul.f32 %v9566_v14, %v9566_v14 }
 0x181   : > { %9487 = vmatprep.mubr.msk.f32.mxu1 %vm789_vm2, %v11316_v3  ;;  %3056 = vst [vmem:[%s11714_s0 + $0x30] sm:$0xff] %v9567_v34  ;;  %v3071_v5 = vadd.f32 %v9567_v34, %v3070_v27  ;;  %v3094_v37 = vmul.f32 %v9567_v34, %v9567_v34  ;;  %v3108_v25 = vadd.f32 %v3107_v48, %v3093_v12  ;;  %v8952_v19 = vpop.f32.mrb[24].mxu0  ;;  %v9082_v40 = vpop.f32.mrb[8].mxu1 }
 0x182   : > { %9300 = vmatprep.subr.msk.mxu0 %vm822_vm0, %v11773_v24  ;;  %9534 = vmatprep.subr.msk.mxu1 %vm822_vm0, %v11778_v47  ;;  %v9568_v26 = vadd.f32 %v9082_v40, %v8952_v19  ;;  %v1918_v9 = vpop.f32.mrb[25].mxu0  ;;  %v2947_v51 = vpop.f32.mrb[9].mxu1  ;;  %v11824_v40 = vld [vmem:[%s10179_s18 + $0x108] sm:$0xff] }
 0x183   : > { %9254 = vmatmul.mubr.msk.f32.gmra.mrb[34].mxu0 %vm789_vm2, %v11020_v22  ;;  %9488 = vmatmul.mubr.msk.f32.gmra.mrb[18].mxu1 %vm789_vm2, %v11320_v11  ;;  %v3109_v3 = vadd.f32 %v3108_v25, %v3094_v37  ;;  %v9569_v12 = vadd.f32 %v2947_v51, %v1918_v9  ;;  %v3072_v41 = vadd.f32 %v9566_v14, %v3071_v5 }
 0x184   : > { %9256 = vmatprep.mubr.msk.f32.mxu0 %vm789_vm2, %v11024_v56  ;;  %9490 = vmatprep.mubr.msk.f32.mxu1 %vm789_vm2, %v11360_v53  ;;  %3059 = vst [vmem:[%s11714_s0 + $0x48] sm:$0xff] %v9568_v26  ;;  %v3097_v45 = vmul.f32 %v9568_v26, %v9568_v26 }
 0x185   : > { %3058 = vst [vmem:[%s11714_s0 + $0x40] sm:$0xff] %v9569_v12  ;;  %v3073_v2 = vadd.f32 %v9569_v12, %v3072_v41  ;;  %v3096_v8 = vmul.f32 %v9569_v12, %v9569_v12  ;;  %v3110_v16 = vadd.f32 %v3109_v3, %v3095_v15  ;;  %v8955_v22 = vpop.f32.mrb[26].mxu0  ;;  %v9085_v29 = vpop.f32.mrb[10].mxu1  ;;  %v4479_v15 = vrot.slane %v11824_v40, 1  ;;  %v11833_v12 = vld [vmem:[%s10179_s18 + $0x120] sm:$0xff] }
 0x186   : > { %v9570_v11 = vadd.f32 %v9085_v29, %v8955_v22  ;;  %v1928_v42 = vpop.f32.mrb[27].mxu0  ;;  %v2957_v63 = vpop.f32.mrb[11].mxu1 }
 0x187   : > { %9257 = vmatmul.mubr.msk.f32.gmra.mrb[36].mxu0 %vm789_vm2, %v11038_v1  ;;  %9491 = vmatmul.mubr.msk.f32.gmra.mrb[20].mxu1 %vm789_vm2, %v11364_v31  ;;  %v3111_v56 = vadd.f32 %v3110_v16, %v3096_v8  ;;  %v9571_v53 = vadd.f32 %v2957_v63, %v1928_v42  ;;  %v3074_v14 = vadd.f32 %v9568_v26, %v3073_v2  ;;  %v11840_v16 = vld [vmem:[%s10179_s18 + $0x118] sm:$0x3f] }
 0x188   : > { %9259 = vmatprep.mubr.msk.f32.mxu0 %vm789_vm2, %v11042_v0  ;;  %9493 = vmatprep.mubr.msk.f32.mxu1 %vm789_vm2, %v11475_v58  ;;  %3061 = vst [vmem:[%s11714_s0 + $0x58] sm:$0xff] %v9570_v11  ;;  %v3099_v31 = vmul.f32 %v9570_v11, %v9570_v11  ;;  %v4482_v22 = vrot.slane %v11840_v16, 1 }
 0x189   : > { %3060 = vst [vmem:[%s11714_s0 + $0x50] sm:$0xff] %v9571_v53  ;;  %v3075_v35 = vadd.f32 %v9571_v53, %v3074_v14  ;;  %v3098_v48 = vmul.f32 %v9571_v53, %v9571_v53  ;;  %v3112_v34 = vadd.f32 %v3111_v56, %v3097_v45  ;;  %v8958_v1 = vpop.f32.mrb[28].mxu0  ;;  %v9088_v27 = vpop.f32.mrb[12].mxu1 }
 0x18a   : > { %v9572_v5 = vadd.f32 %v9088_v27, %v8958_v1  ;;  %v1938_v37 = vpop.f32.mrb[29].mxu0  ;;  %v2967_v25 = vpop.f32.mrb[13].mxu1  ;;  %v11863_v27 = vld [vmem:[%s10179_s18 + $0x138] sm:$0xff] }
 0x18b   : > { %9260 = vmatmul.mubr.msk.f32.gmra.mrb[38].mxu0 %vm789_vm2, %v11059_v21  ;;  %9494 = vmatmul.mubr.msk.f32.gmra.mrb[22].mxu1 %vm789_vm2, %v11479_v57  ;;  %v3113_v0 = vadd.f32 %v3112_v34, %v3098_v48  ;;  %v9573_v58 = vadd.f32 %v2967_v25, %v1938_v37  ;;  %v3076_v19 = vadd.f32 %v9570_v11, %v3075_v35  ;;  %v11828_v21 = vld [vmem:[%s10179_s18 + $0x110] sm:$0xff]  ;;  %v4487_v34 = vrot.slane %v11608_v28, 1 }
 0x18c   : > { %9262 = vmatprep.mubr.msk.f32.mxu0 %vm789_vm2, %v11495_v6  ;;  %9496 = vmatprep.mubr.msk.f32.mxu1 %vm789_vm2, %v11498_v39  ;;  %3063 = vst [vmem:[%s11714_s0 + $0x68] sm:$0xff] %v9572_v5  ;;  %v4480_v57 = vrot.slane %v11828_v21, 1  ;;  %v3101_v39 = vmul.f32 %v9572_v5, %v9572_v5 }
 0x18d   : > { %3062 = vst [vmem:[%s11714_s0 + $0x60] sm:$0xff] %v9573_v58  ;;  %v3077_v26 = vadd.f32 %v9573_v58, %v3076_v19  ;;  %v3100_v9 = vmul.f32 %v9573_v58, %v9573_v58  ;;  %v3114_v51 = vadd.f32 %v3113_v0, %v3099_v31  ;;  %v8961_v3 = vpop.f32.mrb[30].mxu0  ;;  %v9091_v6 = vpop.f32.mrb[14].mxu1  ;;  %v11873_v0 = vld [vmem:[%s10179_s18 + $0x140] sm:$0xff] }
 0x18e   : > { %v9574_v41 = vadd.f32 %v9091_v6, %v8961_v3  ;;  %v1948_v2 = vpop.f32.mrb[31].mxu0  ;;  %v2977_v8 = vpop.f32.mrb[15].mxu1  ;;  %v4481_v42 = vsel %vm3129_vm4, %v4479_v15, %v4480_v57  ;;  %v12291_v6 = vld [vmem:[#allocation20_spill] sm:$0xff] }
 0x18f   : > { %9263 = vmatmul.mubr.msk.f32.gmra.mrb[40].mxu0 %vm789_vm2, %v11514_v18  ;;  %9497 = vmatmul.mubr.msk.f32.gmra.mrb[24].mxu1 %vm789_vm2, %v11502_v20  ;;  %v3115_v29 = vadd.f32 %v3114_v51, %v3100_v9  ;;  %v9575_v45 = vadd.f32 %v2977_v8, %v1948_v2  ;;  %v3078_v11 = vadd.f32 %v9572_v5, %v3077_v26  ;;  %v4484_v18 = vrot.slane %v11833_v12, 1  ;;  %v12299_v2 = vld [vmem:[#allocation25_spill] sm:$0xff] }
 0x190   : > { %9265 = vmatprep.mubr.msk.f32.mxu0 %vm789_vm2, %v11521_v17  ;;  %9499 = vmatprep.mubr.msk.f32.mxu1 %vm789_vm2, %v11824_v40  ;;  %3065 = vst [vmem:[%s11714_s0 + $0x78] sm:$0xff] %v9574_v41  ;;  %v4485_v20 = vrot.slane %v11601_v23, 1  ;;  %v4483_v17 = vsel %vm3129_vm4, %v4480_v57, %v4482_v22  ;;  %v3103_v14 = vmul.f32 %v9574_v41, %v9574_v41  ;;  %v6942_v8 = vrot.slane %v11824_v40, 6 }
 0x191   : > { %3064 = vst [vmem:[%s11714_s0 + $0x70] sm:$0xff] %v9575_v45  ;;  %v3079_v63 = vadd.f32 %v9575_v45, %v3078_v11  ;;  %v3102_v56 = vmul.f32 %v9575_v45, %v9575_v45  ;;  %v3116_v53 = vadd.f32 %v3115_v29, %v3101_v39  ;;  %s663_s0 = scalar_lea.vmem %s12126_s11, %s11412_s26  ;;  %v12292_v39 = vld [vmem:[#allocation16_spill] sm:$0xff]  ;;  %v6943_v22 = vrot.slane %v11828_v21, 6  ;;  %v12300_v29 = vld [vmem:[#allocation21_spill] sm:$0xff] }
 0x192   : > { %v4486_v1 = vsel %vm3129_vm4, %v4484_v18, %v4485_v20  ;;  %v4488_v25 = vsel %vm3129_vm4, %v4485_v20, %v4487_v34  ;;  %v12301_v45 = vld [vmem:[#allocation24_spill] sm:$0xff]  ;;  %v4902_v18 = vrot.slane %v11824_v40, 5  ;;  %v4903_v20 = vrot.slane %v11828_v21, 5  ;;  %v12304_v34 = vld [vmem:[#allocation3_spill] sm:$0xff] }
 0x193   : > { %9266 = vmatmul.mubr.msk.f32.gmra.mrb[42].mxu0 %vm789_vm2, %v11532_v59  ;;  %9500 = vmatmul.mubr.msk.f32.gmra.mrb[26].mxu1 %vm789_vm2, %v11828_v21  ;;  %v3080_v35 = vadd.f32 %v9574_v41, %v3079_v63  ;;  %v3117_v48 = vadd.f32 %v3116_v53, %v3102_v56  ;;  %v12293_v41 = vld [vmem:[#allocation22_spill] sm:$0xff]  ;;  %v6944_v11 = vsel %vm5618_vm6, %v6942_v8, %v6943_v22  ;;  %v6947_v63 = vrot.slane %v11833_v12, 6  ;;  %v12303_v53 = vld [vmem:[#allocation5_spill] sm:$0xff] }
 0x194   : > { %9268 = vmatprep.mubr.msk.f32.mxu0 %vm789_vm2, %v4481_v42  ;;  %9502 = vmatprep.mubr.msk.f32.mxu1 %vm789_vm2, %v11833_v12  ;;  %v6945_v42 = vrot.slane %v11840_v16, 6  ;;  %v6948_v56 = vrot.slane %v11601_v23, 6  ;;  %v4905_v21 = vrot.slane %v11840_v16, 5 }
 0x195   : > { %v3081_v59 = vrot.slane %v3080_v35, 4  ;;  %v3118_v31 = vadd.f32 %v3117_v48, %v3103_v14  ;;  %v6953_v14 = vrot.slane %v11873_v0, 6  ;;  %v4907_v48 = vrot.slane %v11833_v12, 5 }
 0x196   : > { %v6946_v40 = vsel %vm5618_vm6, %v6943_v22, %v6945_v42 }
 0x197   : > { %9269 = vmatmul.mubr.msk.f32.gmra.mrb[44].mxu0 %vm789_vm2, %v4483_v17  ;;  %9503 = vmatmul.mubr.msk.f32.gmra.mrb[28].mxu1 %vm789_vm2, %v11601_v23  ;;  %v3082_v5 = vadd.f32 %v3081_v59, %v3080_v35  ;;  %v3119_v37 = vrot.slane %v3118_v31, 4  ;;  %v6950_v17 = vrot.slane %v11608_v28, 6  ;;  %v6949_v35 = vsel %vm5618_vm6, %v6947_v63, %v6948_v56 }
 0x198   : > { %9271 = vmatprep.mubr.msk.f32.mxu0 %vm789_vm2, %v4486_v1  ;;  %9505 = vmatprep.mubr.msk.f32.mxu1 %vm789_vm2, %v11863_v27 }
 0x199   : > { %v3083_v58 = vrot.slane %v3082_v5, 2  ;;  %v3120_v19 = vadd.f32 %v3119_v37, %v3118_v31  ;;  %v6951_v16 = vsel %vm5618_vm6, %v6948_v56, %v6950_v17 }
 0x19b   : > { %9272 = vmatmul.mubr.msk.f32.gmra.mrb[46].mxu0 %vm789_vm2, %v4488_v25  ;;  %9506 = vmatmul.mubr.msk.f32.gmra.mrb[30].mxu1 %vm789_vm2, %v11873_v0  ;;  %v3084_v15 = vadd.f32 %v3083_v58, %v3082_v5  ;;  %v3121_v57 = vrot.slane %v3120_v19, 2  ;;  %v12306_v5 = vld [vmem:[#allocation11_spill] sm:$0xff] }
 0x19c   : > { %9276 = vmatprep.mubr.msk.f32.mxu0 %vm789_vm2, %v10260_v30  ;;  %9510 = vmatprep.mubr.msk.f32.mxu1 %vm789_vm2, %v10290_v38 }
 0x19d   : > { %v3085_v26 = vrot.slane %v3084_v15, 1  ;;  %v3122_v9 = vadd.f32 %v3121_v57, %v3120_v19 }
 0x19f   : > { %9277 = vmatmul.mubr.msk.f32.vlgmr.msra.gmra.mrb[32].mxu0 %vm789_vm2, %v10286_v36  ;;  %9511 = vmatmul.mubr.msk.f32.vlgmr.msra.gmra.mrb[16].mxu1 %vm789_vm2, %v10312_v44  ;;  %v3086_v51 = vadd.f32 %v3085_v26, %v3084_v15  ;;  %v3123_v3 = vrot.slane %v3122_v9, 1  ;;  %v4695_v36 = vrot.slane %v11833_v12, 3 }
 0x1a0   : > { %9301 = vmatpush3.msk.msra.mxu0 %vm822_vm0, %v11773_v24  ;;  %9535 = vmatpush3.msk.msra.mxu1 %vm822_vm0, %v11778_v47 }
 0x1a1   : > { %9279 = vmatprep.mubr.msk.f32.mxu0 %vm789_vm2, %v10290_v38  ;;  %9513 = vmatprep.mubr.msk.f32.mxu1 %vm789_vm2, %v10316_v46  ;;  %3087 = vst [vmem:[%s635_s20] sm:$0x1] %v3086_v51  ;;  %v3124_v30 = vadd.f32 %v3123_v3, %v3122_v9  ;;  %v4696_v38 = vrot.slane %v11601_v23, 3  ;;  %s642_s20 = scalar_lea.vmem %s12123_s8, %s11412_s26 }
 0x1a3   : > { %9280 = vmatmul.mubr.msk.f32.gmra.mrb[34].mxu0 %vm789_vm2, %v10312_v44  ;;  %9514 = vmatmul.mubr.msk.f32.gmra.mrb[18].mxu1 %vm789_vm2, %v10338_v52  ;;  %3125 = vst [vmem:[%s663_s0] sm:$0x1] %v3124_v30  ;;  %v12289_v44 = vld [vmem:[#allocation26_spill] sm:$0xff]  ;;  %s649_s0 = scalar_lea.vmem %s12124_s9, %s11412_s26 }
 0x1a4   : > { %9282 = vmatprep.mubr.msk.f32.mxu0 %vm789_vm2, %v10316_v46  ;;  %9516 = vmatprep.mubr.msk.f32.mxu1 %vm789_vm2, %v10342_v54  ;;  %v4698_v46 = vrot.slane %v11608_v28, 3  ;;  %v4906_v28 = vsel %vm3575_vm5, %v4903_v20, %v4905_v21 }
 0x1a7   : > { %9283 = vmatmul.mubr.msk.f32.gmra.mrb[36].mxu0 %vm789_vm2, %v10338_v52  ;;  %9517 = vmatmul.mubr.msk.f32.gmra.mrb[20].mxu1 %vm789_vm2, %v10364_v60  ;;  %v6735_v52 = vrot.slane %v11863_v27, 3 }
 0x1a8   : > { %9285 = vmatprep.mubr.msk.f32.mxu0 %vm789_vm2, %v10342_v54  ;;  %9519 = vmatprep.mubr.msk.f32.mxu1 %vm789_vm2, %v10368_v62  ;;  %v6736_v54 = vrot.slane %v11873_v0, 3 }
 0x1aa   : > { %v6737_v47 = vsel %vm747_vm1, %v6735_v52, %v6736_v54 }
 0x1ab   : > { %9286 = vmatmul.mubr.msk.f32.gmra.mrb[38].mxu0 %vm789_vm2, %v10364_v60  ;;  %9520 = vmatmul.mubr.msk.f32.gmra.mrb[22].mxu1 %vm789_vm2, %v10390_v7  ;;  %v4697_v60 = vsel %vm747_vm1, %v4695_v36, %v4696_v38 }
 0x1ac   : > { %9288 = vmatprep.mubr.msk.f32.mxu0 %vm789_vm2, %v10368_v62  ;;  %9522 = vmatprep.mubr.msk.f32.mxu1 %vm789_vm2, %v12267_v50  ;;  %v11941_v62 = vld [vmem:[%s10179_s18 + $0x148] sm:$0x3f] }
 0x1ad   : > { %v6738_v24 = vrot.slane %v11941_v62, 3  ;;  %v6955_v1 = vrot.slane %v11941_v62, 6 }
 0x1af   : > { %9289 = vmatmul.mubr.msk.f32.gmra.mrb[40].mxu0 %vm789_vm2, %v10390_v7  ;;  %9523 = vmatmul.mubr.msk.f32.gmra.mrb[24].mxu1 %vm789_vm2, %v12269_v4  ;;  %v12290_v7 = vld [vmem:[#allocation27_spill] sm:$0xff]  ;;  %v6956_v31 = vsel %vm5618_vm6, %v6953_v14, %v6955_v1 }
 0x1b0   : > { %9291 = vmatprep.mubr.msk.f32.mxu0 %vm789_vm2, %v12267_v50  ;;  %9525 = vmatprep.mubr.msk.f32.mxu1 %vm789_vm2, %v12289_v44  ;;  %v4699_v50 = vsel %vm747_vm1, %v4696_v38, %v4698_v46 }
 0x1b3   : > { %9292 = vmatmul.mubr.msk.f32.gmra.mrb[42].mxu0 %vm789_vm2, %v12269_v4  ;;  %9526 = vmatmul.mubr.msk.f32.gmra.mrb[26].mxu1 %vm789_vm2, %v12290_v7  ;;  %v6739_v4 = vsel %vm747_vm1, %v6736_v54, %v6738_v24 }
 0x1b4   : > { %9294 = vmatprep.mubr.msk.f32.mxu0 %vm789_vm2, %v12289_v44  ;;  %9528 = vmatprep.mubr.msk.f32.mxu1 %vm789_vm2, %v4697_v60 }
 0x1b7   : > { %9295 = vmatmul.mubr.msk.f32.gmra.mrb[44].mxu0 %vm789_vm2, %v12290_v7  ;;  %9529 = vmatmul.mubr.msk.f32.gmra.mrb[28].mxu1 %vm789_vm2, %v4699_v50 }
 0x1b8   : > { %9297 = vmatprep.mubr.msk.f32.mxu0 %vm789_vm2, %v4697_v60  ;;  %9531 = vmatprep.mubr.msk.f32.mxu1 %vm789_vm2, %v6737_v47 }
 0x1bb   : > { %9298 = vmatmul.mubr.msk.f32.gmra.mrb[46].mxu0 %vm789_vm2, %v4699_v50  ;;  %9532 = vmatmul.mubr.msk.f32.gmra.mrb[30].mxu1 %vm789_vm2, %v6739_v4 }
 0x1bc   : > { %9302 = vmatprep.mubr.msk.f32.mxu0 %vm789_vm2, %v12278_v43  ;;  %9536 = vmatprep.mubr.msk.f32.mxu1 %vm789_vm2, %v11351_v32  ;;  %v12294_v43 = vld [vmem:[#allocation17_spill] sm:$0xff]  ;;  %v12295_v32 = vld [vmem:[#allocation12_spill] sm:$0xff] }
 0x1bf   : > { %9303 = vmatmul.mubr.msk.f32.vlgmr.msra.gmra.mrb[32].mxu0 %vm789_vm2, %v12280_v33  ;;  %9537 = vmatmul.mubr.msk.f32.vlgmr.msra.gmra.mrb[16].mxu1 %vm789_vm2, %v11378_v55  ;;  %v12296_v33 = vld [vmem:[#allocation18_spill] sm:$0xff]  ;;  %v12297_v55 = vld [vmem:[#allocation23_spill] sm:$0xff] }
 0x1c0   : > { %9305 = vmatprep.mubr.msk.f32.mxu0 %vm789_vm2, %v12281_v49  ;;  %9539 = vmatprep.mubr.msk.f32.mxu1 %vm789_vm2, %v12291_v6  ;;  %v12298_v49 = vld [vmem:[#allocation19_spill] sm:$0xff] }
 0x1c3   : > { %9306 = vmatmul.mubr.msk.f32.gmra.mrb[34].mxu0 %vm789_vm2, %v12292_v39  ;;  %9540 = vmatmul.mubr.msk.f32.gmra.mrb[18].mxu1 %vm789_vm2, %v12293_v41 }
 0x1c4   : > { %9308 = vmatprep.mubr.msk.f32.mxu0 %vm789_vm2, %v12294_v43  ;;  %9542 = vmatprep.mubr.msk.f32.mxu1 %vm789_vm2, %v12295_v32 }
 0x1c7   : > { %9309 = vmatmul.mubr.msk.f32.gmra.mrb[36].mxu0 %vm789_vm2, %v12296_v33  ;;  %9543 = vmatmul.mubr.msk.f32.gmra.mrb[20].mxu1 %vm789_vm2, %v12297_v55 }
 0x1c8   : > { %9311 = vmatprep.mubr.msk.f32.mxu0 %vm789_vm2, %v12298_v49  ;;  %9545 = vmatprep.mubr.msk.f32.mxu1 %vm789_vm2, %v12299_v2 }
 0x1cb   : > { %9312 = vmatmul.mubr.msk.f32.gmra.mrb[38].mxu0 %vm789_vm2, %v12300_v29  ;;  %9546 = vmatmul.mubr.msk.f32.gmra.mrb[22].mxu1 %vm789_vm2, %v11729_v10  ;;  %v12302_v10 = vld [vmem:[#allocation7_spill] sm:$0xff] }
 0x1cc   : > { %9314 = vmatprep.mubr.msk.f32.mxu0 %vm789_vm2, %v12301_v45  ;;  %9548 = vmatprep.mubr.msk.f32.mxu1 %vm789_vm2, %v11737_v13  ;;  %v6952_v13 = vrot.slane %v11863_v27, 6  ;;  %v12305_v27 = vrot.slane %v11601_v23, 5 }
 0x1ce   : > { %v4909_v12 = vsel %vm3575_vm5, %v4907_v48, %v12305_v27  ;;  %v6954_v59 = vsel %vm5618_vm6, %v6952_v13, %v6953_v14 }
 0x1cf   : > { %9315 = vmatmul.mubr.msk.f32.gmra.mrb[40].mxu0 %vm789_vm2, %v11726_v61  ;;  %9549 = vmatmul.mubr.msk.f32.gmra.mrb[24].mxu1 %vm789_vm2, %v12302_v10  ;;  %v4904_v61 = vsel %vm3575_vm5, %v4902_v18, %v4903_v20 }
 0x1d0   : > { %9317 = vmatprep.mubr.msk.f32.mxu0 %vm789_vm2, %v12303_v53  ;;  %9551 = vmatprep.mubr.msk.f32.mxu1 %vm789_vm2, %v6944_v11 }
 0x1d3   : > { %9318 = vmatmul.mubr.msk.f32.gmra.mrb[42].mxu0 %vm789_vm2, %v12304_v34  ;;  %9552 = vmatmul.mubr.msk.f32.gmra.mrb[26].mxu1 %vm789_vm2, %v6946_v40 }
 0x1d4   : > { %9320 = vmatprep.mubr.msk.f32.mxu0 %vm789_vm2, %v4904_v61  ;;  %9554 = vmatprep.mubr.msk.f32.mxu1 %vm789_vm2, %v6949_v35 }
 0x1d7   : > { %9321 = vmatmul.mubr.msk.f32.gmra.mrb[44].mxu0 %vm789_vm2, %v4906_v28  ;;  %9555 = vmatmul.mubr.msk.f32.gmra.mrb[28].mxu1 %vm789_vm2, %v6951_v16 }
 0x1d8   : > { %9323 = vmatprep.mubr.msk.f32.mxu0 %vm789_vm2, %v4909_v12  ;;  %9557 = vmatprep.mubr.msk.f32.mxu1 %vm789_vm2, %v6954_v59 }
 0x1db   : > { %9324 = vmatmul.mubr.msk.f32.gmra.mrb[46].mxu0 %vm789_vm2, %v12306_v5  ;;  %9558 = vmatmul.mubr.msk.f32.gmra.mrb[30].mxu1 %vm789_vm2, %v6956_v31 }
 0x292   : > { %v9304_v23 = vpop.f32.mrb[32].mxu0  ;;  %v9538_v37 = vpop.f32.mrb[16].mxu1 }
 0x293   : > { %5135 = vst [vmem:[%s12044_s24 + $0x8] sm:$0xff] %v9304_v23  ;;  %v5173_v25 = vmul.f32 %v9304_v23, %v9304_v23  ;;  %7184 = vst [vmem:[%s12050_s17 + $0x8] sm:$0xff] %v9538_v37  ;;  %v7222_v0 = vmul.f32 %v9538_v37, %v9538_v37  ;;  %v4991_v58 = vpop.f32.mrb[33].mxu0  ;;  %v7040_v19 = vpop.f32.mrb[17].mxu1 }
 0x294   : > { %5134 = vst [vmem:[%s12044_s24] sm:$0xff] %v4991_v58  ;;  %v5150_v15 = vadd.f32 %v9304_v23, %v4991_v58  ;;  %v5172_v57 = vmul.f32 %v4991_v58, %v4991_v58  ;;  %7183 = vst [vmem:[%s12050_s17] sm:$0xff] %v7040_v19  ;;  %v7199_v26 = vadd.f32 %v9538_v37, %v7040_v19 }
 0x295   : > { %v7221_v9 = vmul.f32 %v7040_v19, %v7040_v19 }
 0x296   : > { %v5188_v51 = vadd.f32 %v5173_v25, %v5172_v57  ;;  %v9307_v30 = vpop.f32.mrb[34].mxu0  ;;  %v9541_v36 = vpop.f32.mrb[18].mxu1 }
 0x297   : > { %v7237_v3 = vadd.f32 %v7222_v0, %v7221_v9  ;;  %5137 = vst [vmem:[%s12044_s24 + $0x18] sm:$0xff] %v9307_v30  ;;  %7186 = vst [vmem:[%s12050_s17 + $0x18] sm:$0xff] %v9541_v36  ;;  %v5001_v38 = vpop.f32.mrb[35].mxu0  ;;  %v7050_v44 = vpop.f32.mrb[19].mxu1  ;;  %v5175_v62 = vmul.f32 %v9307_v30, %v9307_v30  ;;  %v7224_v39 = vmul.f32 %v9541_v36, %v9541_v36 }
 0x298   : > { %5136 = vst [vmem:[%s12044_s24 + $0x10] sm:$0xff] %v5001_v38  ;;  %v5151_v46 = vadd.f32 %v5150_v15, %v5001_v38  ;;  %v5174_v52 = vmul.f32 %v5001_v38, %v5001_v38  ;;  %7185 = vst [vmem:[%s12050_s17 + $0x10] sm:$0xff] %v7050_v44  ;;  %v7200_v54 = vadd.f32 %v7199_v26, %v7050_v44 }
 0x299   : > { %v7223_v60 = vmul.f32 %v7050_v44, %v7050_v44 }
 0x29a   : > { %v5189_v7 = vadd.f32 %v5188_v51, %v5174_v52  ;;  %v9310_v24 = vpop.f32.mrb[36].mxu0  ;;  %v9544_v47 = vpop.f32.mrb[20].mxu1  ;;  %v5152_v4 = vadd.f32 %v9307_v30, %v5151_v46  ;;  %v7201_v6 = vadd.f32 %v9541_v36, %v7200_v54 }
 0x29b   : > { %v7238_v50 = vadd.f32 %v7237_v3, %v7223_v60  ;;  %5139 = vst [vmem:[%s12044_s24 + $0x28] sm:$0xff] %v9310_v24  ;;  %7188 = vst [vmem:[%s12050_s17 + $0x28] sm:$0xff] %v9544_v47  ;;  %v5011_v41 = vpop.f32.mrb[37].mxu0  ;;  %v7060_v43 = vpop.f32.mrb[21].mxu1  ;;  %v5177_v22 = vmul.f32 %v9310_v24, %v9310_v24  ;;  %v7226_v20 = vmul.f32 %v9544_v47, %v9544_v47 }
 0x29c   : > { %5138 = vst [vmem:[%s12044_s24 + $0x20] sm:$0xff] %v5011_v41  ;;  %v5153_v32 = vadd.f32 %v5152_v4, %v5011_v41  ;;  %v5176_v33 = vmul.f32 %v5011_v41, %v5011_v41  ;;  %v5190_v55 = vadd.f32 %v5189_v7, %v5175_v62  ;;  %7187 = vst [vmem:[%s12050_s17 + $0x20] sm:$0xff] %v7060_v43 }
 0x29d   : > { %v7202_v49 = vadd.f32 %v7201_v6, %v7060_v43  ;;  %v7225_v2 = vmul.f32 %v7060_v43, %v7060_v43  ;;  %v7239_v8 = vadd.f32 %v7238_v50, %v7224_v39 }
 0x29e   : > { %v5191_v29 = vadd.f32 %v5190_v55, %v5176_v33  ;;  %v9313_v45 = vpop.f32.mrb[38].mxu0  ;;  %v9547_v11 = vpop.f32.mrb[22].mxu1  ;;  %v5154_v42 = vadd.f32 %v9310_v24, %v5153_v32 }
 0x29f   : > { %v7203_v18 = vadd.f32 %v9544_v47, %v7202_v49  ;;  %v7240_v63 = vadd.f32 %v7239_v8, %v7225_v2  ;;  %5141 = vst [vmem:[%s12044_s24 + $0x38] sm:$0xff] %v9313_v45  ;;  %7190 = vst [vmem:[%s12050_s17 + $0x38] sm:$0xff] %v9547_v11  ;;  %v5021_v56 = vpop.f32.mrb[39].mxu0  ;;  %v7070_v10 = vpop.f32.mrb[23].mxu1  ;;  %v5179_v61 = vmul.f32 %v9313_v45, %v9313_v45 }
 0x2a0   : > { %5140 = vst [vmem:[%s12044_s24 + $0x30] sm:$0xff] %v5021_v56  ;;  %v5155_v13 = vadd.f32 %v5154_v42, %v5021_v56  ;;  %v5178_v53 = vmul.f32 %v5021_v56, %v5021_v56  ;;  %v5192_v40 = vadd.f32 %v5191_v29, %v5177_v22  ;;  %7189 = vst [vmem:[%s12050_s17 + $0x30] sm:$0xff] %v7070_v10 }
 0x2a1   : > { %v7204_v21 = vadd.f32 %v7203_v18, %v7070_v10  ;;  %v7227_v17 = vmul.f32 %v7070_v10, %v7070_v10  ;;  %v7241_v14 = vadd.f32 %v7240_v63, %v7226_v20  ;;  %v7228_v1 = vmul.f32 %v9547_v11, %v9547_v11 }
 0x2a2   : > { %v5193_v35 = vadd.f32 %v5192_v40, %v5178_v53  ;;  %v9316_v48 = vpop.f32.mrb[40].mxu0  ;;  %v9550_v34 = vpop.f32.mrb[24].mxu1  ;;  %v5156_v28 = vadd.f32 %v9313_v45, %v5155_v13 }
 0x2a3   : > { %v7205_v16 = vadd.f32 %v9547_v11, %v7204_v21  ;;  %v7242_v27 = vadd.f32 %v7241_v14, %v7227_v17  ;;  %5143 = vst [vmem:[%s12044_s24 + $0x48] sm:$0xff] %v9316_v48  ;;  %7192 = vst [vmem:[%s12050_s17 + $0x48] sm:$0xff] %v9550_v34  ;;  %v5031_v12 = vpop.f32.mrb[41].mxu0  ;;  %v7080_v59 = vpop.f32.mrb[25].mxu1  ;;  %v5181_v58 = vmul.f32 %v9316_v48, %v9316_v48 }
 0x2a4   : > { %5142 = vst [vmem:[%s12044_s24 + $0x40] sm:$0xff] %v5031_v12  ;;  %v5157_v31 = vadd.f32 %v5156_v28, %v5031_v12  ;;  %v5180_v5 = vmul.f32 %v5031_v12, %v5031_v12  ;;  %v5194_v23 = vadd.f32 %v5193_v35, %v5179_v61  ;;  %7191 = vst [vmem:[%s12050_s17 + $0x40] sm:$0xff] %v7080_v59 }
 0x2a5   : > { %v7206_v37 = vadd.f32 %v7205_v16, %v7080_v59  ;;  %v7229_v25 = vmul.f32 %v7080_v59, %v7080_v59  ;;  %v7243_v0 = vadd.f32 %v7242_v27, %v7228_v1  ;;  %v7230_v51 = vmul.f32 %v9550_v34, %v9550_v34 }
 0x2a6   : > { %v5195_v19 = vadd.f32 %v5194_v23, %v5180_v5  ;;  %v9319_v15 = vpop.f32.mrb[42].mxu0  ;;  %v9553_v57 = vpop.f32.mrb[26].mxu1  ;;  %v5158_v26 = vadd.f32 %v9316_v48, %v5157_v31 }
 0x2a7   : > { %v7207_v9 = vadd.f32 %v9550_v34, %v7206_v37  ;;  %v7244_v3 = vadd.f32 %v7243_v0, %v7229_v25  ;;  %5145 = vst [vmem:[%s12044_s24 + $0x58] sm:$0xff] %v9319_v15  ;;  %7194 = vst [vmem:[%s12050_s17 + $0x58] sm:$0xff] %v9553_v57  ;;  %v5041_v30 = vpop.f32.mrb[43].mxu0  ;;  %v7090_v36 = vpop.f32.mrb[27].mxu1  ;;  %v5183_v62 = vmul.f32 %v9319_v15, %v9319_v15 }
 0x2a8   : > { %5144 = vst [vmem:[%s12044_s24 + $0x50] sm:$0xff] %v5041_v30  ;;  %v5159_v38 = vadd.f32 %v5158_v26, %v5041_v30  ;;  %v5182_v44 = vmul.f32 %v5041_v30, %v5041_v30  ;;  %v5196_v46 = vadd.f32 %v5195_v19, %v5181_v58  ;;  %7193 = vst [vmem:[%s12050_s17 + $0x50] sm:$0xff] %v7090_v36 }
 0x2a9   : > { %v7208_v52 = vadd.f32 %v7207_v9, %v7090_v36  ;;  %v7231_v54 = vmul.f32 %v7090_v36, %v7090_v36  ;;  %v7245_v60 = vadd.f32 %v7244_v3, %v7230_v51  ;;  %v7232_v6 = vmul.f32 %v9553_v57, %v9553_v57 }
 0x2aa   : > { %v5197_v7 = vadd.f32 %v5196_v46, %v5182_v44  ;;  %v9322_v50 = vpop.f32.mrb[44].mxu0  ;;  %v9556_v24 = vpop.f32.mrb[28].mxu1  ;;  %v5160_v47 = vadd.f32 %v9319_v15, %v5159_v38 }
 0x2ab   : > { %v7209_v4 = vadd.f32 %v9553_v57, %v7208_v52  ;;  %v7246_v39 = vadd.f32 %v7245_v60, %v7231_v54  ;;  %5147 = vst [vmem:[%s12044_s24 + $0x68] sm:$0xff] %v9322_v50  ;;  %7196 = vst [vmem:[%s12050_s17 + $0x68] sm:$0xff] %v9556_v24  ;;  %v5051_v41 = vpop.f32.mrb[45].mxu0  ;;  %v7100_v43 = vpop.f32.mrb[29].mxu1  ;;  %v5185_v22 = vmul.f32 %v9322_v50, %v9322_v50 }
 0x2ac   : > { %5146 = vst [vmem:[%s12044_s24 + $0x60] sm:$0xff] %v5051_v41  ;;  %v5161_v32 = vadd.f32 %v5160_v47, %v5051_v41  ;;  %v5184_v33 = vmul.f32 %v5051_v41, %v5051_v41  ;;  %v5198_v55 = vadd.f32 %v5197_v7, %v5183_v62  ;;  %7195 = vst [vmem:[%s12050_s17 + $0x60] sm:$0xff] %v7100_v43 }
 0x2ad   : > { %v7210_v49 = vadd.f32 %v7209_v4, %v7100_v43  ;;  %v7233_v2 = vmul.f32 %v7100_v43, %v7100_v43  ;;  %v7247_v8 = vadd.f32 %v7246_v39, %v7232_v6  ;;  %v7234_v20 = vmul.f32 %v9556_v24, %v9556_v24 }
 0x2ae   : > { %v5199_v29 = vadd.f32 %v5198_v55, %v5184_v33  ;;  %v9325_v45 = vpop.f32.mrb[46].mxu0  ;;  %v9559_v11 = vpop.f32.mrb[30].mxu1  ;;  %v5162_v42 = vadd.f32 %v9322_v50, %v5161_v32 }
 0x2af   : > { %v7211_v18 = vadd.f32 %v9556_v24, %v7210_v49  ;;  %v7248_v63 = vadd.f32 %v7247_v8, %v7233_v2  ;;  %5149 = vst [vmem:[%s12044_s24 + $0x78] sm:$0xff] %v9325_v45  ;;  %7198 = vst [vmem:[%s12050_s17 + $0x78] sm:$0xff] %v9559_v11  ;;  %v5061_v56 = vpop.f32.mrb[47].mxu0  ;;  %v7110_v10 = vpop.f32.mrb[31].mxu1  ;;  %v5187_v61 = vmul.f32 %v9325_v45, %v9325_v45 }
 0x2b0   : > { %5148 = vst [vmem:[%s12044_s24 + $0x70] sm:$0xff] %v5061_v56  ;;  %v5163_v13 = vadd.f32 %v5162_v42, %v5061_v56  ;;  %v5186_v53 = vmul.f32 %v5061_v56, %v5061_v56  ;;  %v5200_v40 = vadd.f32 %v5199_v29, %v5185_v22  ;;  %7197 = vst [vmem:[%s12050_s17 + $0x70] sm:$0xff] %v7110_v10  ;;  %s670_s24 = scalar_lea.vmem %s12127_s12, %s11412_s26  ;;  %s677_s17 = scalar_lea.vmem %s12128_s13, %s11412_s26 }
 0x2b1   : > { %v7212_v21 = vadd.f32 %v7211_v18, %v7110_v10  ;;  %v7235_v17 = vmul.f32 %v7110_v10, %v7110_v10  ;;  %v7249_v14 = vadd.f32 %v7248_v63, %v7234_v20  ;;  %v7236_v28 = vmul.f32 %v9559_v11, %v9559_v11 }
 0x2b2   : > { %v5164_v35 = vadd.f32 %v9325_v45, %v5163_v13  ;;  %v5201_v48 = vadd.f32 %v5200_v40, %v5186_v53 }
 0x2b3   : > { %v7213_v34 = vadd.f32 %v9559_v11, %v7212_v21  ;;  %v7250_v16 = vadd.f32 %v7249_v14, %v7235_v17 }
 0x2b4   : > { %v5165_v1 = vrot.slane %v5164_v35, 4  ;;  %v5202_v27 = vadd.f32 %v5201_v48, %v5187_v61 }
 0x2b5   : > { %v7214_v12 = vrot.slane %v7213_v34, 4  ;;  %v7251_v59 = vadd.f32 %v7250_v16, %v7236_v28 }
 0x2b6   : > { %v5166_v31 = vadd.f32 %v5165_v1, %v5164_v35  ;;  %v5203_v5 = vrot.slane %v5202_v27, 4 }
 0x2b7   : > { %v7215_v23 = vadd.f32 %v7214_v12, %v7213_v34  ;;  %v7252_v37 = vrot.slane %v7251_v59, 4 }
 0x2b8   : > { %v5167_v25 = vrot.slane %v5166_v31, 2  ;;  %v5204_v0 = vadd.f32 %v5203_v5, %v5202_v27 }
 0x2b9   : > { %v7216_v58 = vrot.slane %v7215_v23, 2  ;;  %v7253_v19 = vadd.f32 %v7252_v37, %v7251_v59 }
 0x2ba   : > { %v5168_v15 = vadd.f32 %v5167_v25, %v5166_v31  ;;  %v5205_v57 = vrot.slane %v5204_v0, 2 }
 0x2bb   : > { %v7217_v26 = vadd.f32 %v7216_v58, %v7215_v23  ;;  %v7254_v9 = vrot.slane %v7253_v19, 2 }
 0x2bc   : > { %v5169_v51 = vrot.slane %v5168_v15, 1  ;;  %v5206_v3 = vadd.f32 %v5205_v57, %v5204_v0 }
 0x2bd   : > { %v7218_v30 = vrot.slane %v7217_v26, 1  ;;  %v7255_v36 = vadd.f32 %v7254_v9, %v7253_v19 }
 0x2be   : > { %v5170_v38 = vadd.f32 %v5169_v51, %v5168_v15  ;;  %v5207_v44 = vrot.slane %v5206_v3, 1 }
 0x2bf   : > { %v7219_v46 = vadd.f32 %v7218_v30, %v7217_v26  ;;  %v7256_v52 = vrot.slane %v7255_v36, 1 }
 0x2c0   : > { %5171 = vst [vmem:[%s642_s20] sm:$0x1] %v5170_v38  ;;  %v5208_v54 = vadd.f32 %v5207_v44, %v5206_v3 }
 0x2c1   : > { %7220 = vst [vmem:[%s649_s0] sm:$0x1] %v7219_v46  ;;  %v7257_v60 = vadd.f32 %v7256_v52, %v7255_v36 }
 0x2c2   : > { %5209 = vst [vmem:[%s670_s24] sm:$0x1] %v5208_v54 }
 0x2c3   : > { %7258 = vst [vmem:[%s677_s17] sm:$0x1] %v7257_v60 }
 0x2c4 PF: > { %s24_s29 = sadd.s32 1, %s10050_s29   ;;  %s12307_s25 = smov %s10042_s27 }
 0x2c5   : > { %p21_p8 = scmp.ge.s32.totalorder %s24_s29, 6   ;;  %s12308_s26 = smov %s10046_s28 }
 0x2c6   : > { %s12309_s27 = smov %s12312_s30  ;;  %s12310_s28 = smov %s12316_s14 }
 0x2c7   :  { %23 = sbr.rel (!%p21_p8) target bundleno = 3 (0x3), region = 218 }

</bundles_post_ra>
